<compile_context>
chip_gen: v7x
topology: tpu7x:2x2x1
jax: 0.10.0
libtpu: 0.0.40
codegen_flags: <defaults>
</compile_context>

<pallas_src>
import functools

import jax
import jax.numpy as jnp
import numpy as np
from jax import lax
from jax.experimental import pallas as pl
from jax.experimental.pallas import tpu as pltpu

DROP_OUT_RATE = 0.6  # Dropout3d(p=0.6) -> identity in eval mode
BN_EPS = 1e-5


# ----------------------------------------------------------------------------
# Fused kernel: conv_transpose -> (conv+BN+ReLU) -> (conv+BN+ReLU), one batch
# element per grid step, all intermediates resident in VMEM.
# ----------------------------------------------------------------------------
def _decoder_kernel(x_ref, B0_ref, b0_ref, B1_ref, s1_ref, t1_ref,
                    B2_ref, s2_ref, t2_ref, o_ref,
                    xp0_ref, slab1_ref, slab2_ref,
                    *, D, H, W, Cin, Cmid, Cout):
  D2, H2, W2 = 2 * D, 2 * H, 2 * W
  K0 = H * W * Cin          # stage-0 contraction lanes (input)
  K1 = H2 * W2 * Cin        # stage-0 output / stage-1 contraction lanes
  K2 = H2 * W2 * Cmid       # stage-1 output / stage-2 contraction lanes
  KO = H2 * W2 * Cout       # stage-2 output lanes (multiple of 128 here)

  # ---- stage 0: ConvTranspose3d(k=4, s=2, p=1) -------------------------------
  # H/W taps, stride-2 phases and channels are folded into the banded weight
  # B0, so the lane axis is a single (H, W, C) contraction.  Only the D axis
  # is zero-stuffed; the stuffed slab is built in registers and written with
  # a single contiguous, lane-aligned store.
  x = x_ref[0]                                            # (D, H*W*Cin)
  stuffed = jnp.concatenate(
      [x[:, None, :], jnp.zeros((D, 1, K0), jnp.float32)], axis=1
  ).reshape(2 * D, K0)                                    # row 2*i == x[i]
  xp0_ref[...] = jnp.concatenate(
      [jnp.zeros((2, K0), jnp.float32), stuffed,
       jnp.zeros((1, K0), jnp.float32)], axis=0)          # (2D+3, K0)

  acc0 = jnp.zeros((D2, K1), jnp.float32)
  for kd in range(4):                                     # kd taps only
    acc0 = acc0 + jnp.dot(xp0_ref[kd:kd + D2, :], B0_ref[kd],
                          preferred_element_type=jnp.float32)
  y0 = acc0 + b0_ref[...]                                 # conv-transpose bias

  # ---- stage 1: Conv3d(3x3x3, pad=1, no bias) + BN + ReLU --------------------
  # Zero only the two D-halo rows; the interior is fully overwritten.
  slab1_ref[0:1, :] = jnp.zeros((1, K1), jnp.float32)
  slab1_ref[D2 + 1:D2 + 2, :] = jnp.zeros((1, K1), jnp.float32)
  slab1_ref[1:D2 + 1, :] = y0

  acc1 = jnp.zeros((D2, K2), jnp.float32)
  for kd in range(3):
    acc1 = acc1 + jnp.dot(slab1_ref[kd:kd + D2, :], B1_ref[kd],
                          preferred_element_type=jnp.float32)
  y1 = jnp.maximum(acc1 * s1_ref[...] + t1_ref[...], 0.0)
  # TODO(synk): Dropout3d(p=0.6) training-mode channel dropout not modeled
  # (identity in eval mode).

  # ---- stage 2: Conv3d(3x3x3, pad=1, no bias) + BN + ReLU --------------------
  slab2_ref[0:1, :] = jnp.zeros((1, K2), jnp.float32)
  slab2_ref[D2 + 1:D2 + 2, :] = jnp.zeros((1, K2), jnp.float32)
  slab2_ref[1:D2 + 1, :] = y1

  acc2 = jnp.zeros((D2, KO), jnp.float32)
  for kd in range(3):
    acc2 = acc2 + jnp.dot(slab2_ref[kd:kd + D2, :], B2_ref[kd],
                          preferred_element_type=jnp.float32)
  y2 = jnp.maximum(acc2 * s2_ref[...] + t2_ref[...], 0.0)

  o_ref[...] = y2.reshape(1, D2, KO)                      # lane-dense store


# ----------------------------------------------------------------------------
# Banded ("Toeplitz") weight construction (wrapper-side, tiny).
# ----------------------------------------------------------------------------
def _band_deconv(wt, H, W):
  """ConvTranspose3d(k=4,s=2,p=1) band with H/W phases + channels folded.

  wt: flipped DHWIO weight, shape (4,4,4,Ci,Co).  Output row index (ih,iw,ci)
  (raw input), column index (oh,ow,co) (upsampled output)."""
  kD, kH, kW, Ci, Co = wt.shape
  H2, W2 = 2 * H, 2 * W
  AH = np.zeros((kH, H, H2), np.float32)
  for ih in range(H):
    for oh in range(H2):
      kh = 2 + 2 * ih - oh            # dilated+pad-2 index match: oh+kh == 2+2*ih
      if 0 <= kh < kH:
        AH[kh, ih, oh] = 1.0
  AW = np.zeros((kW, W, W2), np.float32)
  for iw in range(W):
    for ow in range(W2):
      kw = 2 + 2 * iw - ow
      if 0 <= kw < kW:
        AW[kw, iw, ow] = 1.0
  B = jnp.einsum("dhwio,hyY,wxX->dyxiYXo", wt, jnp.asarray(AH), jnp.asarray(AW))
  return B.reshape(kD, H * W * Ci, H2 * W2 * Co)


def _band_conv3(w, Hs, Ws):
  """Conv3d(k=3,s=1,p=1) band with H/W taps + channels folded, edge-clipped."""
  kD, kH, kW, Ci, Co = w.shape
  AH = np.zeros((kH, Hs, Hs), np.float32)
  for oh in range(Hs):
    for kh in range(kH):
      ih = oh + kh - 1
      if 0 <= ih < Hs:
        AH[kh, ih, oh] = 1.0
  AW = np.zeros((kW, Ws, Ws), np.float32)
  for ow in range(Ws):
    for kw in range(kW):
      iw = ow + kw - 1
      if 0 <= iw < Ws:
        AW[kw, iw, ow] = 1.0
  B = jnp.einsum("dhwio,hyY,wxX->dyxiYXo", w, jnp.asarray(AH), jnp.asarray(AW))
  return B.reshape(kD, Hs * Ws * Ci, Hs * Ws * Co)


def _bn_fold(gamma, beta, mean, var):
  scale = gamma / jnp.sqrt(var + BN_EPS)
  shift = beta - mean * scale
  return scale, shift


def decoder_forward(x_ncdhw, p):
  N, Cin, D, H, W = x_ncdhw.shape
  Cmid = p["conv1_w"].shape[-1]     # conv weights stored as DHWIO
  Cout = p["conv2_w"].shape[-1]
  D2, H2, W2 = 2 * D, 2 * H, 2 * W
  K1 = H2 * W2 * Cin
  K2 = H2 * W2 * Cmid
  KO = H2 * W2 * Cout

  # ConvTranspose weight (I,O,kD,kH,kW) -> flipped DHWIO (standard equivalence)
  wt = jnp.transpose(p["dec_w"], (2, 3, 4, 0, 1))[::-1, ::-1, ::-1]
  B0 = _band_deconv(wt, H, W)                  # (4, H*W*Cin,   H2*W2*Cin)
  B1 = _band_conv3(p["conv1_w"], H2, W2)       # (3, H2*W2*Cin,  H2*W2*Cmid)
  B2 = _band_conv3(p["conv2_w"], H2, W2)       # (3, H2*W2*Cmid, H2*W2*Cout)

  # Per-channel epilogue vectors tiled along the (H, W, C) lane layout.
  b0t = jnp.tile(p["dec_b"].astype(jnp.float32), H2 * W2).reshape(1, K1)
  s1, t1 = _bn_fold(p["bn1_g"], p["bn1_b"], p["bn1_m"], p["bn1_v"])
  s2, t2 = _bn_fold(p["bn2_g"], p["bn2_b"], p["bn2_m"], p["bn2_v"])
  s1t = jnp.tile(s1, H2 * W2).reshape(1, K2)
  t1t = jnp.tile(t1, H2 * W2).reshape(1, K2)
  s2t = jnp.tile(s2, H2 * W2).reshape(1, KO)
  t2t = jnp.tile(t2, H2 * W2).reshape(1, KO)

  # NCDHW -> (N, D, H*W*C): H, W and channels flattened onto the lane axis.
  x = jnp.transpose(x_ncdhw, (0, 2, 3, 4, 1)).reshape(N, D, H * W * Cin)

  kernel = functools.partial(_decoder_kernel, D=D, H=H, W=W,
                             Cin=Cin, Cmid=Cmid, Cout=Cout)
  out = pl.pallas_call(
      kernel,
      out_shape=jax.ShapeDtypeStruct((N, D2, KO), jnp.float32),
      grid=(N,),
      in_specs=[
          pl.BlockSpec((1, D, H * W * Cin), lambda n: (n, 0, 0)),
          pl.BlockSpec(B0.shape, lambda n: (0, 0, 0)),
          pl.BlockSpec(b0t.shape, lambda n: (0, 0)),
          pl.BlockSpec(B1.shape, lambda n: (0, 0, 0)),
          pl.BlockSpec(s1t.shape, lambda n: (0, 0)),
          pl.BlockSpec(t1t.shape, lambda n: (0, 0)),
          pl.BlockSpec(B2.shape, lambda n: (0, 0, 0)),
          pl.BlockSpec(s2t.shape, lambda n: (0, 0)),
          pl.BlockSpec(t2t.shape, lambda n: (0, 0)),
      ],
      out_specs=pl.BlockSpec((1, D2, KO), lambda n: (n, 0, 0)),
      scratch_shapes=[
          pltpu.VMEM((2 * D + 3, H * W * Cin), jnp.float32),   # D-stuffed x
          pltpu.VMEM((D2 + 2, K1), jnp.float32),               # y0 + D halo
          pltpu.VMEM((D2 + 2, K2), jnp.float32),               # y1 + D halo
      ],
      compiler_params=pltpu.CompilerParams(dimension_semantics=("parallel",)),
  )(x, B0, b0t, B1, s1t, t1t, B2, s2t, t2t)

  out = out.reshape(N, D2, H2, W2, Cout)
  return jnp.transpose(out, (0, 4, 1, 2, 3))             # -> NCDHW


# ----------------------------------------------------------------------------
# Deterministic parameter init (shapes per decoder.__init__).
# ----------------------------------------------------------------------------
def init_params(key, cin, cout):
  ks = jax.random.split(key, 12)
  p = {}
  # ConvTranspose3d weight: (in_channels, out_channels, kD, kH, kW), bias: (in,)
  p["dec_w"] = 0.1 * jax.random.normal(ks[0], (cin, cin, 4, 4, 4), jnp.float32)
  p["dec_b"] = 0.1 * jax.random.normal(ks[1], (cin,), jnp.float32)
  # Conv3d weights (O, I, kD, kH, kW) -> stored as DHWIO for the kernel
  w1 = 0.1 * jax.random.normal(ks[2], (cout, cin, 3, 3, 3), jnp.float32)
  p["conv1_w"] = jnp.transpose(w1, (2, 3, 4, 1, 0))
  p["bn1_g"] = 0.5 + jax.random.uniform(ks[3], (cout,), jnp.float32)
  p["bn1_b"] = 0.1 * jax.random.normal(ks[4], (cout,), jnp.float32)
  p["bn1_m"] = 0.1 * jax.random.normal(ks[5], (cout,), jnp.float32)
  p["bn1_v"] = 0.5 + jax.random.uniform(ks[6], (cout,), jnp.float32)
  w2 = 0.1 * jax.random.normal(ks[7], (cout, cout, 3, 3, 3), jnp.float32)
  p["conv2_w"] = jnp.transpose(w2, (2, 3, 4, 1, 0))
  p["bn2_g"] = 0.5 + jax.random.uniform(ks[8], (cout,), jnp.float32)
  p["bn2_b"] = 0.1 * jax.random.normal(ks[9], (cout,), jnp.float32)
  p["bn2_m"] = 0.1 * jax.random.normal(ks[10], (cout,), jnp.float32)
  p["bn2_v"] = 0.5 + jax.random.uniform(ks[11], (cout,), jnp.float32)
  return p


# Pure-JAX reference (XLA convs) used only for a correctness assert.
def ref_forward(x_ncdhw, p):
  dn = ("NDHWC", "DHWIO", "NDHWC")
  x = jnp.transpose(x_ncdhw, (0, 2, 3, 4, 1))
  wt = jnp.transpose(p["dec_w"], (2, 3, 4, 0, 1))[::-1, ::-1, ::-1]
  x = lax.conv_general_dilated(x, wt, (1, 1, 1), [(2, 2)] * 3,
                               lhs_dilation=(2, 2, 2),
                               dimension_numbers=dn) + p["dec_b"]

  def cbr(x, w, g, b, m, v):
    y = lax.conv_general_dilated(x, w, (1, 1, 1), [(1, 1)] * 3,
                                 dimension_numbers=dn)
    y = (y - m) / jnp.sqrt(v + BN_EPS) * g + b
    return jnp.maximum(y, 0.0)

  x = cbr(x, p["conv1_w"], p["bn1_g"], p["bn1_b"], p["bn1_m"], p["bn1_v"])
  x = cbr(x, p["conv2_w"], p["bn2_g"], p["bn2_b"], p["bn2_m"], p["bn2_v"])
  return jnp.transpose(x, (0, 4, 1, 2, 3))


if __name__ == "__main__":
  IN_C, OUT_C = 8, 4
  key = jax.random.PRNGKey(0)
  kx, kp = jax.random.split(key)
  # small input consistent with the module: (N, C_in, D, H, W)
  x = jax.random.normal(kx, (2, IN_C, 4, 4, 4), jnp.float32)
  params = init_params(kp, IN_C, OUT_C)

  fwd = jax.jit(decoder_forward)
  out = jax.block_until_ready(fwd(x, params))

  assert out.shape == (2, OUT_C, 8, 8, 8), out.shape
  ref = ref_forward(x, params)
  if not np.allclose(np.asarray(out), np.asarray(ref), atol=5e-4, rtol=5e-4):
    raise AssertionError("Pallas decoder output mismatches JAX reference")
  print("KERNEL_OK")
</pallas_src>

<mosaic_0001>
module attributes {stable_mosaic.version = 11 : i64} {
  func.func @_decoder_kernel(%arg0: i32, %arg1: memref<1x4x128xf32, #tpu.memory_space<vmem>>, %arg2: memref<4x128x512xf32, #tpu.memory_space<vmem>>, %arg3: memref<1x512xf32, #tpu.memory_space<vmem>>, %arg4: memref<3x512x256xf32, #tpu.memory_space<vmem>>, %arg5: memref<1x256xf32, #tpu.memory_space<vmem>>, %arg6: memref<1x256xf32, #tpu.memory_space<vmem>>, %arg7: memref<3x256x256xf32, #tpu.memory_space<vmem>>, %arg8: memref<1x256xf32, #tpu.memory_space<vmem>>, %arg9: memref<1x256xf32, #tpu.memory_space<vmem>>, %arg10: memref<1x8x256xf32, #tpu.memory_space<vmem>>, %arg11: memref<11x128xf32, #tpu.memory_space<vmem>>, %arg12: memref<10x512xf32, #tpu.memory_space<vmem>>, %arg13: memref<10x256xf32, #tpu.memory_space<vmem>>) attributes {dimension_semantics = [#tpu.dimension_semantics<parallel>], iteration_bounds = array<i64: 2>, scalar_prefetch = 0 : i64, scratch_operands = 3 : i64, tpu.core_type = #tpu.core_type<tc>, window_params = [{transform_indices = @transform_0, window_bounds = array<i64: 1, 4, 128>}, {pipeline_mode = #tpu.pipeline_mode<synchronous>, transform_indices = @transform_1, window_bounds = array<i64: 4, 128, 512>}, {pipeline_mode = #tpu.pipeline_mode<synchronous>, transform_indices = @transform_2, window_bounds = array<i64: 1, 512>}, {pipeline_mode = #tpu.pipeline_mode<synchronous>, transform_indices = @transform_3, window_bounds = array<i64: 3, 512, 256>}, {pipeline_mode = #tpu.pipeline_mode<synchronous>, transform_indices = @transform_4, window_bounds = array<i64: 1, 256>}, {pipeline_mode = #tpu.pipeline_mode<synchronous>, transform_indices = @transform_5, window_bounds = array<i64: 1, 256>}, {pipeline_mode = #tpu.pipeline_mode<synchronous>, transform_indices = @transform_6, window_bounds = array<i64: 3, 256, 256>}, {pipeline_mode = #tpu.pipeline_mode<synchronous>, transform_indices = @transform_7, window_bounds = array<i64: 1, 256>}, {pipeline_mode = #tpu.pipeline_mode<synchronous>, transform_indices = @transform_8, window_bounds = array<i64: 1, 256>}, {transform_indices = @transform_9, window_bounds = array<i64: 1, 8, 256>}]} {
    %c0 = arith.constant 0 : index
    %c0_0 = arith.constant 0 : index
    %c0_1 = arith.constant 0 : index
    %0 = vector.load %arg1[%c0, %c0_0, %c0_1] : memref<1x4x128xf32, #tpu.memory_space<vmem>>, vector<1x4x128xf32>
    %1 = vector.shape_cast %0 : vector<1x4x128xf32> to vector<4x128xf32>
    %2 = vector.shape_cast %1 : vector<4x128xf32> to vector<4x1x128xf32>
    %cst = arith.constant 0.000000e+00 : f32
    %3 = vector.broadcast %cst : f32 to vector<4x1x128xf32>
    %4 = tpu.concatenate %2, %3 in 1 : vector<4x1x128xf32>, vector<4x1x128xf32> -> vector<4x2x128xf32>
    %5 = vector.shape_cast %4 : vector<4x2x128xf32> to vector<8x128xf32>
    %cst_2 = arith.constant 0.000000e+00 : f32
    %6 = vector.broadcast %cst_2 : f32 to vector<2x128xf32>
    %cst_3 = arith.constant 0.000000e+00 : f32
    %7 = vector.broadcast %cst_3 : f32 to vector<1x128xf32>
    %8 = tpu.concatenate %6, %5, %7 in 0 : vector<2x128xf32>, vector<8x128xf32>, vector<1x128xf32> -> vector<11x128xf32>
    %c0_4 = arith.constant 0 : index
    %c0_5 = arith.constant 0 : index
    %9 = vector.load %arg11[%c0_4, %c0_5] : memref<11x128xf32, #tpu.memory_space<vmem>>, vector<11x128xf32>
    tpu.vector_store %arg11[%c0_4, %c0_5], %8 {strides = array<i32>} : memref<11x128xf32, #tpu.memory_space<vmem>>, vector<11x128xf32>,
    %cst_6 = arith.constant 0.000000e+00 : f32
    %10 = vector.broadcast %cst_6 : f32 to vector<8x512xf32>
    %c0_7 = arith.constant 0 : index
    %c0_8 = arith.constant 0 : index
    %11 = vector.load %arg11[%c0_7, %c0_8] : memref<11x128xf32, #tpu.memory_space<vmem>>, vector<8x128xf32>
    %c0_9 = arith.constant 0 : index
    %c0_10 = arith.constant 0 : index
    %c0_11 = arith.constant 0 : index
    %12 = vector.load %arg2[%c0_9, %c0_10, %c0_11] : memref<4x128x512xf32, #tpu.memory_space<vmem>>, vector<1x128x512xf32>
    %13 = vector.shape_cast %12 : vector<1x128x512xf32> to vector<128x512xf32>
    %cst_12 = arith.constant dense<0.000000e+00> : vector<8x512xf32>
    %14 = tpu.matmul %11, %13, %cst_12 {dimension_numbers = #tpu.dot_dimension_numbers<[1], [0], [0], [1], [0, 0, 1, 1], [], []>} : vector<8x128xf32>, vector<128x512xf32>, vector<8x512xf32> -> vector<8x512xf32>
    %15 = arith.addf %10, %14 : vector<8x512xf32>
    %c1 = arith.constant 1 : index
    %c0_13 = arith.constant 0 : index
    %16 = vector.load %arg11[%c1, %c0_13] : memref<11x128xf32, #tpu.memory_space<vmem>>, vector<8x128xf32>
    %c1_14 = arith.constant 1 : index
    %c0_15 = arith.constant 0 : index
    %c0_16 = arith.constant 0 : index
    %17 = vector.load %arg2[%c1_14, %c0_15, %c0_16] : memref<4x128x512xf32, #tpu.memory_space<vmem>>, vector<1x128x512xf32>
    %18 = vector.shape_cast %17 : vector<1x128x512xf32> to vector<128x512xf32>
    %cst_17 = arith.constant dense<0.000000e+00> : vector<8x512xf32>
    %19 = tpu.matmul %16, %18, %cst_17 {dimension_numbers = #tpu.dot_dimension_numbers<[1], [0], [0], [1], [0, 0, 1, 1], [], []>} : vector<8x128xf32>, vector<128x512xf32>, vector<8x512xf32> -> vector<8x512xf32>
    %20 = arith.addf %15, %19 : vector<8x512xf32>
    %c2 = arith.constant 2 : index
    %c0_18 = arith.constant 0 : index
    %21 = vector.load %arg11[%c2, %c0_18] : memref<11x128xf32, #tpu.memory_space<vmem>>, vector<8x128xf32>
    %c2_19 = arith.constant 2 : index
    %c0_20 = arith.constant 0 : index
    %c0_21 = arith.constant 0 : index
    %22 = vector.load %arg2[%c2_19, %c0_20, %c0_21] : memref<4x128x512xf32, #tpu.memory_space<vmem>>, vector<1x128x512xf32>
    %23 = vector.shape_cast %22 : vector<1x128x512xf32> to vector<128x512xf32>
    %cst_22 = arith.constant dense<0.000000e+00> : vector<8x512xf32>
    %24 = tpu.matmul %21, %23, %cst_22 {dimension_numbers = #tpu.dot_dimension_numbers<[1], [0], [0], [1], [0, 0, 1, 1], [], []>} : vector<8x128xf32>, vector<128x512xf32>, vector<8x512xf32> -> vector<8x512xf32>
    %25 = arith.addf %20, %24 : vector<8x512xf32>
    %c3 = arith.constant 3 : index
    %c0_23 = arith.constant 0 : index
    %26 = vector.load %arg11[%c3, %c0_23] : memref<11x128xf32, #tpu.memory_space<vmem>>, vector<8x128xf32>
    %c3_24 = arith.constant 3 : index
    %c0_25 = arith.constant 0 : index
    %c0_26 = arith.constant 0 : index
    %27 = vector.load %arg2[%c3_24, %c0_25, %c0_26] : memref<4x128x512xf32, #tpu.memory_space<vmem>>, vector<1x128x512xf32>
    %28 = vector.shape_cast %27 : vector<1x128x512xf32> to vector<128x512xf32>
    %cst_27 = arith.constant dense<0.000000e+00> : vector<8x512xf32>
    %29 = tpu.matmul %26, %28, %cst_27 {dimension_numbers = #tpu.dot_dimension_numbers<[1], [0], [0], [1], [0, 0, 1, 1], [], []>} : vector<8x128xf32>, vector<128x512xf32>, vector<8x512xf32> -> vector<8x512xf32>
    %30 = arith.addf %25, %29 : vector<8x512xf32>
    %c0_28 = arith.constant 0 : index
    %c0_29 = arith.constant 0 : index
    %31 = vector.load %arg3[%c0_28, %c0_29] : memref<1x512xf32, #tpu.memory_space<vmem>>, vector<1x512xf32>
    %32 = vector.broadcast %31 : vector<1x512xf32> to vector<8x512xf32>
    %33 = arith.addf %30, %32 : vector<8x512xf32>
    %cst_30 = arith.constant 0.000000e+00 : f32
    %34 = vector.broadcast %cst_30 : f32 to vector<1x512xf32>
    %c0_31 = arith.constant 0 : index
    %c0_32 = arith.constant 0 : index
    %35 = vector.load %arg12[%c0_31, %c0_32] : memref<10x512xf32, #tpu.memory_space<vmem>>, vector<1x512xf32>
    tpu.vector_store %arg12[%c0_31, %c0_32], %34 {strides = array<i32>} : memref<10x512xf32, #tpu.memory_space<vmem>>, vector<1x512xf32>,
    %cst_33 = arith.constant 0.000000e+00 : f32
    %36 = vector.broadcast %cst_33 : f32 to vector<1x512xf32>
    %c9 = arith.constant 9 : index
    %c0_34 = arith.constant 0 : index
    %37 = vector.load %arg12[%c9, %c0_34] : memref<10x512xf32, #tpu.memory_space<vmem>>, vector<1x512xf32>
    tpu.vector_store %arg12[%c9, %c0_34], %36 {strides = array<i32>} : memref<10x512xf32, #tpu.memory_space<vmem>>, vector<1x512xf32>,
    %c1_35 = arith.constant 1 : index
    %c0_36 = arith.constant 0 : index
    %38 = vector.load %arg12[%c1_35, %c0_36] : memref<10x512xf32, #tpu.memory_space<vmem>>, vector<8x512xf32>
    tpu.vector_store %arg12[%c1_35, %c0_36], %33 {strides = array<i32>} : memref<10x512xf32, #tpu.memory_space<vmem>>, vector<8x512xf32>,
    %cst_37 = arith.constant 0.000000e+00 : f32
    %39 = vector.broadcast %cst_37 : f32 to vector<8x256xf32>
    %c0_38 = arith.constant 0 : index
    %c0_39 = arith.constant 0 : index
    %40 = vector.load %arg12[%c0_38, %c0_39] : memref<10x512xf32, #tpu.memory_space<vmem>>, vector<8x512xf32>
    %c0_40 = arith.constant 0 : index
    %c0_41 = arith.constant 0 : index
    %c0_42 = arith.constant 0 : index
    %41 = vector.load %arg4[%c0_40, %c0_41, %c0_42] : memref<3x512x256xf32, #tpu.memory_space<vmem>>, vector<1x512x256xf32>
    %42 = vector.shape_cast %41 : vector<1x512x256xf32> to vector<512x256xf32>
    %cst_43 = arith.constant dense<0.000000e+00> : vector<8x256xf32>
    %43 = tpu.matmul %40, %42, %cst_43 {dimension_numbers = #tpu.dot_dimension_numbers<[1], [0], [0], [1], [0, 0, 1, 1], [], []>} : vector<8x512xf32>, vector<512x256xf32>, vector<8x256xf32> -> vector<8x256xf32>
    %44 = arith.addf %39, %43 : vector<8x256xf32>
    %c1_44 = arith.constant 1 : index
    %c0_45 = arith.constant 0 : index
    %45 = vector.load %arg12[%c1_44, %c0_45] : memref<10x512xf32, #tpu.memory_space<vmem>>, vector<8x512xf32>
    %c1_46 = arith.constant 1 : index
    %c0_47 = arith.constant 0 : index
    %c0_48 = arith.constant 0 : index
    %46 = vector.load %arg4[%c1_46, %c0_47, %c0_48] : memref<3x512x256xf32, #tpu.memory_space<vmem>>, vector<1x512x256xf32>
    %47 = vector.shape_cast %46 : vector<1x512x256xf32> to vector<512x256xf32>
    %cst_49 = arith.constant dense<0.000000e+00> : vector<8x256xf32>
    %48 = tpu.matmul %45, %47, %cst_49 {dimension_numbers = #tpu.dot_dimension_numbers<[1], [0], [0], [1], [0, 0, 1, 1], [], []>} : vector<8x512xf32>, vector<512x256xf32>, vector<8x256xf32> -> vector<8x256xf32>
    %49 = arith.addf %44, %48 : vector<8x256xf32>
    %c2_50 = arith.constant 2 : index
    %c0_51 = arith.constant 0 : index
    %50 = vector.load %arg12[%c2_50, %c0_51] : memref<10x512xf32, #tpu.memory_space<vmem>>, vector<8x512xf32>
    %c2_52 = arith.constant 2 : index
    %c0_53 = arith.constant 0 : index
    %c0_54 = arith.constant 0 : index
    %51 = vector.load %arg4[%c2_52, %c0_53, %c0_54] : memref<3x512x256xf32, #tpu.memory_space<vmem>>, vector<1x512x256xf32>
    %52 = vector.shape_cast %51 : vector<1x512x256xf32> to vector<512x256xf32>
    %cst_55 = arith.constant dense<0.000000e+00> : vector<8x256xf32>
    %53 = tpu.matmul %50, %52, %cst_55 {dimension_numbers = #tpu.dot_dimension_numbers<[1], [0], [0], [1], [0, 0, 1, 1], [], []>} : vector<8x512xf32>, vector<512x256xf32>, vector<8x256xf32> -> vector<8x256xf32>
    %54 = arith.addf %49, %53 : vector<8x256xf32>
    %c0_56 = arith.constant 0 : index
    %c0_57 = arith.constant 0 : index
    %55 = vector.load %arg5[%c0_56, %c0_57] : memref<1x256xf32, #tpu.memory_space<vmem>>, vector<1x256xf32>
    %56 = vector.broadcast %55 : vector<1x256xf32> to vector<8x256xf32>
    %57 = arith.mulf %54, %56 : vector<8x256xf32>
    %c0_58 = arith.constant 0 : index
    %c0_59 = arith.constant 0 : index
    %58 = vector.load %arg6[%c0_58, %c0_59] : memref<1x256xf32, #tpu.memory_space<vmem>>, vector<1x256xf32>
    %59 = vector.broadcast %58 : vector<1x256xf32> to vector<8x256xf32>
    %60 = arith.addf %57, %59 : vector<8x256xf32>
    %cst_60 = arith.constant 0.000000e+00 : f32
    %61 = vector.broadcast %cst_60 : f32 to vector<8x256xf32>
    %62 = arith.maximumf %60, %61 : vector<8x256xf32>
    %cst_61 = arith.constant 0.000000e+00 : f32
    %63 = vector.broadcast %cst_61 : f32 to vector<1x256xf32>
    %c0_62 = arith.constant 0 : index
    %c0_63 = arith.constant 0 : index
    %64 = vector.load %arg13[%c0_62, %c0_63] : memref<10x256xf32, #tpu.memory_space<vmem>>, vector<1x256xf32>
    tpu.vector_store %arg13[%c0_62, %c0_63], %63 {strides = array<i32>} : memref<10x256xf32, #tpu.memory_space<vmem>>, vector<1x256xf32>,
    %cst_64 = arith.constant 0.000000e+00 : f32
    %65 = vector.broadcast %cst_64 : f32 to vector<1x256xf32>
    %c9_65 = arith.constant 9 : index
    %c0_66 = arith.constant 0 : index
    %66 = vector.load %arg13[%c9_65, %c0_66] : memref<10x256xf32, #tpu.memory_space<vmem>>, vector<1x256xf32>
    tpu.vector_store %arg13[%c9_65, %c0_66], %65 {strides = array<i32>} : memref<10x256xf32, #tpu.memory_space<vmem>>, vector<1x256xf32>,
    %c1_67 = arith.constant 1 : index
    %c0_68 = arith.constant 0 : index
    %67 = vector.load %arg13[%c1_67, %c0_68] : memref<10x256xf32, #tpu.memory_space<vmem>>, vector<8x256xf32>
    tpu.vector_store %arg13[%c1_67, %c0_68], %62 {strides = array<i32>} : memref<10x256xf32, #tpu.memory_space<vmem>>, vector<8x256xf32>,
    %cst_69 = arith.constant 0.000000e+00 : f32
    %68 = vector.broadcast %cst_69 : f32 to vector<8x256xf32>
    %c0_70 = arith.constant 0 : index
    %c0_71 = arith.constant 0 : index
    %69 = vector.load %arg13[%c0_70, %c0_71] : memref<10x256xf32, #tpu.memory_space<vmem>>, vector<8x256xf32>
    %c0_72 = arith.constant 0 : index
    %c0_73 = arith.constant 0 : index
    %c0_74 = arith.constant 0 : index
    %70 = vector.load %arg7[%c0_72, %c0_73, %c0_74] : memref<3x256x256xf32, #tpu.memory_space<vmem>>, vector<1x256x256xf32>
    %71 = vector.shape_cast %70 : vector<1x256x256xf32> to vector<256x256xf32>
    %cst_75 = arith.constant dense<0.000000e+00> : vector<8x256xf32>
    %72 = tpu.matmul %69, %71, %cst_75 {dimension_numbers = #tpu.dot_dimension_numbers<[1], [0], [0], [1], [0, 0, 1, 1], [], []>} : vector<8x256xf32>, vector<256x256xf32>, vector<8x256xf32> -> vector<8x256xf32>
    %73 = arith.addf %68, %72 : vector<8x256xf32>
    %c1_76 = arith.constant 1 : index
    %c0_77 = arith.constant 0 : index
    %74 = vector.load %arg13[%c1_76, %c0_77] : memref<10x256xf32, #tpu.memory_space<vmem>>, vector<8x256xf32>
    %c1_78 = arith.constant 1 : index
    %c0_79 = arith.constant 0 : index
    %c0_80 = arith.constant 0 : index
    %75 = vector.load %arg7[%c1_78, %c0_79, %c0_80] : memref<3x256x256xf32, #tpu.memory_space<vmem>>, vector<1x256x256xf32>
    %76 = vector.shape_cast %75 : vector<1x256x256xf32> to vector<256x256xf32>
    %cst_81 = arith.constant dense<0.000000e+00> : vector<8x256xf32>
    %77 = tpu.matmul %74, %76, %cst_81 {dimension_numbers = #tpu.dot_dimension_numbers<[1], [0], [0], [1], [0, 0, 1, 1], [], []>} : vector<8x256xf32>, vector<256x256xf32>, vector<8x256xf32> -> vector<8x256xf32>
    %78 = arith.addf %73, %77 : vector<8x256xf32>
    %c2_82 = arith.constant 2 : index
    %c0_83 = arith.constant 0 : index
    %79 = vector.load %arg13[%c2_82, %c0_83] : memref<10x256xf32, #tpu.memory_space<vmem>>, vector<8x256xf32>
    %c2_84 = arith.constant 2 : index
    %c0_85 = arith.constant 0 : index
    %c0_86 = arith.constant 0 : index
    %80 = vector.load %arg7[%c2_84, %c0_85, %c0_86] : memref<3x256x256xf32, #tpu.memory_space<vmem>>, vector<1x256x256xf32>
    %81 = vector.shape_cast %80 : vector<1x256x256xf32> to vector<256x256xf32>
    %cst_87 = arith.constant dense<0.000000e+00> : vector<8x256xf32>
    %82 = tpu.matmul %79, %81, %cst_87 {dimension_numbers = #tpu.dot_dimension_numbers<[1], [0], [0], [1], [0, 0, 1, 1], [], []>} : vector<8x256xf32>, vector<256x256xf32>, vector<8x256xf32> -> vector<8x256xf32>
    %83 = arith.addf %78, %82 : vector<8x256xf32>
    %c0_88 = arith.constant 0 : index
    %c0_89 = arith.constant 0 : index
    %84 = vector.load %arg8[%c0_88, %c0_89] : memref<1x256xf32, #tpu.memory_space<vmem>>, vector<1x256xf32>
    %85 = vector.broadcast %84 : vector<1x256xf32> to vector<8x256xf32>
    %86 = arith.mulf %83, %85 : vector<8x256xf32>
    %c0_90 = arith.constant 0 : index
    %c0_91 = arith.constant 0 : index
    %87 = vector.load %arg9[%c0_90, %c0_91] : memref<1x256xf32, #tpu.memory_space<vmem>>, vector<1x256xf32>
    %88 = vector.broadcast %87 : vector<1x256xf32> to vector<8x256xf32>
    %89 = arith.addf %86, %88 : vector<8x256xf32>
    %cst_92 = arith.constant 0.000000e+00 : f32
    %90 = vector.broadcast %cst_92 : f32 to vector<8x256xf32>
    %91 = arith.maximumf %89, %90 : vector<8x256xf32>
    %92 = vector.shape_cast %91 : vector<8x256xf32> to vector<1x8x256xf32>
    %c0_93 = arith.constant 0 : index
    %c0_94 = arith.constant 0 : index
    %c0_95 = arith.constant 0 : index
    %93 = vector.load %arg10[%c0_93, %c0_94, %c0_95] : memref<1x8x256xf32, #tpu.memory_space<vmem>>, vector<1x8x256xf32>
    tpu.vector_store %arg10[%c0_93, %c0_94, %c0_95], %92 {strides = array<i32>} : memref<1x8x256xf32, #tpu.memory_space<vmem>>, vector<1x8x256xf32>,
    return
  }
  func.func @transform_0(%arg0: i32) -> (i32, i32, i32) {
    %c0_i32 = arith.constant 0 : i32
    %c0_i32_0 = arith.constant 0 : i32
    %c0_i32_1 = arith.constant 0 : i32
    return %arg0, %c0_i32, %c0_i32_0 : i32, i32, i32
  }
  func.func @transform_1(%arg0: i32) -> (i32, i32, i32) {
    %c0_i32 = arith.constant 0 : i32
    %c0_i32_0 = arith.constant 0 : i32
    %c0_i32_1 = arith.constant 0 : i32
    %c0_i32_2 = arith.constant 0 : i32
    return %c0_i32, %c0_i32_0, %c0_i32_1 : i32, i32, i32
  }
  func.func @transform_2(%arg0: i32) -> (i32, i32) {
    %c0_i32 = arith.constant 0 : i32
    %c0_i32_0 = arith.constant 0 : i32
    %c0_i32_1 = arith.constant 0 : i32
    return %c0_i32, %c0_i32_0 : i32, i32
  }
  func.func @transform_3(%arg0: i32) -> (i32, i32, i32) {
    %c0_i32 = arith.constant 0 : i32
    %c0_i32_0 = arith.constant 0 : i32
    %c0_i32_1 = arith.constant 0 : i32
    %c0_i32_2 = arith.constant 0 : i32
    return %c0_i32, %c0_i32_0, %c0_i32_1 : i32, i32, i32
  }
  func.func @transform_4(%arg0: i32) -> (i32, i32) {
    %c0_i32 = arith.constant 0 : i32
    %c0_i32_0 = arith.constant 0 : i32
    %c0_i32_1 = arith.constant 0 : i32
    return %c0_i32, %c0_i32_0 : i32, i32
  }
  func.func @transform_5(%arg0: i32) -> (i32, i32) {
    %c0_i32 = arith.constant 0 : i32
    %c0_i32_0 = arith.constant 0 : i32
    %c0_i32_1 = arith.constant 0 : i32
    return %c0_i32, %c0_i32_0 : i32, i32
  }
  func.func @transform_6(%arg0: i32) -> (i32, i32, i32) {
    %c0_i32 = arith.constant 0 : i32
    %c0_i32_0 = arith.constant 0 : i32
    %c0_i32_1 = arith.constant 0 : i32
    %c0_i32_2 = arith.constant 0 : i32
    return %c0_i32, %c0_i32_0, %c0_i32_1 : i32, i32, i32
  }
  func.func @transform_7(%arg0: i32) -> (i32, i32) {
    %c0_i32 = arith.constant 0 : i32
    %c0_i32_0 = arith.constant 0 : i32
    %c0_i32_1 = arith.constant 0 : i32
    return %c0_i32, %c0_i32_0 : i32, i32
  }
  func.func @transform_8(%arg0: i32) -> (i32, i32) {
    %c0_i32 = arith.constant 0 : i32
    %c0_i32_0 = arith.constant 0 : i32
    %c0_i32_1 = arith.constant 0 : i32
    return %c0_i32, %c0_i32_0 : i32, i32
  }
  func.func @transform_9(%arg0: i32) -> (i32, i32, i32) {
    %c0_i32 = arith.constant 0 : i32
    %c0_i32_0 = arith.constant 0 : i32
    %c0_i32_1 = arith.constant 0 : i32
    return %arg0, %c0_i32, %c0_i32_0 : i32, i32, i32
  }
}

</mosaic_0001>

<bundles_post_ra>
// kernel: tile.33
= control target key start
LH: loop header
LB: loop body
LE: loop exit
PB: predicated region body
PF: predicated region fallthrough
CT: control target
= control target key end

     0   :  { %s64_s0 = inlined_call_operand.vmem [shape: f32[4], index: 0, kind: input, shape index: {}]   ;;  %s65_s1 = inlined_call_operand.vmem [shape: f32[64,4], index: 1, kind: output, shape index: {}]  }
   0x1   :  { %v4_v0 = vld [vmem:[%s64_s0] ss:$0 sm:$0xff] }
   0x2   :  { %5 = vst [vmem:[%s65_s1] sm:$0xff] %v4_v0  ;;  %20 = vst [vmem:[%s65_s1 + $0x8] sm:$0xff] %v4_v0 }
   0x3   :  { %21 = vst [vmem:[%s65_s1 + $0x10] sm:$0xff] %v4_v0  ;;  %22 = vst [vmem:[%s65_s1 + $0x18] sm:$0xff] %v4_v0 }
   0x4   :  { %23 = vst [vmem:[%s65_s1 + $0x20] sm:$0xff] %v4_v0  ;;  %24 = vst [vmem:[%s65_s1 + $0x28] sm:$0xff] %v4_v0 }
   0x5   :  { %25 = vst [vmem:[%s65_s1 + $0x30] sm:$0xff] %v4_v0  ;;  %26 = vst [vmem:[%s65_s1 + $0x38] sm:$0xff] %v4_v0 }

// kernel: tile.34
= control target key start
LH: loop header
LB: loop body
LE: loop exit
PB: predicated region body
PF: predicated region fallthrough
CT: control target
= control target key end

     0   :  { %vm5_vm0 = vcmask 1041409   ;;  %s425_s14 = smov 124   ;;  %s426_s21 = smov 116   ;;  %vm7_vm1 = vcmask 31744   ;;  %vm17_vm2 = vcmask 1048544   ;;  %vm27_vm3 = vcmask 1015744   ;;  %s696_s0 = inlined_call_operand.vmem [shape: f32[64,4], index: 0, kind: input, shape index: {}]   ;;  %s697_s1 = inlined_call_operand.vmem [shape: f32[1,256], index: 1, kind: output, shape index: {}]  }
   0x1   :  { %v331_v0 = vld [vmem:[%s696_s0 + $0x1f] sm:$0x1]   ;;  %v335_v3 = vld [vmem:[%s696_s0 + $0x1d] sm:$0x1]   ;;  %v333_v6 = vld [vmem:[%s696_s0 + $0x1e] sm:$0x1]  }
   0x2   :  { %v332_v1 = vld [vmem:[%s696_s0 + $0x3e] sm:$0x2]   ;;  %v336_v4 = vld [vmem:[%s696_s0 + $0x3c] sm:$0x2]   ;;  %v334_v7 = vld [vmem:[%s696_s0 + $0x3d] sm:$0x2]  }
   0x3   :  { %v14_v2 = vsel %vm5_vm0, %v332_v1, %v331_v0  ;;  %v34_v5 = vsel %vm5_vm0, %v336_v4, %v335_v3  ;;  %v337_v8 = vld [vmem:[%s696_s0 + $0x1c] sm:$0x1]   ;;  %v24_v9 = vsel %vm5_vm0, %v334_v7, %v333_v6  ;;  %v339_v12 = vld [vmem:[%s696_s0 + $0x1b] sm:$0x1]   ;;  %v341_v14 = vld [vmem:[%s696_s0 + $0x1a] sm:$0x1]  }
   0x4   :  { %15 = vrot.lane.b32.xlu0 %v14_v2, %s425_s14  ;;  %35 = vrot.lane.b32.xlu1 %v34_v5, %s426_s21  ;;  %v338_v10 = vld [vmem:[%s696_s0 + $0x3b] sm:$0x2]   ;;  %v340_v13 = vld [vmem:[%s696_s0 + $0x3a] sm:$0x2]   ;;  %s427_s3 = smov 120   ;;  %s428_s4 = smov 112  }
   0x5   :  { %v44_v11 = vsel %vm5_vm0, %v338_v10, %v337_v8  ;;  %v342_v15 = vld [vmem:[%s696_s0 + $0x39] sm:$0x2]   ;;  %v54_v16 = vsel %vm5_vm0, %v340_v13, %v339_v12  ;;  %v343_v18 = vld [vmem:[%s696_s0 + $0x19] sm:$0x1]   ;;  %v345_v20 = vld [vmem:[%s696_s0 + $0x18] sm:$0x1]  }
   0x6   :  { %v64_v17 = vsel %vm5_vm0, %v342_v15, %v341_v14  ;;  %v344_v19 = vld [vmem:[%s696_s0 + $0x38] sm:$0x2]   ;;  %v346_v21 = vld [vmem:[%s696_s0 + $0x37] sm:$0x2]   ;;  %s429_s13 = smov 108   ;;  %s430_s14 = smov 104  }
   0x7   :  { %v74_v22 = vsel %vm5_vm0, %v344_v19, %v343_v18  ;;  %v84_v23 = vsel %vm5_vm0, %v346_v21, %v345_v20  ;;  %v347_v24 = vld [vmem:[%s696_s0 + $0x17] sm:$0x1]   ;;  %v349_v26 = vld [vmem:[%s696_s0 + $0x16] sm:$0x1]   ;;  %s431_s23 = smov 100   ;;  %s432_s24 = smov 96  }
   0x8   :  { %25 = vrot.lane.b32.xlu0 %v24_v9, %s427_s3  ;;  %45 = vrot.lane.b32.xlu1 %v44_v11, %s428_s4  ;;  %v348_v25 = vld [vmem:[%s696_s0 + $0x36] sm:$0x2]   ;;  %v350_v27 = vld [vmem:[%s696_s0 + $0x35] sm:$0x2]   ;;  %s433_s4 = smov 92   ;;  %s434_s5 = smov 88  }
   0x9   :  { %v94_v28 = vsel %vm5_vm0, %v348_v25, %v347_v24  ;;  %v104_v29 = vsel %vm5_vm0, %v350_v27, %v349_v26  ;;  %v351_v30 = vld [vmem:[%s696_s0 + $0x15] sm:$0x1]   ;;  %v353_v32 = vld [vmem:[%s696_s0 + $0x14] sm:$0x1]   ;;  %v355_v36 = vld [vmem:[%s696_s0 + $0x13] sm:$0x1]  }
   0xa   :  { %v352_v31 = vld [vmem:[%s696_s0 + $0x34] sm:$0x2]   ;;  %v354_v33 = vld [vmem:[%s696_s0 + $0x33] sm:$0x2]   ;;  %v356_v37 = vld [vmem:[%s696_s0 + $0x32] sm:$0x2]  }
   0xb   :  { %v114_v34 = vsel %vm5_vm0, %v352_v31, %v351_v30  ;;  %v124_v35 = vsel %vm5_vm0, %v354_v33, %v353_v32  ;;  %v357_v38 = vld [vmem:[%s696_s0 + $0x12] sm:$0x1]   ;;  %s436_s15 = smov 80   ;;  %v134_v40 = vsel %vm5_vm0, %v356_v37, %v355_v36  ;;  %v359_v42 = vld [vmem:[%s696_s0 + $0x11] sm:$0x1]   ;;  %s438_s29 = smov 72  }
   0xc   :  { %55 = vrot.lane.b32.xlu0 %v54_v16, %s429_s13  ;;  %65 = vrot.lane.b32.xlu1 %v64_v17, %s430_s14  ;;  %v358_v39 = vld [vmem:[%s696_s0 + $0x31] sm:$0x2]   ;;  %s435_s14 = smov 84   ;;  %v360_v43 = vld [vmem:[%s696_s0 + $0x30] sm:$0x2]   ;;  %s439_s9 = smov 68  }
   0xd   :  { %v144_v41 = vsel %vm5_vm0, %v358_v39, %v357_v38  ;;  %v361_v44 = vld [vmem:[%s696_s0 + $0x10] sm:$0x1]   ;;  %v2_v46 = vld [vmem:[%s696_s0] sm:$0x1]   ;;  %v154_v48 = vsel %vm5_vm0, %v360_v43, %v359_v42  ;;  %v363_v51 = vld [vmem:[%s696_s0 + $0xf] sm:$0x1]  }
   0xe   :  { %v362_v45 = vld [vmem:[%s696_s0 + $0x2f] sm:$0x2]   ;;  %v330_v47 = vld [vmem:[%s696_s0 + $0x1f] sm:$0x2]   ;;  %v364_v52 = vld [vmem:[%s696_s0 + $0x2e] sm:$0x2]  }
   0xf   :  { %v6_v49 = vsel %vm5_vm0, %v330_v47, %v2_v46  ;;  %v164_v50 = vsel %vm5_vm0, %v362_v45, %v361_v44  ;;  %v365_v53 = vld [vmem:[%s696_s0 + $0xe] sm:$0x1]   ;;  %s440_s10 = smov 64   ;;  %v174_v55 = vsel %vm5_vm0, %v364_v52, %v363_v51  ;;  %v367_v57 = vld [vmem:[%s696_s0 + $0xd] sm:$0x1]   ;;  %s441_s19 = smov 60  }
  0x10   :  { %75 = vrot.lane.b32.xlu0 %v74_v22, %s431_s23  ;;  %85 = vrot.lane.b32.xlu1 %v84_v23, %s432_s24  ;;  %s437_s24 = smov 76   ;;  %8 = vst.msk [vmem:[#allocation0] ss:$8 sm:$0x3] %vm7_vm1, %v6_v49   ;;  %v366_v54 = vld [vmem:[%s696_s0 + $0x2d] sm:$0x2]  }
  0x11   :  { %v184_v56 = vsel %vm5_vm0, %v366_v54, %v365_v53  ;;  %v368_v58 = vld [vmem:[%s696_s0 + $0x2c] sm:$0x2]   ;;  %v369_v59 = vld [vmem:[%s696_s0 + $0xc] sm:$0x1]   ;;  %s442_s20 = smov 56   ;;  %s444_s30 = smov 48  }
  0x12   :  { %v370_v60 = vld [vmem:[%s696_s0 + $0x2b] sm:$0x2]   ;;  %v194_v61 = vsel %vm5_vm0, %v368_v58, %v367_v57  ;;  %v371_v63 = vld [vmem:[%s696_s0 + $0xb] sm:$0x1]   ;;  %v373_v1 = vld [vmem:[%s696_s0 + $0xa] sm:$0x1]  }
  0x13   :  { %v204_v62 = vsel %vm5_vm0, %v370_v60, %v369_v59  ;;  %v372_v0 = vld [vmem:[%s696_s0 + $0x2a] sm:$0x2]   ;;  %v374_v2 = vld [vmem:[%s696_s0 + $0x29] sm:$0x2]   ;;  %v375_v5 = vld [vmem:[%s696_s0 + $0x9] sm:$0x1]  }
  0x14   :  { %95 = vrot.lane.b32.xlu0 %v94_v28, %s433_s4  ;;  %105 = vrot.lane.b32.xlu1 %v104_v29, %s434_s5  ;;  %v214_v3 = vsel %vm5_vm0, %v372_v0, %v371_v63  ;;  %v224_v4 = vsel %vm5_vm0, %v374_v2, %v373_v1  ;;  %v376_v6 = vld [vmem:[%s696_s0 + $0x28] sm:$0x2]   ;;  %v377_v7 = vld [vmem:[%s696_s0 + $0x8] sm:$0x1]   ;;  %s446_s11 = smov 40   ;;  %s448_s21 = smov 32  }
  0x15   :  { %v378_v8 = vld [vmem:[%s696_s0 + $0x27] sm:$0x2]   ;;  %v234_v9 = vsel %vm5_vm0, %v376_v6, %v375_v5  ;;  %v379_v11 = vld [vmem:[%s696_s0 + $0x7] sm:$0x1]   ;;  %v381_v13 = vld [vmem:[%s696_s0 + $0x6] sm:$0x1]  }
  0x16   :  { %v244_v10 = vsel %vm5_vm0, %v378_v8, %v377_v7  ;;  %v380_v12 = vld [vmem:[%s696_s0 + $0x26] sm:$0x2]   ;;  %v382_v14 = vld [vmem:[%s696_s0 + $0x25] sm:$0x2]   ;;  %v383_v17 = vld [vmem:[%s696_s0 + $0x5] sm:$0x1]  }
  0x17   :  { %v254_v15 = vsel %vm5_vm0, %v380_v12, %v379_v11  ;;  %v264_v16 = vsel %vm5_vm0, %v382_v14, %v381_v13  ;;  %v384_v18 = vld [vmem:[%s696_s0 + $0x24] sm:$0x2]   ;;  %v385_v19 = vld [vmem:[%s696_s0 + $0x4] sm:$0x1]   ;;  %s450_s2 = smov 24   ;;  %s452_s12 = smov 16  }
  0x18   :  { %115 = vrot.lane.b32.xlu0 %v114_v34, %s435_s14  ;;  %125 = vrot.lane.b32.xlu1 %v124_v35, %s436_s15  ;;  %v386_v20 = vld [vmem:[%s696_s0 + $0x23] sm:$0x2]   ;;  %v274_v21 = vsel %vm5_vm0, %v384_v18, %v383_v17  ;;  %v387_v23 = vld [vmem:[%s696_s0 + $0x3] sm:$0x1]   ;;  %s454_s17 = smov 8   ;;  %s455_s18 = smov 4  }
  0x19   :  { %v284_v22 = vsel %vm5_vm0, %v386_v20, %v385_v19  ;;  %v388_v24 = vld [vmem:[%s696_s0 + $0x22] sm:$0x2]   ;;  %v389_v25 = vld [vmem:[%s696_s0 + $0x2] sm:$0x1]   ;;  %v391_v29 = vld [vmem:[%s696_s0 + $0x1] sm:$0x1]  }
  0x1a   :  { %v390_v26 = vld [vmem:[%s696_s0 + $0x21] sm:$0x2]   ;;  %v294_v27 = vsel %vm5_vm0, %v388_v24, %v387_v23  ;;  %v392_v30 = vld [vmem:[%s696_s0 + $0x20] sm:$0x2]   ;;  %s453_s0 = smov 12   ;;  %vm37_vm4 = vcmask 982944  }
  0x1b   :  { %v304_v28 = vsel %vm5_vm0, %v390_v26, %v389_v25  ;;  %v314_v31 = vsel %vm5_vm0, %v392_v30, %v391_v29  ;;  %vm47_vm5 = vcmask 950144   ;;  %vm57_vm6 = vcmask 917344  }
  0x1c   :  { %135 = vrot.lane.b32.xlu0 %v134_v40, %s437_s24  ;;  %145 = vrot.lane.b32.xlu1 %v144_v41, %s438_s29  ;;  %s443_s29 = smov 52   ;;  %vm67_vm7 = vcmask 884544   ;;  %vm77_vm8 = vcmask 851744   ;;  %vm87_vm9 = vcmask 818944   ;;  %vm97_vm10 = vcmask 786144  }
  0x1d   :  { %vm107_vm11 = vcmask 753344   ;;  %vm117_vm12 = vcmask 720544   ;;  %vm127_vm13 = vcmask 687744   ;;  %vm137_vm14 = vcmask 654944  }
  0x1e   :  { %vm147_vm15 = vcmask 622144   ;;  %vm157_vm0 = vcmask 589344   ;;  %vm167_vm1 = vcmask 556544  }
  0x20   :  { %155 = vrot.lane.b32.xlu0 %v154_v48, %s439_s9  ;;  %165 = vrot.lane.b32.xlu1 %v164_v50, %s440_s10  ;;  %s445_s10 = smov 44  }
  0x24   :  { %175 = vrot.lane.b32.xlu0 %v174_v55, %s441_s19  ;;  %185 = vrot.lane.b32.xlu1 %v184_v56, %s442_s20  ;;  %s447_s20 = smov 36  }
  0x28   :  { %195 = vrot.lane.b32.xlu0 %v194_v61, %s443_s29  ;;  %205 = vrot.lane.b32.xlu1 %v204_v62, %s444_s30  ;;  %s449_s30 = smov 28  }
  0x2c   :  { %215 = vrot.lane.b32.xlu0 %v214_v3, %s445_s10  ;;  %225 = vrot.lane.b32.xlu1 %v224_v4, %s446_s11  ;;  %s451_s11 = smov 20  }
  0x30   :  { %235 = vrot.lane.b32.xlu0 %v234_v9, %s447_s20  ;;  %245 = vrot.lane.b32.xlu1 %v244_v10, %s448_s21 }
  0x34   :  { %255 = vrot.lane.b32.xlu0 %v254_v15, %s449_s30  ;;  %265 = vrot.lane.b32.xlu1 %v264_v16, %s450_s2 }
  0x38   :  { %275 = vrot.lane.b32.xlu0 %v274_v21, %s451_s11  ;;  %285 = vrot.lane.b32.xlu1 %v284_v22, %s452_s12 }
  0x3c   :  { %295 = vrot.lane.b32.xlu0 %v294_v27, %s453_s0  ;;  %305 = vrot.lane.b32.xlu1 %v304_v28, %s454_s17 }
  0x40   :  { %315 = vrot.lane.b32.xlu0 %v314_v31, %s455_s18 }
  0x76   :  { %v16_v32 = vpop.permute.xlu0 %15   ;;  %v36_v33 = vpop.permute.xlu1 %35  }
  0x77   :  { %18 = vst.msk [vmem:[#allocation0] ss:$8 sm:$0x3] %vm17_vm2, %v16_v32   ;;  %vm177_vm2 = vcmask 523744  }
  0x7a   :  { %v26_v34 = vpop.permute.xlu0 %25   ;;  %v46_v35 = vpop.permute.xlu1 %45  }
  0x7b   :  { %28 = vst.msk [vmem:[#allocation0] ss:$8 sm:$0x3] %vm27_vm3, %v26_v34   ;;  %vm187_vm3 = vcmask 490944  }
  0x7c   :  { %38 = vst.msk [vmem:[#allocation0] ss:$8 sm:$0x3] %vm37_vm4, %v36_v33   ;;  %vm197_vm4 = vcmask 458144  }
  0x7d   :  { %48 = vst.msk [vmem:[#allocation0] ss:$8 sm:$0x3] %vm47_vm5, %v46_v35   ;;  %vm207_vm5 = vcmask 425344  }
  0x7e   :  { %v56_v36 = vpop.permute.xlu0 %55   ;;  %v66_v37 = vpop.permute.xlu1 %65  }
  0x7f   :  { %58 = vst.msk [vmem:[#allocation0] ss:$8 sm:$0x3] %vm57_vm6, %v56_v36   ;;  %vm217_vm6 = vcmask 392544  }
  0x80   :  { %68 = vst.msk [vmem:[#allocation0] ss:$8 sm:$0x3] %vm67_vm7, %v66_v37   ;;  %vm227_vm7 = vcmask 359744  }
  0x82   :  { %v76_v38 = vpop.permute.xlu0 %75   ;;  %v86_v39 = vpop.permute.xlu1 %85  }
  0x83   :  { %78 = vst.msk [vmem:[#allocation0] ss:$8 sm:$0x3] %vm77_vm8, %v76_v38   ;;  %vm237_vm8 = vcmask 326944  }
  0x84   :  { %88 = vst.msk [vmem:[#allocation0] ss:$8 sm:$0x3] %vm87_vm9, %v86_v39   ;;  %vm247_vm9 = vcmask 294144  }
  0x86   :  { %v96_v40 = vpop.permute.xlu0 %95   ;;  %v106_v41 = vpop.permute.xlu1 %105  }
  0x87   :  { %98 = vst.msk [vmem:[#allocation0] ss:$8 sm:$0x3] %vm97_vm10, %v96_v40   ;;  %vm257_vm10 = vcmask 261344  }
  0x88   :  { %108 = vst.msk [vmem:[#allocation0] ss:$8 sm:$0x3] %vm107_vm11, %v106_v41   ;;  %vm267_vm11 = vcmask 228544  }
  0x8a   :  { %v116_v42 = vpop.permute.xlu0 %115   ;;  %v126_v43 = vpop.permute.xlu1 %125  }
  0x8b   :  { %118 = vst.msk [vmem:[#allocation0] ss:$8 sm:$0x3] %vm117_vm12, %v116_v42   ;;  %vm277_vm12 = vcmask 195744  }
  0x8c   :  { %128 = vst.msk [vmem:[#allocation0] ss:$8 sm:$0x3] %vm127_vm13, %v126_v43   ;;  %vm287_vm13 = vcmask 162944  }
  0x8e   :  { %v136_v44 = vpop.permute.xlu0 %135   ;;  %v146_v45 = vpop.permute.xlu1 %145  }
  0x8f   :  { %138 = vst.msk [vmem:[#allocation0] ss:$8 sm:$0x3] %vm137_vm14, %v136_v44   ;;  %vm297_vm14 = vcmask 130144  }
  0x90   :  { %148 = vst.msk [vmem:[#allocation0] ss:$8 sm:$0x3] %vm147_vm15, %v146_v45   ;;  %vm307_vm15 = vcmask 97344  }
  0x92   :  { %v156_v46 = vpop.permute.xlu0 %155   ;;  %v166_v47 = vpop.permute.xlu1 %165  }
  0x93   :  { %158 = vst.msk [vmem:[#allocation0] ss:$8 sm:$0x3] %vm157_vm0, %v156_v46   ;;  %vm317_vm0 = vcmask 64544  }
  0x94   :  { %168 = vst.msk [vmem:[#allocation0] ss:$8 sm:$0x3] %vm167_vm1, %v166_v47  }
  0x96   :  { %v176_v48 = vpop.permute.xlu0 %175   ;;  %v186_v49 = vpop.permute.xlu1 %185  }
  0x97   :  { %178 = vst.msk [vmem:[#allocation0] ss:$8 sm:$0x3] %vm177_vm2, %v176_v48  }
  0x98   :  { %188 = vst.msk [vmem:[#allocation0] ss:$8 sm:$0x3] %vm187_vm3, %v186_v49  }
  0x9a   :  { %v196_v50 = vpop.permute.xlu0 %195   ;;  %v206_v51 = vpop.permute.xlu1 %205  }
  0x9b   :  { %198 = vst.msk [vmem:[#allocation0] ss:$8 sm:$0x3] %vm197_vm4, %v196_v50  }
  0x9c   :  { %208 = vst.msk [vmem:[#allocation0] ss:$8 sm:$0x3] %vm207_vm5, %v206_v51  }
  0x9e   :  { %v216_v52 = vpop.permute.xlu0 %215   ;;  %v226_v53 = vpop.permute.xlu1 %225  }
  0x9f   :  { %218 = vst.msk [vmem:[#allocation0] ss:$8 sm:$0x3] %vm217_vm6, %v216_v52  }
  0xa0   :  { %228 = vst.msk [vmem:[#allocation0] ss:$8 sm:$0x3] %vm227_vm7, %v226_v53  }
  0xa2   :  { %v236_v54 = vpop.permute.xlu0 %235   ;;  %v246_v55 = vpop.permute.xlu1 %245  }
  0xa3   :  { %238 = vst.msk [vmem:[#allocation0] ss:$8 sm:$0x3] %vm237_vm8, %v236_v54  }
  0xa4   :  { %248 = vst.msk [vmem:[#allocation0] ss:$8 sm:$0x3] %vm247_vm9, %v246_v55  }
  0xa6   :  { %v256_v56 = vpop.permute.xlu0 %255   ;;  %v266_v57 = vpop.permute.xlu1 %265  }
  0xa7   :  { %258 = vst.msk [vmem:[#allocation0] ss:$8 sm:$0x3] %vm257_vm10, %v256_v56  }
  0xa8   :  { %268 = vst.msk [vmem:[#allocation0] ss:$8 sm:$0x3] %vm267_vm11, %v266_v57  }
  0xaa   :  { %v276_v58 = vpop.permute.xlu0 %275   ;;  %v286_v59 = vpop.permute.xlu1 %285  }
  0xab   :  { %278 = vst.msk [vmem:[#allocation0] ss:$8 sm:$0x3] %vm277_vm12, %v276_v58  }
  0xac   :  { %288 = vst.msk [vmem:[#allocation0] ss:$8 sm:$0x3] %vm287_vm13, %v286_v59  }
  0xae   :  { %v296_v60 = vpop.permute.xlu0 %295   ;;  %v306_v61 = vpop.permute.xlu1 %305  }
  0xaf   :  { %298 = vst.msk [vmem:[#allocation0] ss:$8 sm:$0x3] %vm297_vm14, %v296_v60  }
  0xb0   :  { %308 = vst.msk [vmem:[#allocation0] ss:$8 sm:$0x3] %vm307_vm15, %v306_v61  }
  0xb2   :  { %v316_v62 = vpop.permute.xlu0 %315  }
  0xb3   :  { %318 = vst.msk [vmem:[#allocation0] ss:$8 sm:$0x3] %vm317_vm0, %v316_v62  }
  0xba   :  { %v322_v63 = vld [vmem:[#allocation0] sm:$0x1]  ;;  %v326_v0 = vld [vmem:[#allocation0 + $0x8] sm:$0x1] }
  0xbb   :  { %324 = vst [vmem:[%s697_s1] sm:$0x1] %v322_v63  ;;  %393 = vst [vmem:[%s697_s1 + $0x1] sm:$0x1] %v326_v0 }

// kernel: tile.28
= control target key start
LH: loop header
LB: loop body
LE: loop exit
PB: predicated region body
PF: predicated region fallthrough
CT: control target
= control target key end

     0   :  { %s64_s0 = inlined_call_operand.vmem [shape: f32[8], index: 0, kind: input, shape index: {}]   ;;  %s65_s1 = inlined_call_operand.vmem [shape: f32[64,8], index: 1, kind: output, shape index: {}]  }
   0x1   :  { %v4_v0 = vld [vmem:[%s64_s0] ss:$0 sm:$0xff] }
   0x2   :  { %5 = vst [vmem:[%s65_s1] sm:$0xff] %v4_v0  ;;  %20 = vst [vmem:[%s65_s1 + $0x8] sm:$0xff] %v4_v0 }
   0x3   :  { %21 = vst [vmem:[%s65_s1 + $0x10] sm:$0xff] %v4_v0  ;;  %22 = vst [vmem:[%s65_s1 + $0x18] sm:$0xff] %v4_v0 }
   0x4   :  { %23 = vst [vmem:[%s65_s1 + $0x20] sm:$0xff] %v4_v0  ;;  %24 = vst [vmem:[%s65_s1 + $0x28] sm:$0xff] %v4_v0 }
   0x5   :  { %25 = vst [vmem:[%s65_s1 + $0x30] sm:$0xff] %v4_v0  ;;  %26 = vst [vmem:[%s65_s1 + $0x38] sm:$0xff] %v4_v0 }

// kernel: tile.29
= control target key start
LH: loop header
LB: loop body
LE: loop exit
PB: predicated region body
PF: predicated region fallthrough
CT: control target
= control target key end

     0   :  { %vm6_vm0 = vcmask 1043458   ;;  %s11_s6 = smov 3  ;;  %s14_s7 = smov 12  ;;  %vm8_vm1 = vcmask 64512   ;;  %vm20_vm2 = vcmask 1048512   ;;  %vm32_vm3 = vcmask 982912   ;;  %s412_s0 = inlined_call_operand.vmem [shape: f32[64,8], index: 0, kind: input, shape index: {}]   ;;  %s413_s1 = inlined_call_operand.vmem [shape: f32[1,512], index: 1, kind: output, shape index: {}]  }
   0x1   :  { %v215_v0 = vld [vmem:[%s412_s0 + $0xf] ss:$16 sm:%s11_s6]   ;;  %s35_s12 = smov 3  ;;  %s38_s15 = smov 12  ;;  %vm44_vm4 = vcmask 917312   ;;  %vm56_vm5 = vcmask 851712  }
   0x2   :  { %v216_v1 = vld [vmem:[%s412_s0 + $0xf] ss:$16 sm:%s14_s7]   ;;  %v219_v3 = vld [vmem:[%s412_s0 + $0xd] ss:$16 sm:%s35_s12]   ;;  %s263_s16 = smov 120   ;;  %s23_s19 = smov 3 }
   0x3   :  { %v17_v2 = vsel %vm6_vm0, %v216_v1, %v215_v0  ;;  %v220_v4 = vld [vmem:[%s412_s0 + $0xd] ss:$16 sm:%s38_s15]   ;;  %s26_s20 = smov 12  ;;  %v217_v6 = vld [vmem:[%s412_s0 + $0xe] ss:$16 sm:%s23_s19]   ;;  %s47_s25 = smov 3 }
   0x4   :  { %18 = vrot.lane.b32.xlu0 %v17_v2, %s263_s16  ;;  %v41_v5 = vsel %vm6_vm0, %v220_v4, %v219_v3  ;;  %v218_v7 = vld [vmem:[%s412_s0 + $0xe] ss:$16 sm:%s26_s20]   ;;  %s264_s26 = smov 104   ;;  %s50_s29 = smov 12  ;;  %vm68_vm6 = vcmask 786112   ;;  %vm80_vm7 = vcmask 720512  }
   0x5   :  { %42 = vrot.lane.b32.xlu1 %v41_v5, %s264_s26  ;;  %v29_v8 = vsel %vm6_vm0, %v218_v7, %v217_v6  ;;  %v221_v9 = vld [vmem:[%s412_s0 + $0xc] ss:$16 sm:%s47_s25]   ;;  %s59_s3 = smov 3  ;;  %s62_s4 = smov 12  ;;  %vm92_vm8 = vcmask 654912   ;;  %vm104_vm9 = vcmask 589312  }
   0x6   :  { %v222_v10 = vld [vmem:[%s412_s0 + $0xc] ss:$16 sm:%s50_s29]   ;;  %s265_s5 = smov 112   ;;  %v223_v12 = vld [vmem:[%s412_s0 + $0xb] ss:$16 sm:%s59_s3]   ;;  %s71_s8 = smov 3 }
   0x7   :  { %v53_v11 = vsel %vm6_vm0, %v222_v10, %v221_v9  ;;  %v224_v13 = vld [vmem:[%s412_s0 + $0xb] ss:$16 sm:%s62_s4]   ;;  %v225_v14 = vld [vmem:[%s412_s0 + $0xa] ss:$16 sm:%s71_s8]   ;;  %s74_s13 = smov 12  ;;  %s266_s14 = smov 96  }
   0x8   :  { %30 = vrot.lane.b32.xlu0 %v29_v8, %s265_s5  ;;  %v65_v15 = vsel %vm6_vm0, %v224_v13, %v223_v12  ;;  %v226_v16 = vld [vmem:[%s412_s0 + $0xa] ss:$16 sm:%s74_s13]   ;;  %s83_s17 = smov 3  ;;  %s86_s18 = smov 12  ;;  %vm116_vm10 = vcmask 523712   ;;  %vm128_vm11 = vcmask 458112  }
   0x9   :  { %54 = vrot.lane.b32.xlu1 %v53_v11, %s266_s14  ;;  %v77_v17 = vsel %vm6_vm0, %v226_v16, %v225_v14  ;;  %v227_v18 = vld [vmem:[%s412_s0 + $0x9] ss:$16 sm:%s83_s17]   ;;  %s95_s23 = smov 3  ;;  %s267_s24 = smov 88   ;;  %vm140_vm12 = vcmask 392512   ;;  %vm152_vm13 = vcmask 326912  }
   0xa   :  { %v228_v19 = vld [vmem:[%s412_s0 + $0x9] ss:$16 sm:%s86_s18]   ;;  %v229_v20 = vld [vmem:[%s412_s0 + $0x8] ss:$16 sm:%s95_s23]   ;;  %s98_s27 = smov 12  ;;  %s107_s30 = smov 3 }
   0xb   :  { %v89_v21 = vsel %vm6_vm0, %v228_v19, %v227_v18  ;;  %v230_v22 = vld [vmem:[%s412_s0 + $0x8] ss:$16 sm:%s98_s27]   ;;  %s110_s2 = smov 12  ;;  %s268_s3 = smov 80   ;;  %v231_v23 = vld [vmem:[%s412_s0 + $0x7] ss:$16 sm:%s107_s30]  }
   0xc   :  { %66 = vrot.lane.b32.xlu0 %v65_v15, %s267_s24  ;;  %s119_s6 = smov 3  ;;  %v101_v24 = vsel %vm6_vm0, %v230_v22, %v229_v20  ;;  %v232_v25 = vld [vmem:[%s412_s0 + $0x7] ss:$16 sm:%s110_s2]   ;;  %s122_s11 = smov 12  ;;  %vm164_vm14 = vcmask 261312   ;;  %vm176_vm15 = vcmask 195712  }
   0xd   :  { %78 = vrot.lane.b32.xlu1 %v77_v17, %s268_s3  ;;  %v233_v26 = vld [vmem:[%s412_s0 + $0x6] ss:$16 sm:%s119_s6]   ;;  %s269_s12 = smov 72   ;;  %s131_s15 = smov 3  ;;  %v113_v28 = vsel %vm6_vm0, %v232_v25, %v231_v23 }
   0xe   :  { %v234_v27 = vld [vmem:[%s412_s0 + $0x6] ss:$16 sm:%s122_s11]   ;;  %s134_s16 = smov 12  ;;  %v235_v29 = vld [vmem:[%s412_s0 + $0x5] ss:$16 sm:%s131_s15]   ;;  %s143_s19 = smov 3 }
   0xf   :  { %s270_s20 = smov 64   ;;  %v236_v30 = vld [vmem:[%s412_s0 + $0x5] ss:$16 sm:%s134_s16]   ;;  %s146_s23 = smov 12  ;;  %v125_v31 = vsel %vm6_vm0, %v234_v27, %v233_v26  ;;  %v237_v32 = vld [vmem:[%s412_s0 + $0x4] ss:$16 sm:%s143_s19]  }
  0x10   :  { %90 = vrot.lane.b32.xlu0 %v89_v21, %s269_s12  ;;  %s155_s26 = smov 3  ;;  %s158_s27 = smov 12  ;;  %v238_v33 = vld [vmem:[%s412_s0 + $0x4] ss:$16 sm:%s146_s23]   ;;  %v137_v34 = vsel %vm6_vm0, %v236_v30, %v235_v29 }
  0x11   :  { %102 = vrot.lane.b32.xlu1 %v101_v24, %s270_s20  ;;  %s271_s28 = smov 56   ;;  %s167_s2 = smov 3  ;;  %v239_v35 = vld [vmem:[%s412_s0 + $0x3] ss:$16 sm:%s155_s26]   ;;  %v149_v37 = vsel %vm6_vm0, %v238_v33, %v237_v32 }
  0x12   :  { %s170_s5 = smov 12  ;;  %s272_s6 = smov 48   ;;  %v240_v36 = vld [vmem:[%s412_s0 + $0x3] ss:$16 sm:%s158_s27]   ;;  %v241_v38 = vld [vmem:[%s412_s0 + $0x2] ss:$16 sm:%s167_s2]  }
  0x13   :  { %s179_s9 = smov 3  ;;  %v242_v39 = vld [vmem:[%s412_s0 + $0x2] ss:$16 sm:%s170_s5]   ;;  %s182_s14 = smov 12  ;;  %v161_v41 = vsel %vm6_vm0, %v240_v36, %v239_v35 }
  0x14   :  { %114 = vrot.lane.b32.xlu0 %v113_v28, %s271_s28  ;;  %s2_s15 = smov 3  ;;  %s273_s16 = smov 40   ;;  %v243_v42 = vld [vmem:[%s412_s0 + $0x1] ss:$16 sm:%s179_s9]   ;;  %v173_v46 = vsel %vm6_vm0, %v242_v39, %v241_v38 }
  0x15   :  { %126 = vrot.lane.b32.xlu1 %v125_v31, %s272_s6  ;;  %v3_v40 = vld [vmem:[%s412_s0] ss:$16 sm:%s2_s15]   ;;  %s4_s19 = smov 12  ;;  %s274_s24 = smov 32  }
  0x16   :  { %v5_v43 = vld [vmem:[%s412_s0] ss:$16 sm:%s4_s19]   ;;  %v244_v44 = vld [vmem:[%s412_s0 + $0x1] ss:$16 sm:%s182_s14]   ;;  %s275_s0 = smov 24   ;;  %s276_s27 = smov 16  }
  0x17   :  { %v7_v45 = vsel %vm6_vm0, %v5_v43, %v3_v40  ;;  %v185_v47 = vsel %vm6_vm0, %v244_v44, %v243_v42  ;;  %s277_s28 = smov 8   ;;  %vm188_vm0 = vcmask 130112  }
  0x18   :  { %138 = vrot.lane.b32.xlu0 %v137_v34, %s273_s16  ;;  %9 = vst.msk [vmem:[#allocation0] ss:$8 sm:$0xf] %vm8_vm1, %v7_v45  }
  0x19   :  { %150 = vrot.lane.b32.xlu1 %v149_v37, %s274_s24 }
  0x1c   :  { %162 = vrot.lane.b32.xlu0 %v161_v41, %s275_s0 }
  0x1d   :  { %174 = vrot.lane.b32.xlu1 %v173_v46, %s276_s27 }
  0x20   :  { %186 = vrot.lane.b32.xlu0 %v185_v47, %s277_s28 }
  0x76   :  { %v19_v48 = vpop.permute.xlu0 %18  }
  0x77   :  { %21 = vst.msk [vmem:[#allocation0] ss:$8 sm:$0xf] %vm20_vm2, %v19_v48   ;;  %v43_v49 = vpop.permute.xlu1 %42  }
  0x7a   :  { %v31_v50 = vpop.permute.xlu0 %30  }
  0x7b   :  { %33 = vst.msk [vmem:[#allocation0] ss:$8 sm:$0xf] %vm32_vm3, %v31_v50   ;;  %v55_v51 = vpop.permute.xlu1 %54  }
  0x7c   :  { %45 = vst.msk [vmem:[#allocation0] ss:$8 sm:$0xf] %vm44_vm4, %v43_v49  }
  0x7d   :  { %57 = vst.msk [vmem:[#allocation0] ss:$8 sm:$0xf] %vm56_vm5, %v55_v51  }
  0x7e   :  { %v67_v52 = vpop.permute.xlu0 %66  }
  0x7f   :  { %69 = vst.msk [vmem:[#allocation0] ss:$8 sm:$0xf] %vm68_vm6, %v67_v52   ;;  %v79_v53 = vpop.permute.xlu1 %78  }
  0x80   :  { %81 = vst.msk [vmem:[#allocation0] ss:$8 sm:$0xf] %vm80_vm7, %v79_v53  }
  0x82   :  { %v91_v54 = vpop.permute.xlu0 %90  }
  0x83   :  { %93 = vst.msk [vmem:[#allocation0] ss:$8 sm:$0xf] %vm92_vm8, %v91_v54   ;;  %v103_v55 = vpop.permute.xlu1 %102  }
  0x84   :  { %105 = vst.msk [vmem:[#allocation0] ss:$8 sm:$0xf] %vm104_vm9, %v103_v55  }
  0x86   :  { %v115_v56 = vpop.permute.xlu0 %114  }
  0x87   :  { %117 = vst.msk [vmem:[#allocation0] ss:$8 sm:$0xf] %vm116_vm10, %v115_v56   ;;  %v127_v57 = vpop.permute.xlu1 %126  }
  0x88   :  { %129 = vst.msk [vmem:[#allocation0] ss:$8 sm:$0xf] %vm128_vm11, %v127_v57  }
  0x8a   :  { %v139_v58 = vpop.permute.xlu0 %138  }
  0x8b   :  { %141 = vst.msk [vmem:[#allocation0] ss:$8 sm:$0xf] %vm140_vm12, %v139_v58   ;;  %v151_v59 = vpop.permute.xlu1 %150  }
  0x8c   :  { %153 = vst.msk [vmem:[#allocation0] ss:$8 sm:$0xf] %vm152_vm13, %v151_v59  }
  0x8e   :  { %v163_v60 = vpop.permute.xlu0 %162  }
  0x8f   :  { %165 = vst.msk [vmem:[#allocation0] ss:$8 sm:$0xf] %vm164_vm14, %v163_v60   ;;  %v175_v61 = vpop.permute.xlu1 %174  }
  0x90   :  { %177 = vst.msk [vmem:[#allocation0] ss:$8 sm:$0xf] %vm176_vm15, %v175_v61  }
  0x92   :  { %v187_v62 = vpop.permute.xlu0 %186  }
  0x93   :  { %189 = vst.msk [vmem:[#allocation0] ss:$8 sm:$0xf] %vm188_vm0, %v187_v62  }
  0x9a   :  { %v193_v63 = vld [vmem:[#allocation0] sm:$0x1]  ;;  %v197_v0 = vld [vmem:[#allocation0 + $0x8] sm:$0x1]  ;;  %v202_v1 = vld [vmem:[#allocation0 + $0x10] sm:$0x1] }
  0x9b   :  { %195 = vst [vmem:[%s413_s1] sm:$0x1] %v193_v63  ;;  %245 = vst [vmem:[%s413_s1 + $0x1] sm:$0x1] %v197_v0  ;;  %v208_v2 = vld [vmem:[#allocation0 + $0x18] sm:$0x1] }
  0x9c   :  { %246 = vst [vmem:[%s413_s1 + $0x2] sm:$0x1] %v202_v1  ;;  %247 = vst [vmem:[%s413_s1 + $0x3] sm:$0x1] %v208_v2 }

// kernel: decoder_forward.1
= control target key start
LH: loop header
LB: loop body
LE: loop exit
PB: predicated region body
PF: predicated region fallthrough
CT: control target
= control target key end

     0   :  { %s4277_s30 = smov 0   ;;  %s6906_s0 = inlined_call_operand.vmem [shape: f32[2,4,128], index: 0, kind: input, shape index: {}]   ;;  %s6907_s1 = inlined_call_operand.vmem [shape: f32[4,128,512], index: 1, kind: input, shape index: {}]   ;;  %s6908_s2 = inlined_call_operand.vmem [shape: f32[1,512], index: 2, kind: input, shape index: {}]   ;;  %s6909_s3 = inlined_call_operand.vmem [shape: f32[3,512,256], index: 3, kind: input, shape index: {}]   ;;  %s6910_s4 = inlined_call_operand.vmem [shape: f32[1,256], index: 4, kind: input, shape index: {}]   ;;  %s6911_s5 = inlined_call_operand.vmem [shape: f32[1,256], index: 5, kind: input, shape index: {}]   ;;  %s6912_s6 = inlined_call_operand.vmem [shape: f32[3,256,256], index: 6, kind: input, shape index: {}]   ;;  %s6913_s7 = inlined_call_operand.vmem [shape: f32[1,256], index: 7, kind: input, shape index: {}]   ;;  %s6914_s8 = inlined_call_operand.vmem [shape: f32[1,256], index: 8, kind: input, shape index: {}]   ;;  %s6915_s9 = inlined_call_operand.vmem [shape: f32[2,8,256], index: 9, kind: output, shape index: {}]  }
   0x1 LB: > { %s2755_s10 = sadd.s32 4294967295, %s4222_s30   ;;  %p2759_p0 = scmp.ge.s32.totalorder %s4222_s30, 1  ;;  %s4222_s30 = sphi %s4277_s30, %s19_s30  }
   0x2   : > { %p286_p1 = scmp.lt.s32.totalorder %s4222_s30, 3 }
   0x4   : > { %p287_p2 = pnand %p2759_p0, %p286_p1 }
   0x5   : > { %v2765_v0 = vld [vmem:[%s6907_s1 + $0x208] sm:$0xff] (!%p287_p2)  ;;  %v2764_v5 = vld [vmem:[%s6907_s1 + $0x200] sm:$0xff] (!%p287_p2)  ;;  %v4224_v7 = vmov (!%p287_p2), 0.0   ;;  %p4361_p3 = scmp.lt.s32.totalorder (!%p287_p2), %s2755_s10, 1  ;;  %v4225_v48 = vmov (!%p287_p2), 1966171168   ;;  %v343_v50 = vlaneseq (!%p287_p2) }
   0x6   : > { %290 = sbr.rel (%p287_p2) target bundleno = 1249 (0x4e1), region = 56  ;;  %v2769_v1 = vld [vmem:[%s6907_s1 + $0x228] sm:$0xff] (!%p287_p2)  ;;  %v2768_v6 = vld [vmem:[%s6907_s1 + $0x220] sm:$0xff] (!%p287_p2)  ;;  %595 = vmatprep.mubr.f32.mxu1 (!%p287_p2), %v4224_v7  ;;  %737 = vmatprep.mubr.f32.mxu0 (!%p287_p2), %v4224_v7  ;;  %v341_v49 = vunpack.c.l.s4 (!%p287_p2), %v4225_v48  ;;  %vm360_vm0 = vcmask (!%p287_p2), 1040384   ;;  %vm395_vm1 = vcmask (!%p287_p2), 1041408   ;;  %vm1571_vm4 = vcmask (!%p287_p2), 1046528  }
   0x7   : > { %v402_v2 = vld [vmem:[%s6907_s1 + $0x8] sm:$0xff] (!%p287_p2)  ;;  %v3343_v3 = vpack.c.bf16 (!%p287_p2), %v2769_v1, %v2765_v0  ;;  %v3345_v9 = vpack.c.bf16 (!%p287_p2), %v2768_v6, %v2764_v5  ;;  %v401_v10 = vld [vmem:[%s6907_s1] sm:$0xff] (!%p287_p2)  ;;  %v4426_v1 = vshrl.u32 (!%p287_p2), %v343_v50, 7  ;;  %vm4552_vm2 = vmneg (!%p287_p2), %vm395_vm1  ;;  %vm1267_vm3 = vcmp.lt.s32.totalorder (!%p287_p2), %v343_v50, 512 }
   0x8   : > { %v406_v4 = vld [vmem:[%s6907_s1 + $0x28] sm:$0xff] (!%p287_p2)  ;;  %v405_v11 = vld [vmem:[%s6907_s1 + $0x20] sm:$0xff] (!%p287_p2)  ;;  %v342_v0 = vunpack.c.0.s8 (!%p287_p2), %v341_v49  ;;  %1269 = vst.msk [vmem:[#allocation3] ss:$8 sm:$0xf] (!%p287_p2), %vm1267_vm3, %v4224_v7  ;;  %vm2017_vm5 = vcmask (!%p287_p2), 1045504  }
   0x9   : > { %v3407_v8 = vpack.c.bf16 (!%p287_p2), %v406_v4, %v402_v2  ;;  %v2773_v12 = vld [vmem:[%s6907_s1 + $0x248] sm:$0xff] (!%p287_p2)  ;;  %3344 = vmatprep.subr.bf16.mxu1 (!%p287_p2), %v3343_v3  ;;  %v3409_v13 = vpack.c.bf16 (!%p287_p2), %v405_v11, %v401_v10  ;;  %v2772_v19 = vld [vmem:[%s6907_s1 + $0x240] sm:$0xff] (!%p287_p2)  ;;  %v4226_v4 = vmov (!%p287_p2), 1983009808   ;;  %vm2208_vm6 = vcmp.lt.s32.totalorder (!%p287_p2), %v343_v50, 256 }
   0xa   : > { %v2777_v14 = vld [vmem:[%s6907_s1 + $0x268] sm:$0xff] (!%p287_p2)  ;;  %3346 = vmatpush1.bf16.msra.mxu1 (!%p287_p2), %v3345_v9  ;;  %v2776_v20 = vld [vmem:[%s6907_s1 + $0x260] sm:$0xff] (!%p287_p2)  ;;  %v372_v5 = vunpack.c.l.s4 (!%p287_p2), %v4226_v4  ;;  %1272 = vst.msk [vmem:[#allocation3 + $0x21] ss:$8 sm:$0xf] (!%p287_p2), %vm1267_vm3, %v4224_v7 }
   0xb   : > { %v410_v15 = vld [vmem:[%s6907_s1 + $0x48] sm:$0xff] (!%p287_p2)  ;;  %3408 = vmatprep.subr.bf16.mxu0 (!%p287_p2), %v3407_v8  ;;  %v3347_v17 = vpack.c.bf16 (!%p287_p2), %v2777_v14, %v2773_v12  ;;  %v409_v21 = vld [vmem:[%s6907_s1 + $0x40] sm:$0xff] (!%p287_p2)  ;;  %v3349_v22 = vpack.c.bf16 (!%p287_p2), %v2776_v20, %v2772_v19  ;;  %2210 = vst.msk [vmem:[#allocation4] ss:$8 sm:$0x3] (!%p287_p2), %vm2208_vm6, %v4224_v7 }
   0xc   : > { %v414_v16 = vld [vmem:[%s6907_s1 + $0x68] sm:$0xff] (!%p287_p2)  ;;  %3410 = vmatpush1.bf16.msra.mxu0 (!%p287_p2), %v3409_v13  ;;  %v413_v23 = vld [vmem:[%s6907_s1 + $0x60] sm:$0xff] (!%p287_p2)  ;;  %v373_v20 = vunpack.c.0.s8 (!%p287_p2), %v372_v5  ;;  %2213 = vst.msk [vmem:[#allocation4 + $0x11] ss:$8 sm:$0x3] (!%p287_p2), %vm2208_vm6, %v4224_v7 }
   0xd   : > { %v3411_v18 = vpack.c.bf16 %v414_v16, %v410_v15  ;;  %v2781_v24 = vld [vmem:[%s6907_s1 + $0x288] sm:$0xff]  ;;  %3348 = vmatprep.subr.bf16.mxu1 %v3347_v17  ;;  %v3413_v26 = vpack.c.bf16 %v413_v23, %v409_v21  ;;  %v2780_v30 = vld [vmem:[%s6907_s1 + $0x280] sm:$0xff]  ;;  %s6920_s10 = smov (!%p4361_p3, %s2755_s10), 1  ;;  %v345_v17 = vsub.s32 %v342_v0, %v4426_v1 }
   0xe   : > { %v2785_v25 = vld [vmem:[%s6907_s1 + $0x2a8] sm:$0xff]  ;;  %v2784_v32 = vld [vmem:[%s6907_s1 + $0x2a0] sm:$0xff]  ;;  %3350 = vmatpush1.bf16.msra.mxu1 %v3349_v22  ;;  %s2760_s25 = sshll.u32 %s6920_s10, 2  ;;  %s3342_s18 = sshll.u32 %s6920_s10, 4 }
   0xf   : > { %3412 = vmatprep.subr.bf16.mxu0 %v3411_v18  ;;  %v3351_v27 = vpack.c.bf16 %v2785_v25, %v2781_v24  ;;  %v418_v28 = vld [vmem:[%s6907_s1 + $0x88] sm:$0xff]  ;;  %v417_v33 = vld [vmem:[%s6907_s1 + $0x80] sm:$0xff]  ;;  %v3353_v35 = vpack.c.bf16 %v2784_v32, %v2780_v30  ;;  %s324_s20 = scalar_lea.vmem %s6906_s0, %s2760_s25  ;;  %s329_s22 = scalar_lea.vmem %s6915_s9, %s3342_s18 }
  0x10   : > { %v422_v29 = vld [vmem:[%s6907_s1 + $0xa8] sm:$0xff]  ;;  %v421_v34 = vld [vmem:[%s6907_s1 + $0xa0] sm:$0xff]  ;;  %3414 = vmatpush1.bf16.msra.mxu0 %v3413_v26 }
  0x11   : > { %v3415_v31 = vpack.c.bf16 %v422_v29, %v418_v28  ;;  %v2789_v36 = vld [vmem:[%s6907_s1 + $0x2c8] sm:$0xff]  ;;  %3352 = vmatprep.subr.bf16.mxu1 %v3351_v27  ;;  %v3417_v39 = vpack.c.bf16 %v421_v34, %v417_v33  ;;  %v2788_v42 = vld [vmem:[%s6907_s1 + $0x2c0] sm:$0xff] }
  0x12   : > { %v2793_v37 = vld [vmem:[%s6907_s1 + $0x2e8] sm:$0xff]  ;;  %v2792_v43 = vld [vmem:[%s6907_s1 + $0x2e0] sm:$0xff]  ;;  %3354 = vmatpush1.bf16.msra.mxu1 %v3353_v35 }
  0x13   : > { %v426_v38 = vld [vmem:[%s6907_s1 + $0xc8] sm:$0xff]  ;;  %v3355_v40 = vpack.c.bf16 %v2793_v37, %v2789_v36  ;;  %3416 = vmatprep.subr.bf16.mxu0 %v3415_v31  ;;  %v425_v45 = vld [vmem:[%s6907_s1 + $0xc0] sm:$0xff]  ;;  %v3357_v54 = vpack.c.bf16 %v2792_v43, %v2788_v42  ;;  %v376_v36 = vsub.s32 %v373_v20, %v4426_v1  ;;  %v2775_v20 = vld [vmem:[%s6907_s1 + $0x258] sm:$0xff] }
  0x14   : > { %v430_v41 = vld [vmem:[%s6907_s1 + $0xe8] sm:$0xff]  ;;  %v429_v46 = vld [vmem:[%s6907_s1 + $0xe0] sm:$0xff]  ;;  %3418 = vmatpush1.bf16.msra.mxu0 %v3417_v39 }
  0x15   : > { %v3419_v44 = vpack.c.bf16 %v430_v41, %v426_v38  ;;  %v2797_v47 = vld [vmem:[%s6907_s1 + $0x308] sm:$0xff]  ;;  %3356 = vmatprep.subr.bf16.mxu1 %v3355_v40  ;;  %v3421_v55 = vpack.c.bf16 %v429_v46, %v425_v45  ;;  %v2796_v57 = vld [vmem:[%s6907_s1 + $0x300] sm:$0xff] }
  0x16   : > { %v2801_v51 = vld [vmem:[%s6907_s1 + $0x328] sm:$0xff]  ;;  %v2800_v58 = vld [vmem:[%s6907_s1 + $0x320] sm:$0xff]  ;;  %3358 = vmatpush1.bf16.msra.mxu1 %v3357_v54  ;;  %v2771_v54 = vld [vmem:[%s6907_s1 + $0x238] sm:$0xff] }
  0x17   : > { %v434_v52 = vld [vmem:[%s6907_s1 + $0x108] sm:$0xff]  ;;  %v3359_v56 = vpack.c.bf16 %v2801_v51, %v2797_v47  ;;  %v433_v59 = vld [vmem:[%s6907_s1 + $0x100] sm:$0xff]  ;;  %3420 = vmatprep.subr.bf16.mxu0 %v3419_v44  ;;  %v3361_v6 = vpack.c.bf16 %v2800_v58, %v2796_v57 }
  0x18   : > { %v438_v53 = vld [vmem:[%s6907_s1 + $0x128] sm:$0xff]  ;;  %v437_v61 = vld [vmem:[%s6907_s1 + $0x120] sm:$0xff]  ;;  %3422 = vmatpush1.bf16.msra.mxu0 %v3421_v55 }
  0x19   : > { %v3423_v60 = vpack.c.bf16 %v438_v53, %v434_v52  ;;  %v2805_v62 = vld [vmem:[%s6907_s1 + $0x348] sm:$0xff]  ;;  %3360 = vmatprep.subr.bf16.mxu1 %v3359_v56  ;;  %v3425_v8 = vpack.c.bf16 %v437_v61, %v433_v59  ;;  %v2804_v10 = vld [vmem:[%s6907_s1 + $0x340] sm:$0xff]  ;;  %v2767_v53 = vld [vmem:[%s6907_s1 + $0x218] sm:$0xff] }
  0x1a   : > { %v2809_v63 = vld [vmem:[%s6907_s1 + $0x368] sm:$0xff]  ;;  %v2808_v11 = vld [vmem:[%s6907_s1 + $0x360] sm:$0xff]  ;;  %3362 = vmatpush1.bf16.msra.mxu1 %v3361_v6  ;;  %v3375_v0 = vpack.c.bf16 %v2771_v54, %v2767_v53 }
  0x1b   : > { %v442_v2 = vld [vmem:[%s6907_s1 + $0x148] sm:$0xff]  ;;  %v3363_v9 = vpack.c.bf16 %v2809_v63, %v2805_v62  ;;  %v441_v12 = vld [vmem:[%s6907_s1 + $0x140] sm:$0xff]  ;;  %3424 = vmatprep.subr.bf16.mxu0 %v3423_v60  ;;  %v3365_v21 = vpack.c.bf16 %v2808_v11, %v2804_v10 }
  0x1c   : > { %v446_v3 = vld [vmem:[%s6907_s1 + $0x168] sm:$0xff]  ;;  %v445_v14 = vld [vmem:[%s6907_s1 + $0x160] sm:$0xff]  ;;  %3426 = vmatpush1.bf16.msra.mxu0 %v3425_v8 }
  0x1d   : > { %v3427_v13 = vpack.c.bf16 %v446_v3, %v442_v2  ;;  %v2813_v15 = vld [vmem:[%s6907_s1 + $0x388] sm:$0xff]  ;;  %v2812_v22 = vld [vmem:[%s6907_s1 + $0x380] sm:$0xff]  ;;  %3364 = vmatprep.subr.bf16.mxu1 %v3363_v9  ;;  %v3429_v23 = vpack.c.bf16 %v445_v14, %v441_v12 }
  0x1e   : > { %v2817_v16 = vld [vmem:[%s6907_s1 + $0x3a8] sm:$0xff]  ;;  %v2816_v25 = vld [vmem:[%s6907_s1 + $0x3a0] sm:$0xff]  ;;  %3366 = vmatpush1.bf16.msra.mxu1 %v3365_v21  ;;  %v2779_v21 = vld [vmem:[%s6907_s1 + $0x278] sm:$0xff] }
  0x1f   : > { %v450_v18 = vld [vmem:[%s6907_s1 + $0x188] sm:$0xff]  ;;  %v3367_v24 = vpack.c.bf16 %v2817_v16, %v2813_v15  ;;  %v449_v26 = vld [vmem:[%s6907_s1 + $0x180] sm:$0xff]  ;;  %3428 = vmatprep.subr.bf16.mxu0 %v3427_v13  ;;  %v3369_v37 = vpack.c.bf16 %v2816_v25, %v2812_v22 }
  0x20   : > { %v454_v19 = vld [vmem:[%s6907_s1 + $0x1a8] sm:$0xff]  ;;  %v2763_v27 = vld.sshfl [vmem:[%s324_s20] sm:$0x33 pattern:$0x75316420]  ;;  %3430 = vmatpush1.bf16.msra.mxu0 %v3429_v23 }
  0x21   : > { %v3431_v28 = vpack.c.bf16 %v454_v19, %v450_v18  ;;  %v453_v29 = vld [vmem:[%s6907_s1 + $0x1a0] sm:$0xff]  ;;  %v2821_v30 = vld [vmem:[%s6907_s1 + $0x3c8] sm:$0xff]  ;;  %v339_v32 = vcombine.high %v2763_v27, %v2763_v27  ;;  %v346_v33 = vrot.slane %v2763_v27, %v345_v17  ;;  %3368 = vmatprep.subr.bf16.mxu1 %v3367_v24  ;;  %v2770_v18 = vld [vmem:[%s6907_s1 + $0x230] sm:$0xff] }
  0x22   : > { %v2825_v31 = vld [vmem:[%s6907_s1 + $0x3e8] sm:$0xff]  ;;  %v2820_v38 = vld [vmem:[%s6907_s1 + $0x3c0] sm:$0xff]  ;;  %v3433_v42 = vpack.c.bf16 %v453_v29, %v449_v26  ;;  %3370 = vmatpush1.bf16.msra.mxu1 %v3369_v37  ;;  %v3379_v29 = vpack.c.bf16 %v2779_v21, %v2775_v20  ;;  %v2806_v20 = vld [vmem:[%s6907_s1 + $0x350] sm:$0xff] }
  0x23   : > { %v458_v34 = vld [vmem:[%s6907_s1 + $0x1c8] sm:$0xff]  ;;  %v353_v39 = vrot.slane %v339_v32, %v345_v17  ;;  %v354_v40 = vcombine.high %v346_v33, %v346_v33  ;;  %v361_v41 = vsel %vm360_vm0, %v346_v33, 0.0  ;;  %v3371_v43 = vpack.c.bf16 %v2825_v31, %v2821_v30  ;;  %v2824_v44 = vld [vmem:[%s6907_s1 + $0x3e0] sm:$0xff]  ;;  %3432 = vmatprep.subr.bf16.mxu0 %v3431_v28  ;;  %v2766_v17 = vld [vmem:[%s6907_s1 + $0x210] sm:$0xff] }
  0x24   : > { %v462_v35 = vld [vmem:[%s6907_s1 + $0x1e8] sm:$0xff]  ;;  %v457_v45 = vld [vmem:[%s6907_s1 + $0x1c0] sm:$0xff]  ;;  %v369_v47 = vcombine.low %v361_v41, %v361_v41  ;;  %v3373_v59 = vpack.c.bf16 %v2824_v44, %v2820_v38  ;;  %3434 = vmatpush1.bf16.msra.mxu0 %v3433_v42  ;;  %v3377_v26 = vpack.c.bf16 %v2770_v18, %v2766_v17  ;;  %v2774_v30 = vld [vmem:[%s6907_s1 + $0x250] sm:$0xff] }
  0x25   : > { %v461_v46 = vld [vmem:[%s6907_s1 + $0x1e0] sm:$0xff]  ;;  %v3435_v48 = vpack.c.bf16 %v462_v35, %v458_v34  ;;  %v355_v49 = vcombine.high %v353_v39, %v353_v39  ;;  %v362_v51 = vsel %vm360_vm0, %v353_v39, 0.0  ;;  %v363_v52 = vsel %vm360_vm0, %v354_v40, 0.0  ;;  %v2829_v57 = vld [vmem:[%s6907_s1 + $0x408] sm:$0xff]  ;;  %3372 = vmatprep.subr.bf16.mxu1 %v3371_v43  ;;  %v2778_v31 = vld [vmem:[%s6907_s1 + $0x270] sm:$0xff] }
  0x26   : > { %v370_v55 = vcombine.low %v362_v51, %v363_v52  ;;  %v377_v56 = vrot.slane %v369_v47, %v376_v36  ;;  %v2833_v58 = vld [vmem:[%s6907_s1 + $0x428] sm:$0xff]  ;;  %v3437_v60 = vpack.c.bf16 %v461_v46, %v457_v45  ;;  %v2828_v3 = vld [vmem:[%s6907_s1 + $0x400] sm:$0xff]  ;;  %3374 = vmatpush1.bf16.msra.mxu1 %v3373_v59  ;;  %v2783_v33 = vld [vmem:[%s6907_s1 + $0x298] sm:$0xff]  ;;  %v3381_v39 = vpack.c.bf16 %v2778_v31, %v2774_v30 }
  0x27   : > { %v364_v61 = vsel %vm360_vm0, %v355_v49, 0.0  ;;  %3436 = vmatprep.subr.bf16.mxu0 %v3435_v48  ;;  %v3471_v2 = vpack.c.bf16 %v2833_v58, %v2829_v57  ;;  %v2832_v4 = vld [vmem:[%s6907_s1 + $0x420] sm:$0xff]  ;;  %v2837_v8 = vld [vmem:[%s6907_s1 + $0x448] sm:$0xff]  ;;  %3376 = vmatprep.subr.bf16.mxu1 %v3375_v0  ;;  %v2787_v34 = vld [vmem:[%s6907_s1 + $0x2b8] sm:$0xff] }
  0x28   : > { %v384_v62 = vrot.slane %v370_v55, %v376_v36  ;;  %v392_v63 = vrot.slane %v364_v61, %v376_v36  ;;  %v2841_v9 = vld [vmem:[%s6907_s1 + $0x468] sm:$0xff]  ;;  %3438 = vmatpush1.bf16.msra.mxu0 %v3437_v60  ;;  %v3473_v11 = vpack.c.bf16 %v2832_v4, %v2828_v3  ;;  %v2836_v13 = vld [vmem:[%s6907_s1 + $0x440] sm:$0xff]  ;;  %v3383_v42 = vpack.c.bf16 %v2787_v34, %v2783_v33  ;;  %v2782_v43 = vld [vmem:[%s6907_s1 + $0x290] sm:$0xff] }
  0x29   : > { %3472 = vmatprep.subr.bf16.mxu0 %v3471_v2  ;;  %v3475_v12 = vpack.c.bf16 %v2841_v9, %v2837_v8  ;;  %v2840_v14 = vld [vmem:[%s6907_s1 + $0x460] sm:$0xff]  ;;  %v2845_v15 = vld [vmem:[%s6907_s1 + $0x488] sm:$0xff]  ;;  %v2786_v44 = vld [vmem:[%s6907_s1 + $0x2b0] sm:$0xff] }
  0x2a   : > { %v4522_v5 = vcombine.low %v377_v56, %v384_v62  ;;  %v397_v6 = vsel %vm395_vm1, %v392_v63, 0.0  ;;  %v2849_v16 = vld [vmem:[%s6907_s1 + $0x4a8] sm:$0xff]  ;;  %v3477_v22 = vpack.c.bf16 %v2840_v14, %v2836_v13  ;;  %v2844_v24 = vld [vmem:[%s6907_s1 + $0x480] sm:$0xff]  ;;  %v2791_v45 = vld [vmem:[%s6907_s1 + $0x2d8] sm:$0xff]  ;;  %v3385_v52 = vpack.c.bf16 %v2786_v44, %v2782_v43 }
  0x2b   : > { %399 = vst [vmem:[#allocation2 + $0x8] sm:$0x7] %v397_v6  ;;  %v3479_v23 = vpack.c.bf16 %v2849_v16, %v2845_v15  ;;  %v2848_v25 = vld [vmem:[%s6907_s1 + $0x4a0] sm:$0xff]  ;;  %v2853_v27 = vld [vmem:[%s6907_s1 + $0x4c8] sm:$0xff]  ;;  %v2795_v46 = vld [vmem:[%s6907_s1 + $0x2f8] sm:$0xff] }
  0x2c   : > { %v396_v10 = vsel %vm395_vm1, 0.0, %v4522_v5  ;;  %4213 = vmatmul.mubr.msk.f32.vlgmr.msra.gmra.mrb[0].mxu0 %vm4552_vm2, %v4522_v5  ;;  %v2857_v28 = vld [vmem:[%s6907_s1 + $0x4e8] sm:$0xff]  ;;  %v3481_v35 = vpack.c.bf16 %v2848_v25, %v2844_v24  ;;  %v2852_v37 = vld [vmem:[%s6907_s1 + $0x4c0] sm:$0xff]  ;;  %v3387_v55 = vpack.c.bf16 %v2795_v46, %v2791_v45  ;;  %v2790_v56 = vld [vmem:[%s6907_s1 + $0x2d0] sm:$0xff] }
  0x2d   : > { %398 = vst [vmem:[#allocation2] sm:$0xff] %v396_v10  ;;  %3474 = vmatpush1.bf16.msra.mxu0 %v3473_v11  ;;  %945 = vmatprep.mubr.f32.mxu0 %v4224_v7  ;;  %v3483_v36 = vpack.c.bf16 %v2857_v28, %v2853_v27  ;;  %v2856_v38 = vld [vmem:[%s6907_s1 + $0x4e0] sm:$0xff]  ;;  %v2861_v40 = vld [vmem:[%s6907_s1 + $0x508] sm:$0xff]  ;;  %v2794_v57 = vld [vmem:[%s6907_s1 + $0x2f0] sm:$0xff] }
  0x2e   : > { %3476 = vmatprep.subr.bf16.mxu0 %v3475_v12  ;;  %v2865_v41 = vld [vmem:[%s6907_s1 + $0x528] sm:$0xff]  ;;  %v3485_v47 = vpack.c.bf16 %v2856_v38, %v2852_v37  ;;  %v2860_v49 = vld [vmem:[%s6907_s1 + $0x500] sm:$0xff]  ;;  %v2799_v58 = vld [vmem:[%s6907_s1 + $0x318] sm:$0xff]  ;;  %v3389_v0 = vpack.c.bf16 %v2794_v57, %v2790_v56 }
  0x2f   : > { %v3487_v48 = vpack.c.bf16 %v2865_v41, %v2861_v40  ;;  %v2864_v51 = vld [vmem:[%s6907_s1 + $0x520] sm:$0xff]  ;;  %v2869_v53 = vld [vmem:[%s6907_s1 + $0x548] sm:$0xff]  ;;  %v2803_v59 = vld [vmem:[%s6907_s1 + $0x338] sm:$0xff] }
  0x30   : > { %v2873_v54 = vld [vmem:[%s6907_s1 + $0x568] sm:$0xff]  ;;  %v3489_v60 = vpack.c.bf16 %v2864_v51, %v2860_v49  ;;  %v2868_v62 = vld [vmem:[%s6907_s1 + $0x540] sm:$0xff]  ;;  %v3391_v4 = vpack.c.bf16 %v2803_v59, %v2799_v58  ;;  %v2798_v6 = vld [vmem:[%s6907_s1 + $0x310] sm:$0xff] }
  0x31   : > { %3478 = vmatpush1.bf16.msra.mxu0 %v3477_v22  ;;  %v3491_v61 = vpack.c.bf16 %v2873_v54, %v2869_v53  ;;  %v2872_v63 = vld [vmem:[%s6907_s1 + $0x560] sm:$0xff]  ;;  %v2877_v2 = vld [vmem:[%s6907_s1 + $0x588] sm:$0xff]  ;;  %v2802_v8 = vld [vmem:[%s6907_s1 + $0x330] sm:$0xff] }
  0x32   : > { %3480 = vmatprep.subr.bf16.mxu0 %v3479_v23  ;;  %v2881_v3 = vld [vmem:[%s6907_s1 + $0x5a8] sm:$0xff]  ;;  %v2807_v9 = vld [vmem:[%s6907_s1 + $0x358] sm:$0xff]  ;;  %v3493_v11 = vpack.c.bf16 %v2872_v63, %v2868_v62  ;;  %v2876_v13 = vld [vmem:[%s6907_s1 + $0x580] sm:$0xff]  ;;  %v3393_v15 = vpack.c.bf16 %v2802_v8, %v2798_v6 }
  0x33   : > { %v2811_v10 = vld [vmem:[%s6907_s1 + $0x378] sm:$0xff]  ;;  %v3495_v12 = vpack.c.bf16 %v2881_v3, %v2877_v2  ;;  %v2880_v14 = vld [vmem:[%s6907_s1 + $0x5a0] sm:$0xff]  ;;  %v2885_v16 = vld [vmem:[%s6907_s1 + $0x5c8] sm:$0xff] }
  0x34   : > { %v4584_v32 = vld [vmem:[#allocation2 + $0x1] sm:$0xff]  ;;  %v2889_v17 = vld [vmem:[%s6907_s1 + $0x5e8] sm:$0xff]  ;;  %v3395_v18 = vpack.c.bf16 %v2811_v10, %v2807_v9  ;;  %v3497_v24 = vpack.c.bf16 %v2880_v14, %v2876_v13  ;;  %v2888_v27 = vld [vmem:[%s6907_s1 + $0x5e0] sm:$0xff] }
  0x35   : > { %596 = vmatmul.mubr.f32.vlgmr.msra.gmra.mrb[0].mxu1 %v4584_v32  ;;  %3482 = vmatpush1.bf16.msra.mxu0 %v3481_v35  ;;  %v2810_v21 = vld [vmem:[%s6907_s1 + $0x370] sm:$0xff]  ;;  %v2815_v22 = vld [vmem:[%s6907_s1 + $0x398] sm:$0xff]  ;;  %v3499_v25 = vpack.c.bf16 %v2889_v17, %v2885_v16  ;;  %v2897_v30 = vld [vmem:[%s6907_s1 + $0x628] sm:$0xff] }
  0x36   : > { %3378 = vmatpush1.bf16.msra.mxu1 %v3377_v26  ;;  %666 = vmatprep.mubr.f32.mxu1 %v4224_v7  ;;  %v2819_v23 = vld [vmem:[%s6907_s1 + $0x3b8] sm:$0xff]  ;;  %v2884_v26 = vld [vmem:[%s6907_s1 + $0x5c0] sm:$0xff]  ;;  %v3397_v28 = vpack.c.bf16 %v2810_v21, %v2806_v20  ;;  %v2814_v33 = vld [vmem:[%s6907_s1 + $0x390] sm:$0xff] }
  0x37   : > { %3380 = vmatprep.subr.bf16.mxu1 %v3379_v29  ;;  %3484 = vmatprep.subr.bf16.mxu0 %v3483_v36  ;;  %v2893_v29 = vld [vmem:[%s6907_s1 + $0x608] sm:$0xff]  ;;  %v3399_v31 = vpack.c.bf16 %v2819_v23, %v2815_v22  ;;  %v2818_v34 = vld [vmem:[%s6907_s1 + $0x3b0] sm:$0xff]  ;;  %v2823_v35 = vld [vmem:[%s6907_s1 + $0x3d8] sm:$0xff]  ;;  %v3501_v37 = vpack.c.bf16 %v2888_v27, %v2884_v26 }
  0x38   : > { %v2827_v36 = vld [vmem:[%s6907_s1 + $0x3f8] sm:$0xff]  ;;  %v3535_v38 = vpack.c.bf16 %v2897_v30, %v2893_v29  ;;  %v2896_v40 = vld [vmem:[%s6907_s1 + $0x620] sm:$0xff]  ;;  %v3401_v41 = vpack.c.bf16 %v2818_v34, %v2814_v33  ;;  %v2905_v43 = vld [vmem:[%s6907_s1 + $0x668] sm:$0xff] }
  0x39   : > { %3486 = vmatpush1.bf16.msra.mxu0 %v3485_v47  ;;  %v3403_v44 = vpack.c.bf16 %v2827_v36, %v2823_v35  ;;  %v2822_v45 = vld [vmem:[%s6907_s1 + $0x3d0] sm:$0xff]  ;;  %v404_v47 = vld [vmem:[%s6907_s1 + $0x18] sm:$0xff]  ;;  %v2900_v53 = vld [vmem:[%s6907_s1 + $0x640] sm:$0xff] }
  0x3a   : > { %3382 = vmatpush1.bf16.msra.mxu1 %v3381_v39  ;;  %3488 = vmatprep.subr.bf16.mxu0 %v3487_v48  ;;  %v2892_v39 = vld [vmem:[%s6907_s1 + $0x600] sm:$0xff]  ;;  %v2826_v46 = vld [vmem:[%s6907_s1 + $0x3f0] sm:$0xff]  ;;  %v408_v48 = vld [vmem:[%s6907_s1 + $0x38] sm:$0xff] }
  0x3b   : > { %3384 = vmatprep.subr.bf16.mxu1 %v3383_v42  ;;  %v2901_v42 = vld [vmem:[%s6907_s1 + $0x648] sm:$0xff]  ;;  %v4738_v49 = vld [vmem:[#allocation2 + $0x2] sm:$0xff]  ;;  %v3537_v51 = vpack.c.bf16 %v2896_v40, %v2892_v39  ;;  %v2904_v54 = vld [vmem:[%s6907_s1 + $0x660] sm:$0xff]  ;;  %v3439_v58 = vpack.c.bf16 %v408_v48, %v404_v47 }
  0x3c   : > { %v2909_v56 = vld [vmem:[%s6907_s1 + $0x688] sm:$0xff]  ;;  %v403_v59 = vld [vmem:[%s6907_s1 + $0x10] sm:$0xff]  ;;  %v416_v62 = vld [vmem:[%s6907_s1 + $0x78] sm:$0xff]  ;;  %v3541_v63 = vpack.c.bf16 %v2904_v54, %v2900_v53 }
  0x3d   : > { %3490 = vmatpush1.bf16.msra.mxu0 %v3489_v60  ;;  %v2913_v57 = vld [vmem:[%s6907_s1 + $0x6a8] sm:$0xff]  ;;  %v407_v60 = vld [vmem:[%s6907_s1 + $0x30] sm:$0xff]  ;;  %v2908_v2 = vld [vmem:[%s6907_s1 + $0x680] sm:$0xff] }
  0x3e   : > { %3386 = vmatpush1.bf16.msra.mxu1 %v3385_v52  ;;  %3492 = vmatprep.subr.bf16.mxu0 %v3491_v61  ;;  %v3539_v52 = vpack.c.bf16 %v2905_v43, %v2901_v42  ;;  %v412_v61 = vld [vmem:[%s6907_s1 + $0x58] sm:$0xff]  ;;  %v2912_v3 = vld [vmem:[%s6907_s1 + $0x6a0] sm:$0xff]  ;;  %v2917_v6 = vld [vmem:[%s6907_s1 + $0x6c8] sm:$0xff] }
  0x3f   : > { %3388 = vmatprep.subr.bf16.mxu1 %v3387_v55  ;;  %v3405_v55 = vpack.c.bf16 %v2826_v46, %v2822_v45  ;;  %v2921_v8 = vld [vmem:[%s6907_s1 + $0x6e8] sm:$0xff]  ;;  %v3443_v9 = vpack.c.bf16 %v416_v62, %v412_v61  ;;  %v411_v10 = vld [vmem:[%s6907_s1 + $0x50] sm:$0xff]  ;;  %v424_v13 = vld [vmem:[%s6907_s1 + $0xb8] sm:$0xff]  ;;  %v3545_v14 = vpack.c.bf16 %v2912_v3, %v2908_v2 }
  0x40   : > { %v2916_v16 = vld [vmem:[%s6907_s1 + $0x6c0] sm:$0xff]  ;;  %v2925_v20 = vld [vmem:[%s6907_s1 + $0x708] sm:$0xff]  ;;  %v419_v22 = vld [vmem:[%s6907_s1 + $0x90] sm:$0xff] }
  0x41   : > { %3494 = vmatpush1.bf16.msra.mxu0 %v3493_v11  ;;  %v415_v11 = vld [vmem:[%s6907_s1 + $0x70] sm:$0xff]  ;;  %v2920_v17 = vld [vmem:[%s6907_s1 + $0x6e0] sm:$0xff]  ;;  %v2937_v33 = vld [vmem:[%s6907_s1 + $0x768] sm:$0xff] }
  0x42   : > { %3390 = vmatpush1.bf16.msra.mxu1 %v3389_v0  ;;  %3496 = vmatprep.subr.bf16.mxu0 %v3495_v12  ;;  %v3543_v0 = vpack.c.bf16 %v2913_v57, %v2909_v56  ;;  %v420_v12 = vld [vmem:[%s6907_s1 + $0x98] sm:$0xff]  ;;  %v423_v23 = vld [vmem:[%s6907_s1 + $0xb0] sm:$0xff]  ;;  %v3549_v26 = vpack.c.bf16 %v2920_v17, %v2916_v16  ;;  %v2928_v29 = vld [vmem:[%s6907_s1 + $0x720] sm:$0xff] }
  0x43   : > { %3392 = vmatprep.subr.bf16.mxu1 %v3391_v4  ;;  %v3441_v4 = vpack.c.bf16 %v407_v60, %v403_v59  ;;  %v3447_v21 = vpack.c.bf16 %v424_v13, %v420_v12  ;;  %v3449_v30 = vpack.c.bf16 %v423_v23, %v419_v22  ;;  %v427_v35 = vld [vmem:[%s6907_s1 + $0xd0] sm:$0xff]  ;;  %v2936_v42 = vld [vmem:[%s6907_s1 + $0x760] sm:$0xff]  ;;  %v2945_v45 = vld [vmem:[%s6907_s1 + $0x7a8] sm:$0xff] }
  0x44   : > { %v431_v36 = vld [vmem:[%s6907_s1 + $0xf0] sm:$0xff]  ;;  %v2944_v56 = vld [vmem:[%s6907_s1 + $0x7a0] sm:$0xff]  ;;  %v2953_v59 = vld [vmem:[%s6907_s1 + $0x7e8] sm:$0xff] }
  0x45   : > { %3498 = vmatpush1.bf16.msra.mxu0 %v3497_v24  ;;  %v428_v24 = vld [vmem:[%s6907_s1 + $0xd8] sm:$0xff]  ;;  %v3453_v43 = vpack.c.bf16 %v431_v36, %v427_v35  ;;  %v435_v47 = vld [vmem:[%s6907_s1 + $0x110] sm:$0xff]  ;;  %v3272_v50 = vld [vmem:[%s6912_s6 + $0x3e0] sm:$0xff] }
  0x46   : > { %3394 = vmatpush1.bf16.msra.mxu1 %v3393_v15  ;;  %3500 = vmatprep.subr.bf16.mxu0 %v3499_v25  ;;  %v3547_v15 = vpack.c.bf16 %v2921_v8, %v2917_v6  ;;  %v432_v25 = vld [vmem:[%s6907_s1 + $0xf8] sm:$0xff]  ;;  %v439_v48 = vld [vmem:[%s6907_s1 + $0x130] sm:$0xff]  ;;  %v2952_v6 = vld [vmem:[%s6907_s1 + $0x7e0] sm:$0xff] }
  0x47   : > { %3396 = vmatprep.subr.bf16.mxu1 %v3395_v18  ;;  %v3445_v18 = vpack.c.bf16 %v415_v11, %v411_v10  ;;  %v3451_v34 = vpack.c.bf16 %v432_v25, %v428_v24  ;;  %v3457_v57 = vpack.c.bf16 %v439_v48, %v435_v47  ;;  %v443_v61 = vld [vmem:[%s6907_s1 + $0x150] sm:$0xff]  ;;  %v460_v12 = vld [vmem:[%s6907_s1 + $0x1d8] sm:$0xff] }
  0x48   : > { %v447_v62 = vld [vmem:[%s6907_s1 + $0x170] sm:$0xff]  ;;  %v464_v13 = vld [vmem:[%s6907_s1 + $0x1f8] sm:$0xff] }
  0x49   : > { %3502 = vmatpush1.bf16.msra.mxu0 %v3501_v37  ;;  %v436_v37 = vld [vmem:[%s6907_s1 + $0x118] sm:$0xff]  ;;  %v3461_v8 = vpack.c.bf16 %v447_v62, %v443_v61  ;;  %v451_v10 = vld [vmem:[%s6907_s1 + $0x190] sm:$0xff]  ;;  %v3467_v16 = vpack.c.bf16 %v464_v13, %v460_v12 }
  0x4a   : > { %3398 = vmatpush1.bf16.msra.mxu1 %v3397_v28  ;;  %3536 = vmatprep.subr.bf16.mxu0 %v3535_v38  ;;  %v2924_v28 = vld [vmem:[%s6907_s1 + $0x700] sm:$0xff]  ;;  %v440_v38 = vld [vmem:[%s6907_s1 + $0x138] sm:$0xff]  ;;  %v455_v11 = vld [vmem:[%s6907_s1 + $0x1b0] sm:$0xff] }
  0x4b   : > { %3400 = vmatprep.subr.bf16.mxu1 %v3399_v31  ;;  %v2933_v31 = vld [vmem:[%s6907_s1 + $0x748] sm:$0xff]  ;;  %v3553_v39 = vpack.c.bf16 %v2928_v29, %v2924_v28  ;;  %v3455_v46 = vpack.c.bf16 %v440_v38, %v436_v37  ;;  %v459_v17 = vld [vmem:[%s6907_s1 + $0x1d0] sm:$0xff] }
  0x4c   : > { %946 = vmatmul.mubr.f32.vlgmr.msra.gmra.mrb[0].mxu0 %v4738_v49  ;;  %v3555_v40 = vpack.c.bf16 %v2937_v33, %v2933_v31  ;;  %v2830_v24 = vld [vmem:[%s6907_s1 + $0x410] sm:$0xff]  ;;  %v2847_v33 = vld [vmem:[%s6907_s1 + $0x498] sm:$0xff] }
  0x4d   : > { %3538 = vmatpush1.bf16.msra.mxu0 %v3537_v51  ;;  %1157 = vmatprep.mubr.f32.mxu0 %v4224_v7  ;;  %v444_v51 = vld [vmem:[%s6907_s1 + $0x158] sm:$0xff]  ;;  %v2834_v25 = vld [vmem:[%s6907_s1 + $0x430] sm:$0xff] }
  0x4e   : > { %3402 = vmatpush1.bf16.msra.mxu1 %v3401_v41  ;;  %3540 = vmatprep.subr.bf16.mxu0 %v3539_v52  ;;  %v2932_v41 = vld [vmem:[%s6907_s1 + $0x740] sm:$0xff]  ;;  %v448_v52 = vld [vmem:[%s6907_s1 + $0x178] sm:$0xff]  ;;  %v3505_v28 = vpack.c.bf16 %v2834_v25, %v2830_v24  ;;  %v2842_v31 = vld [vmem:[%s6907_s1 + $0x470] sm:$0xff] }
  0x4f   : > { %3404 = vmatprep.subr.bf16.mxu1 %v3403_v44  ;;  %v2941_v44 = vld [vmem:[%s6907_s1 + $0x788] sm:$0xff]  ;;  %v3557_v53 = vpack.c.bf16 %v2936_v42, %v2932_v41  ;;  %v3459_v60 = vpack.c.bf16 %v448_v52, %v444_v51  ;;  %v2846_v37 = vld [vmem:[%s6907_s1 + $0x490] sm:$0xff]  ;;  %v2871_v51 = vld [vmem:[%s6907_s1 + $0x558] sm:$0xff] }
  0x50   : > { %v3559_v54 = vpack.c.bf16 %v2945_v45, %v2941_v44  ;;  %v2850_v38 = vld [vmem:[%s6907_s1 + $0x4b0] sm:$0xff]  ;;  %v2867_v44 = vld [vmem:[%s6907_s1 + $0x538] sm:$0xff] }
  0x51   : > { %3542 = vmatpush1.bf16.msra.mxu0 %v3541_v63  ;;  %v452_v63 = vld [vmem:[%s6907_s1 + $0x198] sm:$0xff]  ;;  %v3513_v19 = vpack.c.bf16 %v2850_v38, %v2846_v37  ;;  %v2854_v41 = vld [vmem:[%s6907_s1 + $0x4d0] sm:$0xff] }
  0x52   : > { %3406 = vmatpush1.bf16.msra.mxu1 %v3405_v55  ;;  %3544 = vmatprep.subr.bf16.mxu0 %v3543_v0  ;;  %v2940_v55 = vld [vmem:[%s6907_s1 + $0x780] sm:$0xff]  ;;  %v456_v0 = vld [vmem:[%s6907_s1 + $0x1b8] sm:$0xff]  ;;  %v2858_v42 = vld [vmem:[%s6907_s1 + $0x4f0] sm:$0xff] }
  0x53   : > { %3440 = vmatprep.subr.bf16.mxu1 %v3439_v58  ;;  %v2949_v58 = vld [vmem:[%s6907_s1 + $0x7c8] sm:$0xff]  ;;  %v3561_v2 = vpack.c.bf16 %v2944_v56, %v2940_v55  ;;  %v3517_v45 = vpack.c.bf16 %v2858_v42, %v2854_v41  ;;  %v2862_v47 = vld [vmem:[%s6907_s1 + $0x510] sm:$0xff]  ;;  %v2875_v52 = vld [vmem:[%s6907_s1 + $0x578] sm:$0xff] }
  0x54   : > { %v3563_v3 = vpack.c.bf16 %v2953_v59, %v2949_v58  ;;  %v2866_v48 = vld [vmem:[%s6907_s1 + $0x530] sm:$0xff]  ;;  %v2883_v58 = vld [vmem:[%s6907_s1 + $0x5b8] sm:$0xff] }
  0x55   : > { %667 = vmatmul.mubr.f32.vlgmr.msra.gmra.mrb[2].mxu1 %v4584_v32  ;;  %v2929_v32 = vld [vmem:[%s6907_s1 + $0x728] sm:$0xff]  ;;  %3546 = vmatpush1.bf16.msra.mxu0 %v3545_v14  ;;  %v2870_v55 = vld [vmem:[%s6907_s1 + $0x550] sm:$0xff] }
  0x56   : > { %3442 = vmatpush1.bf16.msra.mxu1 %v3441_v4  ;;  %808 = vmatprep.mubr.f32.mxu1 %v4224_v7  ;;  %v3551_v27 = vpack.c.bf16 %v2929_v32, %v2925_v20  ;;  %v2948_v4 = vld [vmem:[%s6907_s1 + $0x7c0] sm:$0xff]  ;;  %v2831_v20 = vld [vmem:[%s6907_s1 + $0x418] sm:$0xff]  ;;  %v2874_v56 = vld [vmem:[%s6907_s1 + $0x570] sm:$0xff] }
  0x57   : > { %3444 = vmatprep.subr.bf16.mxu1 %v3443_v9  ;;  %3548 = vmatprep.subr.bf16.mxu0 %v3547_v15  ;;  %v3463_v9 = vpack.c.bf16 %v456_v0, %v452_v63  ;;  %v3565_v14 = vpack.c.bf16 %v2952_v6, %v2948_v4  ;;  %v3465_v15 = vpack.c.bf16 %v455_v11, %v451_v10  ;;  %v2835_v32 = vld [vmem:[%s6907_s1 + $0x438] sm:$0xff]  ;;  %v2878_v61 = vld [vmem:[%s6907_s1 + $0x590] sm:$0xff] }
  0x58   : > { %v3503_v23 = vpack.c.bf16 %v2835_v32, %v2831_v20  ;;  %v3525_v59 = vpack.c.bf16 %v2874_v56, %v2870_v55  ;;  %v2882_v62 = vld [vmem:[%s6907_s1 + $0x5b0] sm:$0xff]  ;;  %v2887_v63 = vld [vmem:[%s6907_s1 + $0x5d8] sm:$0xff] }
  0x59   : > { %3550 = vmatpush1.bf16.msra.mxu0 %v3549_v26  ;;  %v2839_v26 = vld [vmem:[%s6907_s1 + $0x458] sm:$0xff]  ;;  %v2886_v4 = vld [vmem:[%s6907_s1 + $0x5d0] sm:$0xff] }
  0x5a   : > { %3446 = vmatpush1.bf16.msra.mxu1 %v3445_v18  ;;  %3552 = vmatprep.subr.bf16.mxu0 %v3551_v27  ;;  %v463_v18 = vld [vmem:[%s6907_s1 + $0x1f0] sm:$0xff]  ;;  %v2843_v27 = vld [vmem:[%s6907_s1 + $0x478] sm:$0xff] }
  0x5b   : > { %3448 = vmatprep.subr.bf16.mxu1 %v3447_v21  ;;  %v4918_v21 = vld [vmem:[#allocation2 + $0x3] sm:$0xff]  ;;  %v3469_v22 = vpack.c.bf16 %v463_v18, %v459_v17  ;;  %v3507_v29 = vpack.c.bf16 %v2843_v27, %v2839_v26 }
  0x5c   : > { %v2891_v0 = vld [vmem:[%s6907_s1 + $0x5f8] sm:$0xff]  ;;  %v2890_v6 = vld [vmem:[%s6907_s1 + $0x5f0] sm:$0xff] }
  0x5d   : > { %3554 = vmatpush1.bf16.msra.mxu0 %v3553_v39  ;;  %v2855_v39 = vld [vmem:[%s6907_s1 + $0x4d8] sm:$0xff]  ;;  %v3533_v10 = vpack.c.bf16 %v2890_v6, %v2886_v4  ;;  %v2894_v12 = vld [vmem:[%s6907_s1 + $0x610] sm:$0xff]  ;;  %v2960_v4 = vld [vmem:[%s6909_s3 + $0x420] sm:$0xff] }
  0x5e   : > { %3450 = vmatpush1.bf16.msra.mxu1 %v3449_v30  ;;  %3556 = vmatprep.subr.bf16.mxu0 %v3555_v40  ;;  %v2838_v30 = vld [vmem:[%s6907_s1 + $0x450] sm:$0xff]  ;;  %v2911_v32 = vld [vmem:[%s6907_s1 + $0x698] sm:$0xff] }
  0x5f   : > { %3452 = vmatprep.subr.bf16.mxu1 %v3451_v34  ;;  %v2851_v34 = vld [vmem:[%s6907_s1 + $0x4b8] sm:$0xff]  ;;  %v3509_v35 = vpack.c.bf16 %v2842_v31, %v2838_v30  ;;  %v2898_v13 = vld [vmem:[%s6907_s1 + $0x630] sm:$0xff] }
  0x60   : > { %v3511_v36 = vpack.c.bf16 %v2851_v34, %v2847_v33  ;;  %v2902_v18 = vld [vmem:[%s6907_s1 + $0x650] sm:$0xff]  ;;  %v2919_v27 = vld [vmem:[%s6907_s1 + $0x6d8] sm:$0xff] }
  0x61   : > { %3558 = vmatpush1.bf16.msra.mxu0 %v3557_v53  ;;  %v3521_v53 = vpack.c.bf16 %v2866_v48, %v2862_v47  ;;  %v2906_v20 = vld [vmem:[%s6907_s1 + $0x670] sm:$0xff]  ;;  %v2927_v33 = vld [vmem:[%s6907_s1 + $0x718] sm:$0xff] }
  0x62   : > { %3454 = vmatpush1.bf16.msra.mxu1 %v3453_v43  ;;  %3560 = vmatprep.subr.bf16.mxu0 %v3559_v54  ;;  %v2863_v43 = vld [vmem:[%s6907_s1 + $0x518] sm:$0xff]  ;;  %v3523_v54 = vpack.c.bf16 %v2875_v52, %v2871_v51  ;;  %v2910_v25 = vld [vmem:[%s6907_s1 + $0x690] sm:$0xff] }
  0x63   : > { %3456 = vmatprep.subr.bf16.mxu1 %v3455_v46  ;;  %v3519_v46 = vpack.c.bf16 %v2867_v44, %v2863_v43  ;;  %v2914_v26 = vld [vmem:[%s6907_s1 + $0x6b0] sm:$0xff]  ;;  %v2931_v34 = vld [vmem:[%s6907_s1 + $0x738] sm:$0xff] }
  0x64   : > { %v2918_v30 = vld [vmem:[%s6907_s1 + $0x6d0] sm:$0xff]  ;;  %v2943_v43 = vld [vmem:[%s6907_s1 + $0x798] sm:$0xff] }
  0x65   : > { %3562 = vmatpush1.bf16.msra.mxu0 %v3561_v2  ;;  %v3529_v2 = vpack.c.bf16 %v2882_v62, %v2878_v61  ;;  %v2922_v31 = vld [vmem:[%s6907_s1 + $0x6f0] sm:$0xff]  ;;  %v2947_v44 = vld [vmem:[%s6907_s1 + $0x7b8] sm:$0xff]  ;;  %v2956_v61 = vld [vmem:[%s6909_s3 + $0x400] sm:$0xff] }
  0x66   : > { %3458 = vmatpush1.bf16.msra.mxu1 %v3457_v57  ;;  %3564 = vmatprep.subr.bf16.mxu0 %v3563_v3  ;;  %v2879_v57 = vld [vmem:[%s6907_s1 + $0x598] sm:$0xff]  ;;  %v3531_v3 = vpack.c.bf16 %v2891_v0, %v2887_v63  ;;  %v2926_v37 = vld [vmem:[%s6907_s1 + $0x710] sm:$0xff]  ;;  %v2961_v63 = vld [vmem:[%s6909_s3 + $0x428] sm:$0xff] }
  0x67   : > { %3460 = vmatprep.subr.bf16.mxu1 %v3459_v60  ;;  %v3527_v60 = vpack.c.bf16 %v2883_v58, %v2879_v57  ;;  %v2930_v38 = vld [vmem:[%s6907_s1 + $0x730] sm:$0xff]  ;;  %v2951_v51 = vld [vmem:[%s6907_s1 + $0x7d8] sm:$0xff]  ;;  %v2957_v57 = vld [vmem:[%s6909_s3 + $0x408] sm:$0xff] }
  0x68   : > { %v2934_v41 = vld [vmem:[%s6907_s1 + $0x750] sm:$0xff]  ;;  %v2955_v52 = vld [vmem:[%s6907_s1 + $0x7f8] sm:$0xff] }
  0x69   : > { %3566 = vmatpush1.bf16.msra.mxu0 %v3565_v14  ;;  %v2903_v14 = vld [vmem:[%s6907_s1 + $0x658] sm:$0xff]  ;;  %v2938_v42 = vld [vmem:[%s6907_s1 + $0x770] sm:$0xff] }
  0x6a   : > { %3462 = vmatpush1.bf16.msra.mxu1 %v3461_v8  ;;  %v2895_v8 = vld [vmem:[%s6907_s1 + $0x618] sm:$0xff]  ;;  %v2942_v47 = vld [vmem:[%s6907_s1 + $0x790] sm:$0xff] }
  0x6b   : > { %3464 = vmatprep.subr.bf16.mxu1 %v3463_v9  ;;  %v2899_v9 = vld [vmem:[%s6907_s1 + $0x638] sm:$0xff]  ;;  %v2946_v48 = vld [vmem:[%s6907_s1 + $0x7b0] sm:$0xff] }
  0x6c   : > { %1158 = vmatmul.mubr.f32.vlgmr.msra.gmra.mrb[0].mxu0 %v4918_v21  ;;  %v3567_v11 = vpack.c.bf16 %v2899_v9, %v2895_v8  ;;  %v2950_v55 = vld [vmem:[%s6907_s1 + $0x7d0] sm:$0xff]  ;;  %v2959_v58 = vld [vmem:[%s6909_s3 + $0x418] sm:$0xff]  ;;  %v2965_v8 = vld [vmem:[%s6909_s3 + $0x448] sm:$0xff] }
  0x6d   : > { %v2954_v56 = vld [vmem:[%s6907_s1 + $0x7f0] sm:$0xff]  ;;  %v2963_v0 = vld [vmem:[%s6909_s3 + $0x438] sm:$0xff] }
  0x6e   : > { %3466 = vmatpush1.bf16.msra.mxu1 %v3465_v15  ;;  %v2907_v15 = vld [vmem:[%s6907_s1 + $0x678] sm:$0xff]  ;;  %v2958_v62 = vld [vmem:[%s6909_s3 + $0x410] sm:$0xff] }
  0x6f   : > { %3468 = vmatprep.subr.bf16.mxu1 %v3467_v16  ;;  %v3569_v16 = vpack.c.bf16 %v2898_v13, %v2894_v12  ;;  %v3571_v17 = vpack.c.bf16 %v2907_v15, %v2903_v14  ;;  %v2962_v6 = vld [vmem:[%s6909_s3 + $0x430] sm:$0xff]  ;;  %v2967_v9 = vld [vmem:[%s6909_s3 + $0x458] sm:$0xff]  ;;  %v2964_v12 = vld [vmem:[%s6909_s3 + $0x440] sm:$0xff] }
  0x70   : > { %v2966_v13 = vld [vmem:[%s6909_s3 + $0x450] sm:$0xff]  ;;  %v2969_v14 = vld [vmem:[%s6909_s3 + $0x468] sm:$0xff] }
  0x71   : > { %v3609_v15 = vpack.c.bf16 %v2966_v13, %v2964_v12  ;;  %v3026_v13 = vld [vmem:[%s6909_s3 + $0x630] sm:$0xff] }
  0x72   : > { %3470 = vmatpush1.bf16.msra.mxu1 %v3469_v22  ;;  %v2915_v22 = vld [vmem:[%s6907_s1 + $0x6b8] sm:$0xff] }
  0x73   : > { %3504 = vmatprep.subr.bf16.mxu1 %v3503_v23  ;;  %v3573_v23 = vpack.c.bf16 %v2906_v20, %v2902_v18  ;;  %v3575_v24 = vpack.c.bf16 %v2915_v22, %v2911_v32  ;;  %v2970_v18 = vld [vmem:[%s6909_s3 + $0x470] sm:$0xff]  ;;  %v2973_v20 = vld [vmem:[%s6909_s3 + $0x488] sm:$0xff]  ;;  %v2975_v32 = vld [vmem:[%s6909_s3 + $0x498] sm:$0xff] }
  0x75   : > { %4215 = vmatmul.mubr.msk.f32.vlgmr.msra.gmra.mrb[2].mxu1 %vm4552_vm2, %v4522_v5  ;;  %v2859_v5 = vld [vmem:[%s6907_s1 + $0x4f8] sm:$0xff] }
  0x76   : > { %3506 = vmatpush1.bf16.msra.mxu1 %v3505_v28  ;;  %1016 = vmatprep.mubr.f32.mxu1 %v4224_v7  ;;  %v3515_v40 = vpack.c.bf16 %v2859_v5, %v2855_v39  ;;  %v3577_v28 = vpack.c.bf16 %v2914_v26, %v2910_v25  ;;  %v2935_v39 = vld [vmem:[%s6907_s1 + $0x758] sm:$0xff]  ;;  %v2974_v25 = vld [vmem:[%s6909_s3 + $0x490] sm:$0xff]  ;;  %v2977_v26 = vld [vmem:[%s6909_s3 + $0x4a8] sm:$0xff] }
  0x77   : > { %3508 = vmatprep.subr.bf16.mxu1 %v3507_v29  ;;  %v2939_v5 = vld [vmem:[%s6907_s1 + $0x778] sm:$0xff] }
  0x7a   : > { %3510 = vmatpush1.bf16.msra.mxu1 %v3509_v35  ;;  %v3581_v35 = vpack.c.bf16 %v2922_v31, %v2918_v30  ;;  %v2978_v30 = vld [vmem:[%s6909_s3 + $0x4b0] sm:$0xff]  ;;  %v2981_v31 = vld [vmem:[%s6909_s3 + $0x4c8] sm:$0xff] }
  0x7b   : > { %3512 = vmatprep.subr.bf16.mxu1 %v3511_v36  ;;  %v3583_v36 = vpack.c.bf16 %v2931_v34, %v2927_v33  ;;  %v2983_v33 = vld [vmem:[%s6909_s3 + $0x4d8] sm:$0xff] }
  0x7e   : > { %3514 = vmatpush1.bf16.msra.mxu1 %v3513_v19  ;;  %v3585_v19 = vpack.c.bf16 %v2930_v38, %v2926_v37  ;;  %v2982_v37 = vld [vmem:[%s6909_s3 + $0x4d0] sm:$0xff]  ;;  %v2985_v38 = vld [vmem:[%s6909_s3 + $0x4e8] sm:$0xff] }
  0x7f   : > { %3516 = vmatprep.subr.bf16.mxu1 %v3515_v40  ;;  %v3587_v40 = vpack.c.bf16 %v2939_v5, %v2935_v39  ;;  %v2987_v39 = vld [vmem:[%s6909_s3 + $0x4f8] sm:$0xff] }
  0x82   : > { %3518 = vmatpush1.bf16.msra.mxu1 %v3517_v45  ;;  %v3589_v45 = vpack.c.bf16 %v2938_v42, %v2934_v41  ;;  %v2986_v41 = vld [vmem:[%s6909_s3 + $0x4f0] sm:$0xff]  ;;  %v2989_v42 = vld [vmem:[%s6909_s3 + $0x508] sm:$0xff] }
  0x83   : > { %3520 = vmatprep.subr.bf16.mxu1 %v3519_v46  ;;  %v3591_v46 = vpack.c.bf16 %v2947_v44, %v2943_v43  ;;  %v2991_v43 = vld [vmem:[%s6909_s3 + $0x518] sm:$0xff] }
  0x86   : > { %3522 = vmatpush1.bf16.msra.mxu1 %v3521_v53  ;;  %v3593_v53 = vpack.c.bf16 %v2946_v48, %v2942_v47  ;;  %v3021_v47 = vld [vmem:[%s6909_s3 + $0x608] sm:$0xff]  ;;  %v3631_v48 = vpack.c.bf16 %v2991_v43, %v2989_v42  ;;  %v3043_v43 = vld [vmem:[%s6909_s3 + $0x6b8] sm:$0xff] }
  0x87   : > { %3524 = vmatprep.subr.bf16.mxu1 %v3523_v54  ;;  %v3595_v54 = vpack.c.bf16 %v2955_v52, %v2951_v51  ;;  %v3023_v51 = vld [vmem:[%s6909_s3 + $0x618] sm:$0xff]  ;;  %v3020_v52 = vld [vmem:[%s6909_s3 + $0x600] sm:$0xff]  ;;  %v3041_v42 = vld [vmem:[%s6909_s3 + $0x6a8] sm:$0xff] }
  0x8a   : > { %3526 = vmatpush1.bf16.msra.mxu1 %v3525_v59  ;;  %v3597_v59 = vpack.c.bf16 %v2954_v56, %v2950_v55  ;;  %v2995_v55 = vld [vmem:[%s6909_s3 + $0x538] sm:$0xff]  ;;  %v3663_v56 = vpack.c.bf16 %v3023_v51, %v3021_v47  ;;  %v3013_v51 = vld [vmem:[%s6909_s3 + $0x5c8] sm:$0xff] }
  0x8b   : > { %3528 = vmatprep.subr.bf16.mxu1 %v3527_v60  ;;  %v3599_v60 = vpack.c.bf16 %v2959_v58, %v2957_v57 }
  0x8c   : > { %3664 = vmatprep.subr.bf16.mxu0 %v3663_v56  ;;  %v3045_v56 = vld [vmem:[%s6909_s3 + $0x6c8] sm:$0xff] }
  0x8e   : > { %3530 = vmatpush1.bf16.msra.mxu1 %v3529_v2  ;;  %v3601_v2 = vpack.c.bf16 %v2958_v62, %v2956_v61  ;;  %v2994_v61 = vld [vmem:[%s6909_s3 + $0x530] sm:$0xff]  ;;  %v2997_v62 = vld [vmem:[%s6909_s3 + $0x548] sm:$0xff] }
  0x8f   : > { %3532 = vmatprep.subr.bf16.mxu1 %v3531_v3  ;;  %v3603_v3 = vpack.c.bf16 %v2963_v0, %v2961_v63  ;;  %v2999_v63 = vld [vmem:[%s6909_s3 + $0x558] sm:$0xff]  ;;  %v2996_v0 = vld [vmem:[%s6909_s3 + $0x540] sm:$0xff] }
  0x92   : > { %3534 = vmatpush1.bf16.msra.mxu1 %v3533_v10  ;;  %v3605_v10 = vpack.c.bf16 %v2962_v6, %v2960_v4  ;;  %v3001_v4 = vld [vmem:[%s6909_s3 + $0x568] sm:$0xff]  ;;  %v3003_v6 = vld [vmem:[%s6909_s3 + $0x578] sm:$0xff] }
  0x93   : > { %3568 = vmatprep.subr.bf16.mxu1 %v3567_v11  ;;  %v3607_v11 = vpack.c.bf16 %v2967_v9, %v2965_v8  ;;  %v3025_v8 = vld [vmem:[%s6909_s3 + $0x628] sm:$0xff]  ;;  %v3027_v9 = vld [vmem:[%s6909_s3 + $0x638] sm:$0xff] }
  0x94   : > { %v3667_v12 = vpack.c.bf16 %v3027_v9, %v3025_v8  ;;  %v3051_v8 = vld [vmem:[%s6909_s3 + $0x6f8] sm:$0xff] }
  0x95   : > { %1017 = vmatmul.mubr.f32.vlgmr.msra.gmra.mrb[2].mxu1 %v4738_v49  ;;  %v2923_v49 = vld [vmem:[%s6907_s1 + $0x6f8] sm:$0xff] }
  0x96   : > { %3570 = vmatpush1.bf16.msra.mxu1 %v3569_v16  ;;  %1228 = vmatprep.mubr.f32.mxu1 %v4224_v7  ;;  %v3579_v29 = vpack.c.bf16 %v2923_v49, %v2919_v27  ;;  %v2979_v27 = vld [vmem:[%s6909_s3 + $0x4b8] sm:$0xff]  ;;  %v2228_v7 = vld [vmem:[%s6912_s6 + $0x8] sm:$0xff] }
  0x97   : > { %3572 = vmatprep.subr.bf16.mxu1 %v3571_v17  ;;  %v2968_v17 = vld [vmem:[%s6909_s3 + $0x460] sm:$0xff] }
  0x98   : > { %v3613_v22 = vpack.c.bf16 %v2970_v18, %v2968_v17  ;;  %v3028_v17 = vld [vmem:[%s6909_s3 + $0x640] sm:$0xff]  ;;  %v3030_v18 = vld [vmem:[%s6909_s3 + $0x650] sm:$0xff] }
  0x9a   : > { %3574 = vmatpush1.bf16.msra.mxu1 %v3573_v23  ;;  %v3615_v23 = vpack.c.bf16 %v2975_v32, %v2973_v20  ;;  %v3033_v20 = vld [vmem:[%s6909_s3 + $0x668] sm:$0xff]  ;;  %v3035_v32 = vld [vmem:[%s6909_s3 + $0x678] sm:$0xff] }
  0x9b   : > { %3576 = vmatprep.subr.bf16.mxu1 %v3575_v24  ;;  %v2972_v24 = vld [vmem:[%s6909_s3 + $0x480] sm:$0xff] }
  0x9c   : > { %v3617_v49 = vpack.c.bf16 %v2974_v25, %v2972_v24  ;;  %v3002_v24 = vld [vmem:[%s6909_s3 + $0x570] sm:$0xff]  ;;  %v3673_v25 = vpack.c.bf16 %v3030_v18, %v3028_v17  ;;  %v3055_v17 = vld [vmem:[%s6909_s3 + $0x718] sm:$0xff] }
  0x9e   : > { %3578 = vmatpush1.bf16.msra.mxu1 %v3577_v28  ;;  %v3619_v28 = vpack.c.bf16 %v2979_v27, %v2977_v26  ;;  %v3643_v26 = vpack.c.bf16 %v3003_v6, %v3001_v4  ;;  %v3005_v27 = vld [vmem:[%s6909_s3 + $0x588] sm:$0xff]  ;;  %v3019_v4 = vld [vmem:[%s6909_s3 + $0x5f8] sm:$0xff] }
  0x9f   : > { %3580 = vmatprep.subr.bf16.mxu1 %v3579_v29  ;;  %v2976_v29 = vld [vmem:[%s6909_s3 + $0x4a0] sm:$0xff]  ;;  %v3049_v6 = vld [vmem:[%s6909_s3 + $0x6e8] sm:$0xff] }
  0xa0   : > { %v3621_v34 = vpack.c.bf16 %v2978_v30, %v2976_v29  ;;  %v3034_v29 = vld [vmem:[%s6909_s3 + $0x670] sm:$0xff]  ;;  %v3007_v30 = vld [vmem:[%s6909_s3 + $0x598] sm:$0xff] }
  0xa2   : > { %3582 = vmatpush1.bf16.msra.mxu1 %v3581_v35  ;;  %v3623_v35 = vpack.c.bf16 %v2983_v33, %v2981_v31  ;;  %v3037_v31 = vld [vmem:[%s6909_s3 + $0x688] sm:$0xff]  ;;  %v3039_v33 = vld [vmem:[%s6909_s3 + $0x698] sm:$0xff] }
  0xa3   : > { %3584 = vmatprep.subr.bf16.mxu1 %v3583_v36  ;;  %v2980_v36 = vld [vmem:[%s6909_s3 + $0x4c0] sm:$0xff] }
  0xa4   : > { %v3625_v5 = vpack.c.bf16 %v2982_v37, %v2980_v36  ;;  %v3006_v36 = vld [vmem:[%s6909_s3 + $0x590] sm:$0xff] }
  0xa6   : > { %3586 = vmatpush1.bf16.msra.mxu1 %v3585_v19  ;;  %v3627_v19 = vpack.c.bf16 %v2987_v39, %v2985_v38  ;;  %v3647_v38 = vpack.c.bf16 %v3007_v30, %v3005_v27  ;;  %v3009_v39 = vld [vmem:[%s6909_s3 + $0x5a8] sm:$0xff]  ;;  %v3063_v30 = vld [vmem:[%s6909_s3 + $0x758] sm:$0xff] }
  0xa7   : > { %3588 = vmatprep.subr.bf16.mxu1 %v3587_v40  ;;  %v2984_v40 = vld [vmem:[%s6909_s3 + $0x4e0] sm:$0xff] }
  0xa8   : > { %v3629_v44 = vpack.c.bf16 %v2986_v41, %v2984_v40  ;;  %v3038_v40 = vld [vmem:[%s6909_s3 + $0x690] sm:$0xff]  ;;  %v3011_v41 = vld [vmem:[%s6909_s3 + $0x5b8] sm:$0xff] }
  0xaa   : > { %3590 = vmatpush1.bf16.msra.mxu1 %v3589_v45  ;;  %v2988_v45 = vld [vmem:[%s6909_s3 + $0x500] sm:$0xff] }
  0xab   : > { %3592 = vmatprep.subr.bf16.mxu1 %v3591_v46  ;;  %v2990_v46 = vld [vmem:[%s6909_s3 + $0x510] sm:$0xff] }
  0xac   : > { %v3633_v58 = vpack.c.bf16 %v2990_v46, %v2988_v45  ;;  %v3008_v45 = vld [vmem:[%s6909_s3 + $0x5a0] sm:$0xff]  ;;  %v3010_v46 = vld [vmem:[%s6909_s3 + $0x5b0] sm:$0xff] }
  0xae   : > { %3594 = vmatpush1.bf16.msra.mxu1 %v3593_v53  ;;  %v3022_v53 = vld [vmem:[%s6909_s3 + $0x610] sm:$0xff] }
  0xaf   : > { %3596 = vmatprep.subr.bf16.mxu1 %v3595_v54  ;;  %v2993_v54 = vld [vmem:[%s6909_s3 + $0x528] sm:$0xff]  ;;  %v3665_v57 = vpack.c.bf16 %v3022_v53, %v3020_v52  ;;  %v3683_v52 = vpack.c.bf16 %v3043_v43, %v3041_v42  ;;  %v3040_v53 = vld [vmem:[%s6909_s3 + $0x6a0] sm:$0xff]  ;;  %v3071_v42 = vld [vmem:[%s6909_s3 + $0x798] sm:$0xff] }
  0xb1   : > { %3666 = vmatpush1.bf16.msra.mxu0 %v3665_v57  ;;  %v3047_v57 = vld [vmem:[%s6909_s3 + $0x6d8] sm:$0xff] }
  0xb2   : > { %3598 = vmatpush1.bf16.msra.mxu1 %v3597_v59  ;;  %v3635_v59 = vpack.c.bf16 %v2995_v55, %v2993_v54  ;;  %3668 = vmatprep.subr.bf16.mxu0 %v3667_v12  ;;  %v3042_v54 = vld [vmem:[%s6909_s3 + $0x6b0] sm:$0xff]  ;;  %v3015_v55 = vld [vmem:[%s6909_s3 + $0x5d8] sm:$0xff] }
  0xb3   : > { %3600 = vmatprep.subr.bf16.mxu1 %v3599_v60  ;;  %v2992_v60 = vld [vmem:[%s6909_s3 + $0x520] sm:$0xff] }
  0xb5   : > { %1229 = vmatmul.mubr.f32.vlgmr.msra.gmra.mrb[2].mxu1 %v4918_v21  ;;  %v2971_v21 = vld [vmem:[%s6909_s3 + $0x478] sm:$0xff] }
  0xb6   : > { %3602 = vmatpush1.bf16.msra.mxu1 %v3601_v2  ;;  %v3611_v16 = vpack.c.bf16 %v2971_v21, %v2969_v14  ;;  %v2998_v2 = vld [vmem:[%s6909_s3 + $0x550] sm:$0xff]  ;;  %v3029_v14 = vld [vmem:[%s6909_s3 + $0x648] sm:$0xff]  ;;  %v3031_v21 = vld [vmem:[%s6909_s3 + $0x658] sm:$0xff] }
  0xb7   : > { %3604 = vmatprep.subr.bf16.mxu1 %v3603_v3  ;;  %v3637_v3 = vpack.c.bf16 %v2994_v61, %v2992_v60  ;;  %v3014_v60 = vld [vmem:[%s6909_s3 + $0x5d0] sm:$0xff]  ;;  %v3685_v61 = vpack.c.bf16 %v3042_v54, %v3040_v53  ;;  %v3072_v54 = vld [vmem:[%s6909_s3 + $0x7a0] sm:$0xff] }
  0xba   : > { %3606 = vmatpush1.bf16.msra.mxu1 %v3605_v10  ;;  %v3024_v10 = vld [vmem:[%s6909_s3 + $0x620] sm:$0xff] }
  0xbb   : > { %3608 = vmatprep.subr.bf16.mxu1 %v3607_v11  ;;  %v3639_v11 = vpack.c.bf16 %v2999_v63, %v2997_v62  ;;  %v3655_v62 = vpack.c.bf16 %v3015_v55, %v3013_v51  ;;  %v3017_v63 = vld [vmem:[%s6909_s3 + $0x5e8] sm:$0xff]  ;;  %v3074_v55 = vld [vmem:[%s6909_s3 + $0x7b0] sm:$0xff] }
  0xbc   : > { %v3659_v12 = vpack.c.bf16 %v3019_v4, %v3017_v63  ;;  %v3073_v51 = vld [vmem:[%s6909_s3 + $0x7a8] sm:$0xff]  ;;  %v3083_v63 = vld [vmem:[%s6909_s3 + $0x7f8] sm:$0xff]  ;;  %v3082_v4 = vld [vmem:[%s6909_s3 + $0x7f0] sm:$0xff] }
  0xbe   : > { %3610 = vmatpush1.bf16.msra.mxu1 %v3609_v15  ;;  %v3669_v15 = vpack.c.bf16 %v3026_v13, %v3024_v10  ;;  %v3016_v10 = vld [vmem:[%s6909_s3 + $0x5e0] sm:$0xff]  ;;  %v3018_v13 = vld [vmem:[%s6909_s3 + $0x5f0] sm:$0xff] }
  0xbf   : > { %3612 = vmatprep.subr.bf16.mxu1 %v3611_v16  ;;  %v3671_v16 = vpack.c.bf16 %v3031_v21, %v3029_v14  ;;  %v3691_v14 = vpack.c.bf16 %v3051_v8, %v3049_v6  ;;  %v3048_v21 = vld [vmem:[%s6909_s3 + $0x6e0] sm:$0xff]  ;;  %v3661_v18 = vpack.c.bf16 %v3018_v13, %v3016_v10  ;;  %v1299_v8 = vld [vmem:[%s6909_s3 + $0x8] sm:$0xff]  ;;  %v5514_v13 = vsub.s32 1, %v4426_v1 }
  0xc0   : > { %3670 = vmatpush1.bf16.msra.mxu0 %v3669_v15  ;;  %v3050_v15 = vld [vmem:[%s6909_s3 + $0x6f0] sm:$0xff] }
  0xc1   : > { %3672 = vmatprep.subr.bf16.mxu0 %v3671_v16  ;;  %v3053_v16 = vld [vmem:[%s6909_s3 + $0x708] sm:$0xff] }
  0xc2   : > { %3614 = vmatpush1.bf16.msra.mxu1 %v3613_v22  ;;  %v3641_v22 = vpack.c.bf16 %v2998_v2, %v2996_v0  ;;  %v3687_v0 = vpack.c.bf16 %v3047_v57, %v3045_v56  ;;  %v3044_v2 = vld [vmem:[%s6909_s3 + $0x6c0] sm:$0xff]  ;;  %v3717_v56 = vpack.c.bf16 %v3074_v55, %v3072_v54  ;;  %v3077_v57 = vld [vmem:[%s6909_s3 + $0x7c8] sm:$0xff] }
  0xc3   : > { %3616 = vmatprep.subr.bf16.mxu1 %v3615_v23  ;;  %v3000_v23 = vld [vmem:[%s6909_s3 + $0x560] sm:$0xff] }
  0xc4   : > { %3674 = vmatpush1.bf16.msra.mxu0 %v3673_v25  ;;  %v3059_v25 = vld [vmem:[%s6909_s3 + $0x738] sm:$0xff] }
  0xc6   : > { %3618 = vmatpush1.bf16.msra.mxu1 %v3617_v49  ;;  %v3675_v49 = vpack.c.bf16 %v3035_v32, %v3033_v20  ;;  %v3693_v20 = vpack.c.bf16 %v3050_v15, %v3048_v21  ;;  %v3695_v32 = vpack.c.bf16 %v3055_v17, %v3053_v16 }
  0xc7   : > { %3620 = vmatprep.subr.bf16.mxu1 %v3619_v28  ;;  %v3032_v28 = vld [vmem:[%s6909_s3 + $0x660] sm:$0xff] }
  0xc8   : > { %v3677_v37 = vpack.c.bf16 %v3034_v29, %v3032_v28  ;;  %3676 = vmatprep.subr.bf16.mxu0 %v3675_v49  ;;  %v3056_v49 = vld [vmem:[%s6909_s3 + $0x720] sm:$0xff]  ;;  %v3058_v28 = vld [vmem:[%s6909_s3 + $0x730] sm:$0xff]  ;;  %v3061_v29 = vld [vmem:[%s6909_s3 + $0x748] sm:$0xff] }
  0xca   : > { %3622 = vmatpush1.bf16.msra.mxu1 %v3621_v34  ;;  %v3645_v34 = vpack.c.bf16 %v3002_v24, %v3000_v23  ;;  %3678 = vmatpush1.bf16.msra.mxu0 %v3677_v37  ;;  %v3054_v23 = vld [vmem:[%s6909_s3 + $0x710] sm:$0xff]  ;;  %v3057_v24 = vld [vmem:[%s6909_s3 + $0x728] sm:$0xff]  ;;  %v3067_v37 = vld [vmem:[%s6909_s3 + $0x778] sm:$0xff] }
  0xcb   : > { %3624 = vmatprep.subr.bf16.mxu1 %v3623_v35  ;;  %v3004_v35 = vld [vmem:[%s6909_s3 + $0x580] sm:$0xff]  ;;  %v3699_v27 = vpack.c.bf16 %v3059_v25, %v3057_v24 }
  0xce   : > { %3626 = vmatpush1.bf16.msra.mxu1 %v3625_v5  ;;  %v3679_v5 = vpack.c.bf16 %v3039_v33, %v3037_v31  ;;  %v3701_v31 = vpack.c.bf16 %v3058_v28, %v3056_v49  ;;  %v3703_v33 = vpack.c.bf16 %v3063_v30, %v3061_v29 }
  0xcf   : > { %3628 = vmatprep.subr.bf16.mxu1 %v3627_v19  ;;  %v3036_v19 = vld [vmem:[%s6909_s3 + $0x680] sm:$0xff] }
  0xd0   : > { %v3681_v47 = vpack.c.bf16 %v3038_v40, %v3036_v19  ;;  %3680 = vmatprep.subr.bf16.mxu0 %v3679_v5  ;;  %v3064_v5 = vld [vmem:[%s6909_s3 + $0x760] sm:$0xff]  ;;  %v3066_v19 = vld [vmem:[%s6909_s3 + $0x770] sm:$0xff] }
  0xd1   : > { %v3709_v40 = vpack.c.bf16 %v3066_v19, %v3064_v5 }
  0xd2   : > { %3630 = vmatpush1.bf16.msra.mxu1 %v3629_v44  ;;  %v3649_v44 = vpack.c.bf16 %v3006_v36, %v3004_v35  ;;  %3682 = vmatpush1.bf16.msra.mxu0 %v3681_v47  ;;  %v3062_v35 = vld [vmem:[%s6909_s3 + $0x750] sm:$0xff]  ;;  %v3065_v36 = vld [vmem:[%s6909_s3 + $0x768] sm:$0xff] }
  0xd3   : > { %3632 = vmatprep.subr.bf16.mxu1 %v3631_v48  ;;  %v3651_v48 = vpack.c.bf16 %v3011_v41, %v3009_v39  ;;  %3684 = vmatprep.subr.bf16.mxu0 %v3683_v52  ;;  %v3707_v39 = vpack.c.bf16 %v3067_v37, %v3065_v36  ;;  %v3069_v41 = vld [vmem:[%s6909_s3 + $0x788] sm:$0xff]  ;;  %v3075_v52 = vld [vmem:[%s6909_s3 + $0x7b8] sm:$0xff] }
  0xd4   : > { %v3711_v43 = vpack.c.bf16 %v3071_v42, %v3069_v41  ;;  %v3715_v53 = vpack.c.bf16 %v3075_v52, %v3073_v51  ;;  %v1298_v42 = vld [vmem:[%s6909_s3] sm:$0xff] }
  0xd6   : > { %3634 = vmatpush1.bf16.msra.mxu1 %v3633_v58  ;;  %v3653_v58 = vpack.c.bf16 %v3010_v46, %v3008_v45  ;;  %3686 = vmatpush1.bf16.msra.mxu0 %v3685_v61  ;;  %v3070_v45 = vld [vmem:[%s6909_s3 + $0x790] sm:$0xff] }
  0xd7   : > { %3636 = vmatprep.subr.bf16.mxu1 %v3635_v59  ;;  %v3012_v59 = vld [vmem:[%s6909_s3 + $0x5c0] sm:$0xff]  ;;  %3688 = vmatprep.subr.bf16.mxu0 %v3687_v0  ;;  %v3078_v61 = vld [vmem:[%s6909_s3 + $0x7d0] sm:$0xff] }
  0xd8   : > { %v3657_v9 = vpack.c.bf16 %v3014_v60, %v3012_v59  ;;  %v3076_v59 = vld [vmem:[%s6909_s3 + $0x7c0] sm:$0xff] }
  0xd9   : > { %v3721_v0 = vpack.c.bf16 %v3078_v61, %v3076_v59  ;;  %v1304_v59 = vld [vmem:[%s6909_s3 + $0x30] sm:$0xff]  ;;  %v1307_v61 = vld [vmem:[%s6909_s3 + $0x48] sm:$0xff] }
  0xda   : > { %3638 = vmatpush1.bf16.msra.mxu1 %v3637_v3  ;;  %v3046_v3 = vld [vmem:[%s6909_s3 + $0x6d0] sm:$0xff] }
  0xdb   : > { %3640 = vmatprep.subr.bf16.mxu1 %v3639_v11  ;;  %v3689_v11 = vpack.c.bf16 %v3046_v3, %v3044_v2  ;;  %v3080_v3 = vld [vmem:[%s6909_s3 + $0x7e0] sm:$0xff] }
  0xdc   : > { %v3725_v6 = vpack.c.bf16 %v3082_v4, %v3080_v3  ;;  %v1306_v3 = vld [vmem:[%s6909_s3 + $0x40] sm:$0xff]  ;;  %v1308_v4 = vld [vmem:[%s6909_s3 + $0x50] sm:$0xff] }
  0xdd   : > { %3690 = vmatpush1.bf16.msra.mxu0 %v3689_v11  ;;  %v5508_v11 = vsub.s32 0, %v4426_v1 }
  0xde   : > { %3642 = vmatpush1.bf16.msra.mxu1 %v3641_v22  ;;  %3692 = vmatprep.subr.bf16.mxu0 %v3691_v14  ;;  %v3052_v22 = vld [vmem:[%s6909_s3 + $0x700] sm:$0xff] }
  0xdf   : > { %3644 = vmatprep.subr.bf16.mxu1 %v3643_v26  ;;  %v3697_v26 = vpack.c.bf16 %v3054_v23, %v3052_v22 }
  0xe1   : > { %3694 = vmatpush1.bf16.msra.mxu0 %v3693_v20 }
  0xe2   : > { %3646 = vmatpush1.bf16.msra.mxu1 %v3645_v34  ;;  %3696 = vmatprep.subr.bf16.mxu0 %v3695_v32  ;;  %v3060_v34 = vld [vmem:[%s6909_s3 + $0x740] sm:$0xff] }
  0xe3   : > { %3648 = vmatprep.subr.bf16.mxu1 %v3647_v38  ;;  %v3705_v38 = vpack.c.bf16 %v3062_v35, %v3060_v34  ;;  %v1251_v34 = vsub.s32 2, %v4426_v1  ;;  %v1255_v35 = vsub.s32 3, %v4426_v1  ;;  %v1300_v1 = vld [vmem:[%s6909_s3 + $0x10] sm:$0xff] }
  0xe4   : > { %v3729_v55 = vpack.c.bf16 %v1300_v1, %v1298_v42  ;;  %v1332_v42 = vld [vmem:[%s6909_s3 + $0x110] sm:$0xff]  ;;  %v1335_v1 = vld [vmem:[%s6909_s3 + $0x128] sm:$0xff] }
  0xe5   : > { %3698 = vmatpush1.bf16.msra.mxu0 %v3697_v26 }
  0xe6   : > { %3650 = vmatpush1.bf16.msra.mxu1 %v3649_v44  ;;  %3700 = vmatprep.subr.bf16.mxu0 %v3699_v27  ;;  %v3068_v44 = vld [vmem:[%s6909_s3 + $0x780] sm:$0xff] }
  0xe7   : > { %3652 = vmatprep.subr.bf16.mxu1 %v3651_v48  ;;  %v3713_v47 = vpack.c.bf16 %v3070_v45, %v3068_v44 }
  0xe9   : > { %3702 = vmatpush1.bf16.msra.mxu0 %v3701_v31 }
  0xea   : > { %3654 = vmatpush1.bf16.msra.mxu1 %v3653_v58  ;;  %3704 = vmatprep.subr.bf16.mxu0 %v3703_v33  ;;  %v3079_v58 = vld [vmem:[%s6909_s3 + $0x7d8] sm:$0xff] }
  0xeb   : > { %3656 = vmatprep.subr.bf16.mxu1 %v3655_v62  ;;  %v3719_v60 = vpack.c.bf16 %v3079_v58, %v3077_v57  ;;  %v3081_v62 = vld [vmem:[%s6909_s3 + $0x7e8] sm:$0xff]  ;;  %v1302_v58 = vld [vmem:[%s6909_s3 + $0x20] sm:$0xff] }
  0xec   : > { %v3723_v2 = vpack.c.bf16 %v3083_v63, %v3081_v62  ;;  %v1309_v62 = vld [vmem:[%s6909_s3 + $0x58] sm:$0xff] }
  0xed   : > { %3706 = vmatpush1.bf16.msra.mxu0 %v3705_v38 }
  0xee   : > { %3658 = vmatpush1.bf16.msra.mxu1 %v3657_v9  ;;  %3708 = vmatprep.subr.bf16.mxu0 %v3707_v39  ;;  %v1301_v9 = vld [vmem:[%s6909_s3 + $0x18] sm:$0xff] }
  0xef   : > { %3660 = vmatprep.subr.bf16.mxu1 %v3659_v12  ;;  %v3727_v10 = vpack.c.bf16 %v1301_v9, %v1299_v8  ;;  %v1239_v12 = vld [vmem:[%s6908_s2] sm:$0xf]  ;;  %v1313_v8 = vld [vmem:[%s6909_s3 + $0x78] sm:$0xff]  ;;  %v3737_v9 = vpack.c.bf16 %v1308_v4, %v1306_v3  ;;  %v1348_v4 = vld [vmem:[%s6909_s3 + $0x190] sm:$0xff] }
  0xf0   : > { %v1244_v14 = vrot.slane %v1239_v12, %v5508_v11  ;;  %v1248_v15 = vrot.slane %v1239_v12, %v5514_v13  ;;  %v1252_v36 = vrot.slane %v1239_v12, %v1251_v34  ;;  %v1256_v37 = vrot.slane %v1239_v12, %v1255_v35  ;;  %v1310_v12 = vld [vmem:[%s6909_s3 + $0x60] sm:$0xff]  ;;  %v1329_v34 = vld [vmem:[%s6909_s3 + $0xf8] sm:$0xff] }
  0xf1   : > { %3710 = vmatpush1.bf16.msra.mxu0 %v3709_v40  ;;  %v1346_v3 = vld [vmem:[%s6909_s3 + $0x180] sm:$0xff] }
  0xf2   : > { %3662 = vmatpush1.bf16.msra.mxu1 %v3661_v18  ;;  %3712 = vmatprep.subr.bf16.mxu0 %v3711_v43  ;;  %v1303_v43 = vld [vmem:[%s6909_s3 + $0x28] sm:$0xff] }
  0xf5   : > { %3714 = vmatpush1.bf16.msra.mxu0 %v3713_v47 }
  0xf6   : > { %3716 = vmatprep.subr.bf16.mxu0 %v3715_v53 }
  0xf9   : > { %3718 = vmatpush1.bf16.msra.mxu0 %v3717_v56 }
  0xfa   : > { %3720 = vmatprep.subr.bf16.mxu0 %v3719_v60 }
  0xfd   : > { %3722 = vmatpush1.bf16.msra.mxu0 %v3721_v0  ;;  %v3733_v0 = vpack.c.bf16 %v1304_v59, %v1302_v58 }
  0xfe   : > { %3724 = vmatprep.subr.bf16.mxu0 %v3723_v2  ;;  %v3735_v2 = vpack.c.bf16 %v1309_v62, %v1307_v61  ;;  %v1344_v61 = vld [vmem:[%s6909_s3 + $0x170] sm:$0xff]  ;;  %v1347_v62 = vld [vmem:[%s6909_s3 + $0x188] sm:$0xff] }
 0x101   : > { %3726 = vmatpush1.bf16.msra.mxu0 %v3725_v6  ;;  %v1311_v6 = vld [vmem:[%s6909_s3 + $0x68] sm:$0xff] }
 0x102   : > { %3728 = vmatprep.subr.bf16.mxu0 %v3727_v10  ;;  %v3739_v10 = vpack.c.bf16 %v1313_v8, %v1311_v6  ;;  %v1351_v6 = vld [vmem:[%s6909_s3 + $0x1a8] sm:$0xff]  ;;  %v1353_v8 = vld [vmem:[%s6909_s3 + $0x1b8] sm:$0xff] }
 0x108   : > { %v597_v46 = vpop.f32.mrb[0].mxu1 }
 0x109   : > { %v599_v48 = vpop.f32.mrb[1].mxu1 }
 0x13f   : > { %v1159_v21 = vpop.f32.mrb[0].mxu0 }
 0x140   : > { %v4175_v16 = vadd.f32 %v1159_v21, %v597_v46  ;;  %v1161_v17 = vpop.f32.mrb[1].mxu0  ;;  %v1305_v46 = vld [vmem:[%s6909_s3 + $0x38] sm:$0xff]  ;;  %v1315_v21 = vld [vmem:[%s6909_s3 + $0x88] sm:$0xff] }
 0x141   : > { %v4176_v18 = vadd.f32 %v1161_v17, %v599_v48  ;;  %v3731_v57 = vpack.c.bf16 %v1305_v46, %v1303_v43  ;;  %v1337_v43 = vld [vmem:[%s6909_s3 + $0x138] sm:$0xff]  ;;  %v1334_v46 = vld [vmem:[%s6909_s3 + $0x120] sm:$0xff] }
 0x142   : > { %v1261_v20 = vadd.f32 %v4175_v16, %v1244_v14  ;;  %v1312_v14 = vld [vmem:[%s6909_s3 + $0x70] sm:$0xff] }
 0x143   : > { %v1262_v32 = vadd.f32 %v4176_v18, %v1248_v15  ;;  %v1317_v15 = vld [vmem:[%s6909_s3 + $0x98] sm:$0xff]  ;;  %v3741_v16 = vpack.c.bf16 %v1312_v14, %v1310_v12  ;;  %v1314_v18 = vld [vmem:[%s6909_s3 + $0x80] sm:$0xff]  ;;  %v1352_v14 = vld [vmem:[%s6909_s3 + $0x1b0] sm:$0xff] }
 0x144   : > { %v1278_v22 = vrot.slane %v1261_v20, 7  ;;  %v3743_v17 = vpack.c.bf16 %v1317_v15, %v1315_v21  ;;  %v1316_v20 = vld [vmem:[%s6909_s3 + $0x90] sm:$0xff]  ;;  %v1350_v12 = vld [vmem:[%s6909_s3 + $0x1a0] sm:$0xff]  ;;  %v1355_v21 = vld [vmem:[%s6909_s3 + $0x1c8] sm:$0xff] }
 0x145   : > { %v1279_v23 = vrot.slane %v1262_v32, 7  ;;  %v1319_v32 = vld [vmem:[%s6909_s3 + $0xa8] sm:$0xff]  ;;  %v1357_v15 = vld [vmem:[%s6909_s3 + $0x1d8] sm:$0xff] }
 0x146   : > { %1286 = vst [vmem:[#allocation3] sm:$0xfe] %v1278_v22  ;;  %1290 = vst [vmem:[#allocation3 + $0x20] sm:$0x1] %v1278_v22  ;;  %v1321_v22 = vld [vmem:[%s6909_s3 + $0xb8] sm:$0xff] }
 0x147   : > { %1287 = vst [vmem:[#allocation3 + $0x8] sm:$0xfe] %v1279_v23  ;;  %1291 = vst [vmem:[#allocation3 + $0x28] sm:$0x1] %v1279_v23  ;;  %v3745_v23 = vpack.c.bf16 %v1316_v20, %v1314_v18  ;;  %v1354_v18 = vld [vmem:[%s6909_s3 + $0x1c0] sm:$0xff]  ;;  %v1356_v20 = vld [vmem:[%s6909_s3 + $0x1d0] sm:$0xff] }
 0x14d   : > { %v1426_v24 = vld [vmem:[#allocation3] sm:$0xfe]  ;;  %v1430_v25 = vld [vmem:[#allocation3 + $0x20] sm:$0x1] }
 0x14e   : > { %v1427_v26 = vld [vmem:[#allocation3 + $0x8] sm:$0xfe]  ;;  %v1431_v27 = vld [vmem:[#allocation3 + $0x28] sm:$0x1]  ;;  %v1572_v49 = vrot.slane %v1426_v24, 1  ;;  %v1573_v28 = vrot.slane %v1430_v25, 1  ;;  %v3747_v24 = vpack.c.bf16 %v1321_v22, %v1319_v32 }
 0x14f   : > { %v1575_v29 = vrot.slane %v1427_v26, 1  ;;  %v1576_v30 = vrot.slane %v1431_v27, 1  ;;  %v1295_v63 = vld [vmem:[#allocation3 + $0x8] sm:$0xff]  ;;  %v1318_v25 = vld [vmem:[%s6909_s3 + $0xa0] sm:$0xff]  ;;  %v1320_v26 = vld [vmem:[%s6909_s3 + $0xb0] sm:$0xff] }
 0x150   : > { %v1574_v33 = vsel %vm1571_vm4, %v1572_v49, %v1573_v28  ;;  %v1323_v27 = vld [vmem:[%s6909_s3 + $0xc8] sm:$0xff]  ;;  %v1325_v49 = vld [vmem:[%s6909_s3 + $0xd8] sm:$0xff]  ;;  %v3749_v28 = vpack.c.bf16 %v1320_v26, %v1318_v25  ;;  %v1358_v25 = vld [vmem:[%s6909_s3 + $0x1e0] sm:$0xff] }
 0x151   : > { %v1577_v31 = vsel %vm1571_vm4, %v1575_v29, %v1576_v30  ;;  %v3751_v29 = vpack.c.bf16 %v1325_v49, %v1323_v27  ;;  %v1322_v30 = vld [vmem:[%s6909_s3 + $0xc0] sm:$0xff]  ;;  %v1359_v32 = vld [vmem:[%s6909_s3 + $0x1e8] sm:$0xff]  ;;  %v1361_v22 = vld [vmem:[%s6909_s3 + $0x1f8] sm:$0xff] }
 0x152   : > { %1652 = vmatprep.mubr.f32.mxu1 %v1577_v31  ;;  %v1324_v31 = vld [vmem:[%s6909_s3 + $0xd0] sm:$0xff]  ;;  %v1363_v27 = vld [vmem:[%s6909_s3 + $0x208] sm:$0xff]  ;;  %v1365_v49 = vld [vmem:[%s6909_s3 + $0x218] sm:$0xff] }
 0x153   : > { %1653 = vmatmul.mubr.f32.vlgmr.msra.gmra.mrb[4].mxu1 %v1574_v33  ;;  %v1327_v33 = vld [vmem:[%s6909_s3 + $0xe8] sm:$0xff]  ;;  %v3753_v35 = vpack.c.bf16 %v1324_v31, %v1322_v30  ;;  %v1360_v26 = vld [vmem:[%s6909_s3 + $0x1f0] sm:$0xff]  ;;  %v1362_v30 = vld [vmem:[%s6909_s3 + $0x200] sm:$0xff] }
 0x154   : > { %v1364_v31 = vld [vmem:[%s6909_s3 + $0x210] sm:$0xff] }
 0x188   : > { %v1230_v38 = vpop.f32.mrb[2].mxu1 }
 0x189   : > { %v1263_v39 = vadd.f32 %v1252_v36, %v1230_v38  ;;  %v1232_v5 = vpop.f32.mrb[3].mxu1  ;;  %v3755_v36 = vpack.c.bf16 %v1329_v34, %v1327_v33  ;;  %v1328_v38 = vld [vmem:[%s6909_s3 + $0xf0] sm:$0xff]  ;;  %v1367_v33 = vld [vmem:[%s6909_s3 + $0x228] sm:$0xff]  ;;  %v1369_v34 = vld [vmem:[%s6909_s3 + $0x238] sm:$0xff] }
 0x18a   : > { %v1264_v19 = vadd.f32 %v1256_v37, %v1232_v5  ;;  %v1326_v37 = vld [vmem:[%s6909_s3 + $0xe0] sm:$0xff]  ;;  %v1333_v5 = vld [vmem:[%s6909_s3 + $0x118] sm:$0xff] }
 0x18b   : > { %v1280_v40 = vrot.slane %v1263_v39, 7  ;;  %v1331_v39 = vld [vmem:[%s6909_s3 + $0x108] sm:$0xff] }
 0x18c   : > { %v1281_v41 = vrot.slane %v1264_v19, 7  ;;  %v3757_v19 = vpack.c.bf16 %v1328_v38, %v1326_v37  ;;  %v1366_v37 = vld [vmem:[%s6909_s3 + $0x220] sm:$0xff]  ;;  %v1368_v38 = vld [vmem:[%s6909_s3 + $0x230] sm:$0xff] }
 0x18d   : > { %1288 = vst [vmem:[#allocation3 + $0x10] sm:$0xfe] %v1280_v40  ;;  %1292 = vst [vmem:[#allocation3 + $0x30] sm:$0x1] %v1280_v40  ;;  %v3759_v40 = vpack.c.bf16 %v1333_v5, %v1331_v39  ;;  %v1294_v39 = vld [vmem:[#allocation3] sm:$0xff]  ;;  %v1371_v5 = vld [vmem:[%s6909_s3 + $0x248] sm:$0xff] }
 0x18e   : > { %1289 = vst [vmem:[#allocation3 + $0x18] sm:$0xfe] %v1281_v41  ;;  %1293 = vst [vmem:[#allocation3 + $0x38] sm:$0x1] %v1281_v41  ;;  %v1330_v41 = vld [vmem:[%s6909_s3 + $0x100] sm:$0xff] }
 0x194   : > { %v1428_v44 = vld [vmem:[#allocation3 + $0x10] sm:$0xfe]  ;;  %v1432_v45 = vld [vmem:[#allocation3 + $0x30] sm:$0x1] }
 0x195   : > { %v1429_v47 = vld [vmem:[#allocation3 + $0x18] sm:$0xfe]  ;;  %v1433_v48 = vld [vmem:[#allocation3 + $0x38] sm:$0x1]  ;;  %v1578_v51 = vrot.slane %v1428_v44, 1  ;;  %v1579_v52 = vrot.slane %v1432_v45, 1  ;;  %v3761_v44 = vpack.c.bf16 %v1332_v42, %v1330_v41  ;;  %v3763_v45 = vpack.c.bf16 %v1337_v43, %v1335_v1 }
 0x196   : > { %v1581_v53 = vrot.slane %v1429_v47, 1  ;;  %v1582_v54 = vrot.slane %v1433_v48, 1  ;;  %v1336_v47 = vld [vmem:[%s6909_s3 + $0x130] sm:$0xff]  ;;  %v1339_v48 = vld [vmem:[%s6909_s3 + $0x148] sm:$0xff]  ;;  %v3797_v41 = vpack.c.bf16 %v1368_v38, %v1366_v37  ;;  %v1370_v1 = vld [vmem:[%s6909_s3 + $0x240] sm:$0xff] }
 0x197   : > { %v1580_v60 = vsel %vm1571_vm4, %v1578_v51, %v1579_v52  ;;  %v1341_v51 = vld [vmem:[%s6909_s3 + $0x158] sm:$0xff]  ;;  %v3765_v52 = vpack.c.bf16 %v1336_v47, %v1334_v46  ;;  %v1372_v43 = vld [vmem:[%s6909_s3 + $0x250] sm:$0xff] }
 0x198   : > { %v1583_v56 = vsel %vm1571_vm4, %v1581_v53, %v1582_v54  ;;  %v3767_v53 = vpack.c.bf16 %v1341_v51, %v1339_v48  ;;  %v1338_v54 = vld [vmem:[%s6909_s3 + $0x140] sm:$0xff]  ;;  %v3801_v46 = vpack.c.bf16 %v1372_v43, %v1370_v1  ;;  %v1376_v51 = vld [vmem:[%s6909_s3 + $0x270] sm:$0xff] }
 0x199   : > { %1723 = vmatprep.mubr.f32.mxu0 %v1583_v56  ;;  %v1343_v56 = vld [vmem:[%s6909_s3 + $0x168] sm:$0xff]  ;;  %v1374_v48 = vld [vmem:[%s6909_s3 + $0x260] sm:$0xff]  ;;  %v1412_v43 = vld [vmem:[%s6909_s3 + $0x390] sm:$0xff] }
 0x19a   : > { %1724 = vmatmul.mubr.f32.vlgmr.msra.gmra.mrb[2].mxu0 %v1580_v60  ;;  %v1342_v60 = vld [vmem:[%s6909_s3 + $0x160] sm:$0xff] }
 0x19b   : > { %3730 = vmatpush1.bf16.msra.mxu0 %v3729_v55  ;;  %1794 = vmatprep.mubr.f32.mxu0 %v1295_v63  ;;  %v1340_v55 = vld [vmem:[%s6909_s3 + $0x150] sm:$0xff]  ;;  %v1349_v63 = vld [vmem:[%s6909_s3 + $0x198] sm:$0xff]  ;;  %v1410_v1 = vld [vmem:[%s6909_s3 + $0x380] sm:$0xff] }
 0x19c   : > { %3732 = vmatprep.subr.bf16.mxu0 %v3731_v57  ;;  %v1345_v57 = vld [vmem:[%s6909_s3 + $0x178] sm:$0xff]  ;;  %v3769_v58 = vpack.c.bf16 %v1340_v55, %v1338_v54  ;;  %v3805_v54 = vpack.c.bf16 %v1376_v51, %v1374_v48  ;;  %v1414_v48 = vld [vmem:[%s6909_s3 + $0x3a0] sm:$0xff]  ;;  %v1416_v51 = vld [vmem:[%s6909_s3 + $0x3b0] sm:$0xff] }
 0x19d   : > { %v3771_v59 = vpack.c.bf16 %v1345_v57, %v1343_v56  ;;  %v1378_v56 = vld [vmem:[%s6909_s3 + $0x280] sm:$0xff]  ;;  %v1380_v57 = vld [vmem:[%s6909_s3 + $0x290] sm:$0xff] }
 0x19f   : > { %3734 = vmatpush1.bf16.msra.mxu0 %v3733_v0  ;;  %v3773_v0 = vpack.c.bf16 %v1344_v61, %v1342_v60  ;;  %v3809_v60 = vpack.c.bf16 %v1380_v57, %v1378_v56  ;;  %v1418_v56 = vld [vmem:[%s6909_s3 + $0x3c0] sm:$0xff]  ;;  %v1420_v57 = vld [vmem:[%s6909_s3 + $0x3d0] sm:$0xff] }
 0x1a0   : > { %3736 = vmatprep.subr.bf16.mxu0 %v3735_v2  ;;  %v3775_v2 = vpack.c.bf16 %v1349_v63, %v1347_v62  ;;  %v1382_v62 = vld [vmem:[%s6909_s3 + $0x2a0] sm:$0xff]  ;;  %v1384_v63 = vld [vmem:[%s6909_s3 + $0x2b0] sm:$0xff] }
 0x1a3   : > { %3738 = vmatpush1.bf16.msra.mxu0 %v3737_v9  ;;  %v3777_v9 = vpack.c.bf16 %v1348_v4, %v1346_v3  ;;  %v3813_v3 = vpack.c.bf16 %v1384_v63, %v1382_v62  ;;  %v1422_v62 = vld [vmem:[%s6909_s3 + $0x3e0] sm:$0xff]  ;;  %v1424_v63 = vld [vmem:[%s6909_s3 + $0x3f0] sm:$0xff] }
 0x1a4   : > { %3740 = vmatprep.subr.bf16.mxu0 %v3739_v10  ;;  %v3779_v10 = vpack.c.bf16 %v1353_v8, %v1351_v6  ;;  %v1386_v6 = vld [vmem:[%s6909_s3 + $0x2c0] sm:$0xff]  ;;  %v1388_v8 = vld [vmem:[%s6909_s3 + $0x2d0] sm:$0xff] }
 0x1a7   : > { %3742 = vmatpush1.bf16.msra.mxu0 %v3741_v16  ;;  %v3781_v16 = vpack.c.bf16 %v1352_v14, %v1350_v12  ;;  %v3817_v12 = vpack.c.bf16 %v1388_v8, %v1386_v6  ;;  %v1877_v6 = vld [vmem:[#allocation3 + $0x28] sm:$0x3] }
 0x1a8   : > { %3744 = vmatprep.subr.bf16.mxu0 %v3743_v17  ;;  %v3783_v17 = vpack.c.bf16 %v1357_v15, %v1355_v21  ;;  %v1390_v21 = vld [vmem:[%s6909_s3 + $0x2e0] sm:$0xff]  ;;  %v1392_v15 = vld [vmem:[%s6909_s3 + $0x2f0] sm:$0xff] }
 0x1ab   : > { %3746 = vmatpush1.bf16.msra.mxu0 %v3745_v23  ;;  %v3785_v23 = vpack.c.bf16 %v1356_v20, %v1354_v18  ;;  %v3821_v18 = vpack.c.bf16 %v1392_v15, %v1390_v21  ;;  %v2022_v15 = vrot.slane %v1877_v6, 2 }
 0x1ac   : > { %3748 = vmatprep.subr.bf16.mxu0 %v3747_v24  ;;  %v3787_v24 = vpack.c.bf16 %v1361_v22, %v1359_v32  ;;  %v1394_v32 = vld [vmem:[%s6909_s3 + $0x300] sm:$0xff]  ;;  %v1396_v22 = vld [vmem:[%s6909_s3 + $0x310] sm:$0xff] }
 0x1af   : > { %3750 = vmatpush1.bf16.msra.mxu0 %v3749_v28  ;;  %v3789_v28 = vpack.c.bf16 %v1360_v26, %v1358_v25  ;;  %v3825_v25 = vpack.c.bf16 %v1396_v22, %v1394_v32  ;;  %v1296_v32 = vld [vmem:[#allocation3 + $0x10] sm:$0xff]  ;;  %v3093_v22 = vld [vmem:[%s6909_s3 + $0x848] sm:$0xff] }
 0x1b0   : > { %3752 = vmatprep.subr.bf16.mxu0 %v3751_v29  ;;  %v3791_v29 = vpack.c.bf16 %v1365_v49, %v1363_v27  ;;  %v1398_v27 = vld [vmem:[%s6909_s3 + $0x320] sm:$0xff]  ;;  %v1400_v49 = vld [vmem:[%s6909_s3 + $0x330] sm:$0xff] }
 0x1b3   : > { %3754 = vmatpush1.bf16.msra.mxu0 %v3753_v35  ;;  %v3793_v35 = vpack.c.bf16 %v1364_v31, %v1362_v30  ;;  %v3829_v30 = vpack.c.bf16 %v1400_v49, %v1398_v27  ;;  %v3213_v27 = vld [vmem:[%s6912_s6 + $0x208] sm:$0xff]  ;;  %v3215_v49 = vld [vmem:[%s6912_s6 + $0x218] sm:$0xff] }
 0x1b4   : > { %3756 = vmatprep.subr.bf16.mxu0 %v3755_v36  ;;  %v3795_v36 = vpack.c.bf16 %v1369_v34, %v1367_v33  ;;  %v1402_v33 = vld [vmem:[%s6909_s3 + $0x340] sm:$0xff]  ;;  %v1404_v34 = vld [vmem:[%s6909_s3 + $0x350] sm:$0xff] }
 0x1b5   : > { %v3833_v37 = vpack.c.bf16 %v1404_v34, %v1402_v33  ;;  %v3217_v33 = vld [vmem:[%s6912_s6 + $0x228] sm:$0xff]  ;;  %v3219_v34 = vld [vmem:[%s6912_s6 + $0x238] sm:$0xff] }
 0x1b7   : > { %3758 = vmatpush1.bf16.msra.mxu0 %v3757_v19  ;;  %v1373_v19 = vld [vmem:[%s6909_s3 + $0x258] sm:$0xff] }
 0x1b8   : > { %3760 = vmatprep.subr.bf16.mxu0 %v3759_v40  ;;  %v1297_v40 = vld [vmem:[#allocation3 + $0x18] sm:$0xff]  ;;  %v3799_v42 = vpack.c.bf16 %v1373_v19, %v1371_v5  ;;  %v1408_v5 = vld [vmem:[%s6909_s3 + $0x370] sm:$0xff]  ;;  %v1411_v19 = vld [vmem:[%s6909_s3 + $0x388] sm:$0xff] }
 0x1bb   : > { %3762 = vmatpush1.bf16.msra.mxu0 %v3761_v44  ;;  %v1375_v44 = vld [vmem:[%s6909_s3 + $0x268] sm:$0xff] }
 0x1bc   : > { %3764 = vmatprep.subr.bf16.mxu0 %v3763_v45  ;;  %v1377_v45 = vld [vmem:[%s6909_s3 + $0x278] sm:$0xff] }
 0x1bd   : > { %v3803_v47 = vpack.c.bf16 %v1377_v45, %v1375_v44  ;;  %v1415_v44 = vld [vmem:[%s6909_s3 + $0x3a8] sm:$0xff]  ;;  %v1417_v45 = vld [vmem:[%s6909_s3 + $0x3b8] sm:$0xff] }
 0x1bf   : > { %3766 = vmatpush1.bf16.msra.mxu0 %v3765_v52  ;;  %v1379_v52 = vld [vmem:[%s6909_s3 + $0x288] sm:$0xff] }
 0x1c0   : > { %3768 = vmatprep.subr.bf16.mxu0 %v3767_v53  ;;  %v1381_v53 = vld [vmem:[%s6909_s3 + $0x298] sm:$0xff] }
 0x1c1   : > { %v3807_v55 = vpack.c.bf16 %v1381_v53, %v1379_v52  ;;  %v1419_v52 = vld [vmem:[%s6909_s3 + $0x3c8] sm:$0xff]  ;;  %v1421_v53 = vld [vmem:[%s6909_s3 + $0x3d8] sm:$0xff] }
 0x1c3   : > { %3770 = vmatpush1.bf16.msra.mxu0 %v3769_v58  ;;  %v1383_v58 = vld [vmem:[%s6909_s3 + $0x2a8] sm:$0xff] }
 0x1c4   : > { %3772 = vmatprep.subr.bf16.mxu0 %v3771_v59  ;;  %v1385_v59 = vld [vmem:[%s6909_s3 + $0x2b8] sm:$0xff] }
 0x1c5   : > { %v3811_v61 = vpack.c.bf16 %v1385_v59, %v1383_v58  ;;  %v1423_v58 = vld [vmem:[%s6909_s3 + $0x3e8] sm:$0xff]  ;;  %v1425_v59 = vld [vmem:[%s6909_s3 + $0x3f8] sm:$0xff] }
 0x1c7   : > { %3774 = vmatpush1.bf16.msra.mxu0 %v3773_v0  ;;  %v1387_v0 = vld [vmem:[%s6909_s3 + $0x2c8] sm:$0xff] }
 0x1c8   : > { %3776 = vmatprep.subr.bf16.mxu0 %v3775_v2  ;;  %v1389_v2 = vld [vmem:[%s6909_s3 + $0x2d8] sm:$0xff] }
 0x1c9   : > { %v3815_v4 = vpack.c.bf16 %v1389_v2, %v1387_v0  ;;  %v3085_v0 = vld [vmem:[%s6909_s3 + $0x808] sm:$0xff]  ;;  %v3087_v2 = vld [vmem:[%s6909_s3 + $0x818] sm:$0xff] }
 0x1ca   : > { %v3855_v8 = vpack.c.bf16 %v3087_v2, %v3085_v0  ;;  %v3231_v0 = vld [vmem:[%s6912_s6 + $0x298] sm:$0xff]  ;;  %v3105_v2 = vld [vmem:[%s6909_s3 + $0x8a8] sm:$0xff] }
 0x1cb   : > { %3778 = vmatpush1.bf16.msra.mxu0 %v3777_v9  ;;  %v1391_v9 = vld [vmem:[%s6909_s3 + $0x2e8] sm:$0xff] }
 0x1cc   : > { %3780 = vmatprep.subr.bf16.mxu0 %v3779_v10  ;;  %v1393_v10 = vld [vmem:[%s6909_s3 + $0x2f8] sm:$0xff] }
 0x1cd   : > { %v3819_v14 = vpack.c.bf16 %v1393_v10, %v1391_v9  ;;  %v3084_v9 = vld [vmem:[%s6909_s3 + $0x800] sm:$0xff]  ;;  %v3086_v10 = vld [vmem:[%s6909_s3 + $0x810] sm:$0xff] }
 0x1cf   : > { %3782 = vmatpush1.bf16.msra.mxu0 %v3781_v16  ;;  %v1395_v16 = vld [vmem:[%s6909_s3 + $0x308] sm:$0xff] }
 0x1d0   : > { %3784 = vmatprep.subr.bf16.mxu0 %v3783_v17  ;;  %v1397_v17 = vld [vmem:[%s6909_s3 + $0x318] sm:$0xff] }
 0x1d1   : > { %v3823_v20 = vpack.c.bf16 %v1397_v17, %v1395_v16  ;;  %v3857_v16 = vpack.c.bf16 %v3086_v10, %v3084_v9  ;;  %v3228_v10 = vld [vmem:[%s6912_s6 + $0x280] sm:$0xff] }
 0x1d3   : > { %3786 = vmatpush1.bf16.msra.mxu0 %v3785_v23  ;;  %v1399_v23 = vld [vmem:[%s6909_s3 + $0x328] sm:$0xff] }
 0x1d4   : > { %3788 = vmatprep.subr.bf16.mxu0 %v3787_v24  ;;  %v1401_v24 = vld [vmem:[%s6909_s3 + $0x338] sm:$0xff] }
 0x1d5   : > { %v3827_v26 = vpack.c.bf16 %v1401_v24, %v1399_v23  ;;  %v3095_v23 = vld [vmem:[%s6909_s3 + $0x858] sm:$0xff] }
 0x1d7   : > { %3790 = vmatpush1.bf16.msra.mxu0 %v3789_v28  ;;  %v1403_v28 = vld [vmem:[%s6909_s3 + $0x348] sm:$0xff] }
 0x1d8   : > { %3792 = vmatprep.subr.bf16.mxu0 %v3791_v29  ;;  %v1405_v29 = vld [vmem:[%s6909_s3 + $0x358] sm:$0xff] }
 0x1d9   : > { %v3831_v31 = vpack.c.bf16 %v1405_v29, %v1403_v28  ;;  %v3212_v28 = vld [vmem:[%s6912_s6 + $0x200] sm:$0xff] }
 0x1da   : > { %1795 = vmatmul.mubr.f32.vlgmr.msra.gmra.mrb[2].mxu0 %v1294_v39  ;;  %v1406_v39 = vld [vmem:[%s6909_s3 + $0x360] sm:$0xff] }
 0x1db   : > { %3794 = vmatpush1.bf16.msra.mxu0 %v3793_v35  ;;  %1865 = vmatprep.mubr.f32.mxu0 %v1297_v40  ;;  %v1407_v35 = vld [vmem:[%s6909_s3 + $0x368] sm:$0xff]  ;;  %v1413_v40 = vld [vmem:[%s6909_s3 + $0x398] sm:$0xff] }
 0x1dc   : > { %3796 = vmatprep.subr.bf16.mxu0 %v3795_v36  ;;  %v1409_v36 = vld [vmem:[%s6909_s3 + $0x378] sm:$0xff] }
 0x1dd   : > { %v3835_v38 = vpack.c.bf16 %v1409_v36, %v1407_v35  ;;  %v3863_v35 = vpack.c.bf16 %v3095_v23, %v3093_v22 }
 0x1df   : > { %3798 = vmatpush1.bf16.msra.mxu0 %v3797_v41  ;;  %v3837_v41 = vpack.c.bf16 %v1408_v5, %v1406_v39  ;;  %v3218_v39 = vld [vmem:[%s6912_s6 + $0x230] sm:$0xff]  ;;  %v3221_v5 = vld [vmem:[%s6912_s6 + $0x248] sm:$0xff] }
 0x1e0   : > { %3800 = vmatprep.subr.bf16.mxu0 %v3799_v42  ;;  %v3839_v42 = vpack.c.bf16 %v1413_v40, %v1411_v19  ;;  %v3097_v19 = vld [vmem:[%s6909_s3 + $0x868] sm:$0xff]  ;;  %v3099_v40 = vld [vmem:[%s6909_s3 + $0x878] sm:$0xff] }
 0x1e3   : > { %3802 = vmatpush1.bf16.msra.mxu0 %v3801_v46  ;;  %v3841_v46 = vpack.c.bf16 %v1412_v43, %v1410_v1  ;;  %v3096_v43 = vld [vmem:[%s6909_s3 + $0x860] sm:$0xff] }
 0x1e4   : > { %3804 = vmatprep.subr.bf16.mxu0 %v3803_v47  ;;  %v3843_v47 = vpack.c.bf16 %v1417_v45, %v1415_v44  ;;  %v3220_v45 = vld [vmem:[%s6912_s6 + $0x240] sm:$0xff] }
 0x1e7   : > { %3806 = vmatpush1.bf16.msra.mxu0 %v3805_v54  ;;  %v3845_v54 = vpack.c.bf16 %v1416_v51, %v1414_v48  ;;  %v3098_v48 = vld [vmem:[%s6909_s3 + $0x870] sm:$0xff]  ;;  %v3225_v51 = vld [vmem:[%s6912_s6 + $0x268] sm:$0xff] }
 0x1e8   : > { %3808 = vmatprep.subr.bf16.mxu0 %v3807_v55  ;;  %v3847_v55 = vpack.c.bf16 %v1421_v53, %v1419_v52  ;;  %v3227_v52 = vld [vmem:[%s6912_s6 + $0x278] sm:$0xff]  ;;  %v3101_v53 = vld [vmem:[%s6909_s3 + $0x888] sm:$0xff] }
 0x1eb   : > { %3810 = vmatpush1.bf16.msra.mxu0 %v3809_v60  ;;  %v3849_v60 = vpack.c.bf16 %v1420_v57, %v1418_v56  ;;  %v3869_v56 = vpack.c.bf16 %v3098_v48, %v3096_v43  ;;  %v3100_v57 = vld [vmem:[%s6909_s3 + $0x880] sm:$0xff]  ;;  %v3242_v48 = vld [vmem:[%s6912_s6 + $0x2f0] sm:$0xff] }
 0x1ec   : > { %3812 = vmatprep.subr.bf16.mxu0 %v3811_v61  ;;  %v3851_v61 = vpack.c.bf16 %v1425_v59, %v1423_v58  ;;  %v3995_v58 = vpack.c.bf16 %v3227_v52, %v3225_v51  ;;  %v3224_v59 = vld [vmem:[%s6912_s6 + $0x260] sm:$0xff]  ;;  %v3118_v52 = vld [vmem:[%s6909_s3 + $0x910] sm:$0xff] }
 0x1ef   : > { %3814 = vmatpush1.bf16.msra.mxu0 %v3813_v3  ;;  %v3853_v3 = vpack.c.bf16 %v1424_v63, %v1422_v62  ;;  %v3102_v62 = vld [vmem:[%s6909_s3 + $0x890] sm:$0xff]  ;;  %v3229_v63 = vld [vmem:[%s6912_s6 + $0x288] sm:$0xff] }
 0x1f0   : > { %3816 = vmatprep.subr.bf16.mxu0 %v3815_v4  ;;  %v1873_v4 = vld [vmem:[#allocation3 + $0x8] sm:$0xfc]  ;;  %v3873_v6 = vpack.c.bf16 %v3102_v62, %v3100_v57  ;;  %v3999_v9 = vpack.c.bf16 %v3231_v0, %v3229_v63  ;;  %v3246_v62 = vld [vmem:[%s6912_s6 + $0x310] sm:$0xff] }
 0x1f1   : > { %v2021_v21 = vrot.slane %v1873_v4, 2  ;;  %v3122_v0 = vld [vmem:[%s6909_s3 + $0x930] sm:$0xff] }
 0x1f3   : > { %3818 = vmatpush1.bf16.msra.mxu0 %v3817_v12  ;;  %v3089_v12 = vld [vmem:[%s6909_s3 + $0x828] sm:$0xff]  ;;  %v2023_v24 = vsel %vm2017_vm5, %v2021_v21, %v2022_v15  ;;  %v3106_v21 = vld [vmem:[%s6909_s3 + $0x8b0] sm:$0xff] }
 0x1f4   : > { %3820 = vmatprep.subr.bf16.mxu0 %v3819_v14  ;;  %v3091_v14 = vld [vmem:[%s6909_s3 + $0x838] sm:$0xff]  ;;  %v3233_v15 = vld [vmem:[%s6912_s6 + $0x2a8] sm:$0xff] }
 0x1f5   : > { %v3859_v17 = vpack.c.bf16 %v3091_v14, %v3089_v12  ;;  %v3230_v12 = vld [vmem:[%s6912_s6 + $0x290] sm:$0xff] }
 0x1f6   : > { %v4001_v22 = vpack.c.bf16 %v3230_v12, %v3228_v10  ;;  %v3124_v10 = vld [vmem:[%s6909_s3 + $0x940] sm:$0xff] }
 0x1f7   : > { %3822 = vmatpush1.bf16.msra.mxu0 %v3821_v18  ;;  %v3088_v18 = vld [vmem:[%s6909_s3 + $0x820] sm:$0xff] }
 0x1f8   : > { %3824 = vmatprep.subr.bf16.mxu0 %v3823_v20  ;;  %v3090_v20 = vld [vmem:[%s6909_s3 + $0x830] sm:$0xff] }
 0x1f9   : > { %v3861_v29 = vpack.c.bf16 %v3090_v20, %v3088_v18  ;;  %v3109_v18 = vld [vmem:[%s6909_s3 + $0x8c8] sm:$0xff]  ;;  %v3111_v20 = vld [vmem:[%s6909_s3 + $0x8d8] sm:$0xff] }
 0x1fb   : > { %3826 = vmatpush1.bf16.msra.mxu0 %v3825_v25  ;;  %v3092_v25 = vld [vmem:[%s6909_s3 + $0x840] sm:$0xff] }
 0x1fc   : > { %3828 = vmatprep.subr.bf16.mxu0 %v3827_v26  ;;  %v3094_v26 = vld [vmem:[%s6909_s3 + $0x850] sm:$0xff] }
 0x1fd   : > { %v3865_v1 = vpack.c.bf16 %v3094_v26, %v3092_v25  ;;  %v3232_v26 = vld [vmem:[%s6912_s6 + $0x2a0] sm:$0xff] }
 0x1ff   : > { %3830 = vmatpush1.bf16.msra.mxu0 %v3829_v30  ;;  %v3983_v30 = vpack.c.bf16 %v3215_v49, %v3213_v27  ;;  %v3234_v27 = vld [vmem:[%s6912_s6 + $0x2b0] sm:$0xff]  ;;  %v3879_v49 = vpack.c.bf16 %v3111_v20, %v3109_v18  ;;  %v3253_v18 = vld [vmem:[%s6912_s6 + $0x348] sm:$0xff]  ;;  %v3255_v20 = vld [vmem:[%s6912_s6 + $0x358] sm:$0xff] }
 0x200   : > { %3832 = vmatprep.subr.bf16.mxu0 %v3831_v31  ;;  %v3214_v31 = vld [vmem:[%s6912_s6 + $0x210] sm:$0xff] }
 0x201   : > { %v3985_v36 = vpack.c.bf16 %v3214_v31, %v3212_v28  ;;  %3984 = vmatprep.subr.bf16.mxu1 %v3983_v30  ;;  %v3110_v28 = vld [vmem:[%s6909_s3 + $0x8d0] sm:$0xff]  ;;  %v3239_v30 = vld [vmem:[%s6912_s6 + $0x2d8] sm:$0xff]  ;;  %v3113_v31 = vld [vmem:[%s6909_s3 + $0x8e8] sm:$0xff] }
 0x203   : > { %3834 = vmatpush1.bf16.msra.mxu0 %v3833_v37  ;;  %v3987_v37 = vpack.c.bf16 %v3219_v34, %v3217_v33  ;;  %3986 = vmatpush1.bf16.msra.mxu1 %v3985_v36  ;;  %v3115_v33 = vld [vmem:[%s6909_s3 + $0x8f8] sm:$0xff]  ;;  %v4005_v34 = vpack.c.bf16 %v3234_v27, %v3232_v26  ;;  %v3112_v36 = vld [vmem:[%s6909_s3 + $0x8e0] sm:$0xff]  ;;  %v4023_v26 = vpack.c.bf16 %v3255_v20, %v3253_v18 }
 0x204   : > { %3836 = vmatprep.subr.bf16.mxu0 %v3835_v38  ;;  %v3216_v38 = vld [vmem:[%s6912_s6 + $0x220] sm:$0xff] }
 0x205   : > { %3988 = vmatprep.subr.bf16.mxu1 %v3987_v37 }
 0x207   : > { %3838 = vmatpush1.bf16.msra.mxu0 %v3837_v41  ;;  %v3223_v41 = vld [vmem:[%s6912_s6 + $0x258] sm:$0xff] }
 0x208   : > { %3840 = vmatprep.subr.bf16.mxu0 %v3839_v42  ;;  %v3989_v42 = vpack.c.bf16 %v3218_v39, %v3216_v38  ;;  %v3991_v44 = vpack.c.bf16 %v3223_v41, %v3221_v5  ;;  %v3236_v38 = vld [vmem:[%s6912_s6 + $0x2c0] sm:$0xff]  ;;  %v3238_v39 = vld [vmem:[%s6912_s6 + $0x2d0] sm:$0xff]  ;;  %v3883_v5 = vpack.c.bf16 %v3115_v33, %v3113_v31  ;;  %v3243_v41 = vld [vmem:[%s6912_s6 + $0x2f8] sm:$0xff] }
 0x209   : > { %v4009_v43 = vpack.c.bf16 %v3238_v39, %v3236_v38 }
 0x20a   : > { %3990 = vmatpush1.bf16.msra.mxu1 %v3989_v42  ;;  %v3117_v42 = vld [vmem:[%s6909_s3 + $0x908] sm:$0xff] }
 0x20b   : > { %3842 = vmatpush1.bf16.msra.mxu0 %v3841_v46  ;;  %v3222_v46 = vld [vmem:[%s6912_s6 + $0x250] sm:$0xff]  ;;  %3992 = vmatprep.subr.bf16.mxu1 %v3991_v44 }
 0x20c   : > { %3844 = vmatprep.subr.bf16.mxu0 %v3843_v47  ;;  %v3867_v47 = vpack.c.bf16 %v3099_v40, %v3097_v19  ;;  %v3114_v19 = vld [vmem:[%s6909_s3 + $0x8f0] sm:$0xff]  ;;  %v3241_v40 = vld [vmem:[%s6912_s6 + $0x2e8] sm:$0xff] }
 0x20d   : > { %v3885_v44 = vpack.c.bf16 %v3114_v19, %v3112_v36  ;;  %v3137_v36 = vld [vmem:[%s6909_s3 + $0x9a8] sm:$0xff]  ;;  %v3138_v19 = vld [vmem:[%s6909_s3 + $0x9b0] sm:$0xff] }
 0x20f   : > { %3846 = vmatpush1.bf16.msra.mxu0 %v3845_v54  ;;  %v3103_v54 = vld [vmem:[%s6909_s3 + $0x898] sm:$0xff] }
 0x210   : > { %3848 = vmatprep.subr.bf16.mxu0 %v3847_v55  ;;  %v3993_v55 = vpack.c.bf16 %v3222_v46, %v3220_v45  ;;  %v3116_v45 = vld [vmem:[%s6909_s3 + $0x900] sm:$0xff]  ;;  %v4011_v46 = vpack.c.bf16 %v3243_v41, %v3241_v40  ;;  %v3141_v40 = vld [vmem:[%s6909_s3 + $0x9c8] sm:$0xff]  ;;  %v3143_v41 = vld [vmem:[%s6909_s3 + $0x9d8] sm:$0xff] }
 0x212   : > { %3994 = vmatpush1.bf16.msra.mxu1 %v3993_v55  ;;  %v3121_v55 = vld [vmem:[%s6909_s3 + $0x928] sm:$0xff] }
 0x213   : > { %3850 = vmatpush1.bf16.msra.mxu0 %v3849_v60  ;;  %v3226_v60 = vld [vmem:[%s6912_s6 + $0x270] sm:$0xff]  ;;  %3996 = vmatprep.subr.bf16.mxu1 %v3995_v58  ;;  %v3889_v58 = vpack.c.bf16 %v3118_v52, %v3116_v45  ;;  %v3145_v45 = vld [vmem:[%s6909_s3 + $0x9e8] sm:$0xff] }
 0x214   : > { %3852 = vmatprep.subr.bf16.mxu0 %v3851_v61  ;;  %v3871_v61 = vpack.c.bf16 %v3103_v54, %v3101_v53  ;;  %v3997_v4 = vpack.c.bf16 %v3226_v60, %v3224_v59  ;;  %v3245_v53 = vld [vmem:[%s6912_s6 + $0x308] sm:$0xff]  ;;  %v3247_v54 = vld [vmem:[%s6912_s6 + $0x318] sm:$0xff]  ;;  %v3120_v59 = vld [vmem:[%s6909_s3 + $0x920] sm:$0xff] }
 0x215   : > { %v4015_v60 = vpack.c.bf16 %v3247_v54, %v3245_v53  ;;  %v3146_v52 = vld [vmem:[%s6909_s3 + $0x9f0] sm:$0xff]  ;;  %v3149_v53 = vld [vmem:[%s6909_s3 + $0xa08] sm:$0xff]  ;;  %v3151_v54 = vld [vmem:[%s6909_s3 + $0xa18] sm:$0xff] }
 0x216   : > { %3998 = vmatpush1.bf16.msra.mxu1 %v3997_v4  ;;  %v3125_v4 = vld [vmem:[%s6909_s3 + $0x948] sm:$0xff] }
 0x217   : > { %3854 = vmatpush1.bf16.msra.mxu0 %v3853_v3  ;;  %v3107_v3 = vld [vmem:[%s6909_s3 + $0x8b8] sm:$0xff]  ;;  %4000 = vmatprep.subr.bf16.mxu1 %v3999_v9  ;;  %v3893_v9 = vpack.c.bf16 %v3122_v0, %v3120_v59 }
 0x218   : > { %3856 = vmatprep.subr.bf16.mxu0 %v3855_v8  ;;  %v3104_v8 = vld [vmem:[%s6909_s3 + $0x8a0] sm:$0xff]  ;;  %v3875_v14 = vpack.c.bf16 %v3107_v3, %v3105_v2  ;;  %v3249_v2 = vld [vmem:[%s6912_s6 + $0x328] sm:$0xff]  ;;  %v3251_v3 = vld [vmem:[%s6912_s6 + $0x338] sm:$0xff] }
 0x219   : > { %v3877_v23 = vpack.c.bf16 %v3106_v21, %v3104_v8  ;;  %v4019_v12 = vpack.c.bf16 %v3251_v3, %v3249_v2  ;;  %v3250_v21 = vld [vmem:[%s6912_s6 + $0x330] sm:$0xff]  ;;  %v1879_v59 = vld [vmem:[#allocation3 + $0x38] sm:$0x3]  ;;  %v3153_v2 = vld [vmem:[%s6909_s3 + $0xa28] sm:$0xff] }
 0x21a   : > { %1866 = vmatmul.mubr.f32.vlgmr.msra.gmra.mrb[2].mxu0 %v1296_v32  ;;  %4002 = vmatpush1.bf16.msra.mxu1 %v4001_v22  ;;  %v3129_v22 = vld [vmem:[%s6909_s3 + $0x968] sm:$0xff]  ;;  %v3155_v3 = vld [vmem:[%s6909_s3 + $0xa38] sm:$0xff] }
 0x21b   : > { %3858 = vmatpush1.bf16.msra.mxu0 %v3857_v16  ;;  %2098 = vmatprep.mubr.f32.mxu0 %v2023_v24  ;;  %v3235_v16 = vld [vmem:[%s6912_s6 + $0x2b8] sm:$0xff]  ;;  %v3108_v24 = vld [vmem:[%s6909_s3 + $0x8c0] sm:$0xff] }
 0x21c   : > { %3860 = vmatprep.subr.bf16.mxu0 %v3859_v17  ;;  %v4003_v25 = vpack.c.bf16 %v3235_v16, %v3233_v15  ;;  %v3126_v16 = vld [vmem:[%s6909_s3 + $0x950] sm:$0xff] }
 0x21e   : > { %4004 = vmatprep.subr.bf16.mxu1 %v4003_v25  ;;  %v3897_v25 = vpack.c.bf16 %v3126_v16, %v3124_v10  ;;  %v3152_v10 = vld [vmem:[%s6909_s3 + $0xa20] sm:$0xff] }
 0x21f   : > { %3862 = vmatpush1.bf16.msra.mxu0 %v3861_v29  ;;  %v3237_v29 = vld [vmem:[%s6912_s6 + $0x2c8] sm:$0xff]  ;;  %4006 = vmatpush1.bf16.msra.mxu1 %v4005_v34  ;;  %v3132_v34 = vld [vmem:[%s6909_s3 + $0x980] sm:$0xff] }
 0x220   : > { %3864 = vmatprep.subr.bf16.mxu0 %v3863_v35  ;;  %v3881_v35 = vpack.c.bf16 %v3110_v28, %v3108_v24  ;;  %v4007_v37 = vpack.c.bf16 %v3239_v30, %v3237_v29  ;;  %v3130_v28 = vld [vmem:[%s6909_s3 + $0x970] sm:$0xff]  ;;  %v3133_v29 = vld [vmem:[%s6909_s3 + $0x988] sm:$0xff]  ;;  %v3135_v30 = vld [vmem:[%s6909_s3 + $0x998] sm:$0xff] }
 0x221   : > { %v3903_v33 = vpack.c.bf16 %v3135_v30, %v3133_v29  ;;  %v3165_v29 = vld [vmem:[%s6909_s3 + $0xa88] sm:$0xff]  ;;  %v3167_v30 = vld [vmem:[%s6909_s3 + $0xa98] sm:$0xff] }
 0x222   : > { %4008 = vmatprep.subr.bf16.mxu1 %v4007_v37  ;;  %v3139_v37 = vld [vmem:[%s6909_s3 + $0x9b8] sm:$0xff] }
 0x223   : > { %3866 = vmatpush1.bf16.msra.mxu0 %v3865_v1  ;;  %v3119_v1 = vld [vmem:[%s6909_s3 + $0x918] sm:$0xff]  ;;  %4010 = vmatpush1.bf16.msra.mxu1 %v4009_v43  ;;  %v3907_v39 = vpack.c.bf16 %v3139_v37, %v3137_v36  ;;  %v3140_v43 = vld [vmem:[%s6909_s3 + $0x9c0] sm:$0xff]  ;;  %v3169_v36 = vld [vmem:[%s6909_s3 + $0xaa8] sm:$0xff] }
 0x224   : > { %3868 = vmatprep.subr.bf16.mxu0 %v3867_v47  ;;  %v3240_v47 = vld [vmem:[%s6912_s6 + $0x2e0] sm:$0xff]  ;;  %v3887_v51 = vpack.c.bf16 %v3119_v1, %v3117_v42  ;;  %4012 = vmatprep.subr.bf16.mxu1 %v4011_v46  ;;  %v3911_v1 = vpack.c.bf16 %v3143_v41, %v3141_v40  ;;  %v3147_v46 = vld [vmem:[%s6909_s3 + $0x9f8] sm:$0xff]  ;;  %v3173_v40 = vld [vmem:[%s6909_s3 + $0xac8] sm:$0xff] }
 0x225   : > { %v4013_v57 = vpack.c.bf16 %v3242_v48, %v3240_v47  ;;  %v3915_v48 = vpack.c.bf16 %v3147_v46, %v3145_v45  ;;  %v3171_v37 = vld [vmem:[%s6909_s3 + $0xab8] sm:$0xff]  ;;  %v3177_v45 = vld [vmem:[%s6909_s3 + $0xae8] sm:$0xff] }
 0x226   : > { %v6041_v17 = vpop.f32.mrb[4].mxu1  ;;  %v3175_v41 = vld [vmem:[%s6909_s3 + $0xad8] sm:$0xff] }
 0x227   : > { %3870 = vmatpush1.bf16.msra.mxu0 %v3869_v56  ;;  %v6049_v32 = vpop.f32.mrb[5].mxu1  ;;  %v3123_v56 = vld [vmem:[%s6909_s3 + $0x938] sm:$0xff]  ;;  %4014 = vmatpush1.bf16.msra.mxu1 %v4013_v57 }
 0x228   : > { %3872 = vmatprep.subr.bf16.mxu0 %v3871_v61  ;;  %v3244_v61 = vld [vmem:[%s6912_s6 + $0x300] sm:$0xff]  ;;  %v3891_v63 = vpack.c.bf16 %v3123_v56, %v3121_v55  ;;  %4016 = vmatprep.subr.bf16.mxu1 %v4015_v60  ;;  %v3919_v60 = vpack.c.bf16 %v3151_v54, %v3149_v53  ;;  %v3179_v46 = vld [vmem:[%s6909_s3 + $0xaf8] sm:$0xff]  ;;  %v3181_v53 = vld [vmem:[%s6909_s3 + $0xb08] sm:$0xff] }
 0x229   : > { %v4017_v8 = vpack.c.bf16 %v3246_v62, %v3244_v61  ;;  %v1872_v55 = vld [vmem:[#allocation3] sm:$0xfc]  ;;  %v1876_v56 = vld [vmem:[#allocation3 + $0x20] sm:$0x3]  ;;  %v3150_v62 = vld [vmem:[%s6909_s3 + $0xa10] sm:$0xff] }
 0x22a   : > { %v3148_v61 = vld [vmem:[%s6909_s3 + $0xa00] sm:$0xff]  ;;  %v2019_v0 = vrot.slane %v1876_v56, 2  ;;  %v3183_v54 = vld [vmem:[%s6909_s3 + $0xb18] sm:$0xff] }
 0x22b   : > { %3874 = vmatpush1.bf16.msra.mxu0 %v3873_v6  ;;  %v3127_v6 = vld [vmem:[%s6909_s3 + $0x958] sm:$0xff]  ;;  %4018 = vmatpush1.bf16.msra.mxu1 %v4017_v8  ;;  %v3921_v8 = vpack.c.bf16 %v3150_v62, %v3148_v61  ;;  %v3951_v56 = vpack.c.bf16 %v3183_v54, %v3181_v53 }
 0x22c   : > { %3876 = vmatprep.subr.bf16.mxu0 %v3875_v14  ;;  %v3248_v14 = vld [vmem:[%s6912_s6 + $0x320] sm:$0xff]  ;;  %v3895_v15 = vpack.c.bf16 %v3127_v6, %v3125_v4  ;;  %4020 = vmatprep.subr.bf16.mxu1 %v4019_v12  ;;  %v2028_v6 = vrot.slane %v1879_v59, 2  ;;  %v3154_v12 = vld [vmem:[%s6909_s3 + $0xa30] sm:$0xff]  ;;  %v3185_v59 = vld [vmem:[%s6909_s3 + $0xb28] sm:$0xff] }
 0x22d   : > { %v4021_v24 = vpack.c.bf16 %v3250_v21, %v3248_v14  ;;  %v3157_v21 = vld [vmem:[%s6909_s3 + $0xa48] sm:$0xff]  ;;  %v3925_v18 = vpack.c.bf16 %v3154_v12, %v3152_v10  ;;  %v3195_v12 = vld [vmem:[%s6909_s3 + $0xb78] sm:$0xff] }
 0x22e   : > { %v3193_v10 = vld [vmem:[%s6909_s3 + $0xb68] sm:$0xff]  ;;  %v3259_v53 = vld [vmem:[%s6912_s6 + $0x378] sm:$0xff] }
 0x22f   : > { %3878 = vmatpush1.bf16.msra.mxu0 %v3877_v23  ;;  %v3131_v23 = vld [vmem:[%s6909_s3 + $0x978] sm:$0xff]  ;;  %4022 = vmatpush1.bf16.msra.mxu1 %v4021_v24  ;;  %v3161_v24 = vld [vmem:[%s6909_s3 + $0xa68] sm:$0xff] }
 0x230   : > { %3880 = vmatprep.subr.bf16.mxu0 %v3879_v49  ;;  %v3899_v27 = vpack.c.bf16 %v3131_v23, %v3129_v22  ;;  %v3128_v49 = vld [vmem:[%s6909_s3 + $0x960] sm:$0xff]  ;;  %4024 = vmatprep.subr.bf16.mxu1 %v4023_v26  ;;  %v3158_v23 = vld [vmem:[%s6909_s3 + $0xa50] sm:$0xff] }
 0x231   : > { %v3901_v31 = vpack.c.bf16 %v3130_v28, %v3128_v49  ;;  %v3156_v22 = vld [vmem:[%s6909_s3 + $0xa40] sm:$0xff]  ;;  %v3162_v28 = vld [vmem:[%s6909_s3 + $0xa70] sm:$0xff] }
 0x232   : > { %v3929_v26 = vpack.c.bf16 %v3158_v23, %v3156_v22  ;;  %v3160_v49 = vld [vmem:[%s6909_s3 + $0xa60] sm:$0xff] }
 0x233   : > { %3882 = vmatpush1.bf16.msra.mxu0 %v3881_v35  ;;  %v3134_v35 = vld [vmem:[%s6909_s3 + $0x990] sm:$0xff] }
 0x234   : > { %3884 = vmatprep.subr.bf16.mxu0 %v3883_v5  ;;  %v3905_v38 = vpack.c.bf16 %v3134_v35, %v3132_v34  ;;  %v3136_v5 = vld [vmem:[%s6909_s3 + $0x9a0] sm:$0xff]  ;;  %v3166_v35 = vld [vmem:[%s6909_s3 + $0xa90] sm:$0xff] }
 0x235   : > { %v3909_v42 = vpack.c.bf16 %v3138_v19, %v3136_v5  ;;  %v3164_v34 = vld [vmem:[%s6909_s3 + $0xa80] sm:$0xff]  ;;  %v3170_v19 = vld [vmem:[%s6909_s3 + $0xab0] sm:$0xff] }
 0x236   : > { %v3168_v5 = vld [vmem:[%s6909_s3 + $0xaa0] sm:$0xff] }
 0x237   : > { %3886 = vmatpush1.bf16.msra.mxu0 %v3885_v44  ;;  %v3142_v44 = vld [vmem:[%s6909_s3 + $0x9d0] sm:$0xff] }
 0x238   : > { %3888 = vmatprep.subr.bf16.mxu0 %v3887_v51  ;;  %v3913_v47 = vpack.c.bf16 %v3142_v44, %v3140_v43  ;;  %v3144_v51 = vld [vmem:[%s6909_s3 + $0x9e0] sm:$0xff]  ;;  %v3174_v44 = vld [vmem:[%s6909_s3 + $0xad0] sm:$0xff] }
 0x239   : > { %v3917_v57 = vpack.c.bf16 %v3146_v52, %v3144_v51  ;;  %v3172_v43 = vld [vmem:[%s6909_s3 + $0xac0] sm:$0xff]  ;;  %v3178_v52 = vld [vmem:[%s6909_s3 + $0xaf0] sm:$0xff] }
 0x23a   : > { %v3176_v51 = vld [vmem:[%s6909_s3 + $0xae0] sm:$0xff] }
 0x23b   : > { %3890 = vmatpush1.bf16.msra.mxu0 %v3889_v58  ;;  %v1875_v58 = vld [vmem:[#allocation3 + $0x18] sm:$0xfc] }
 0x23c   : > { %3892 = vmatprep.subr.bf16.mxu0 %v3891_v63  ;;  %v2018_v63 = vrot.slane %v1872_v55, 2  ;;  %v2027_v4 = vrot.slane %v1875_v58, 2  ;;  %v3949_v55 = vpack.c.bf16 %v3178_v52, %v3176_v51  ;;  %v3182_v58 = vld [vmem:[%s6909_s3 + $0xb10] sm:$0xff]  ;;  %v3257_v52 = vld [vmem:[%s6912_s6 + $0x368] sm:$0xff] }
 0x23d   : > { %v4027_v54 = vpack.c.bf16 %v3259_v53, %v3257_v52 }
 0x23e   : > { %v2020_v14 = vsel %vm2017_vm5, %v2018_v63, %v2019_v0  ;;  %v2029_v16 = vsel %vm2017_vm5, %v2027_v4, %v2028_v6  ;;  %v3184_v63 = vld [vmem:[%s6909_s3 + $0xb20] sm:$0xff]  ;;  %v3186_v0 = vld [vmem:[%s6909_s3 + $0xb30] sm:$0xff] }
 0x23f   : > { %3894 = vmatpush1.bf16.msra.mxu0 %v3893_v9  ;;  %v3923_v9 = vpack.c.bf16 %v3155_v3, %v3153_v2  ;;  %v3189_v2 = vld [vmem:[%s6909_s3 + $0xb48] sm:$0xff]  ;;  %v3191_v3 = vld [vmem:[%s6909_s3 + $0xb58] sm:$0xff]  ;;  %v3957_v4 = vpack.c.bf16 %v3186_v0, %v3184_v63 }
 0x240   : > { %3896 = vmatprep.subr.bf16.mxu0 %v3895_v15  ;;  %v3159_v15 = vld [vmem:[%s6909_s3 + $0xa58] sm:$0xff]  ;;  %v3959_v6 = vpack.c.bf16 %v3191_v3, %v3189_v2  ;;  %v3265_v0 = vld [vmem:[%s6912_s6 + $0x3a8] sm:$0xff] }
 0x241   : > { %v3927_v20 = vpack.c.bf16 %v3159_v15, %v3157_v21  ;;  %v3963_v21 = vpack.c.bf16 %v3195_v12, %v3193_v10  ;;  %v3192_v15 = vld [vmem:[%s6909_s3 + $0xb60] sm:$0xff]  ;;  %v3267_v2 = vld [vmem:[%s6912_s6 + $0x3b8] sm:$0xff] }
 0x242   : > { %v4035_v3 = vpack.c.bf16 %v3267_v2, %v3265_v0  ;;  %v3271_v10 = vld [vmem:[%s6912_s6 + $0x3d8] sm:$0xff]  ;;  %v3268_v12 = vld [vmem:[%s6912_s6 + $0x3c0] sm:$0xff]  ;;  %v2237_v2 = vld [vmem:[%s6912_s6 + $0x50] sm:$0xff] }
 0x243   : > { %3898 = vmatpush1.bf16.msra.mxu0 %v3897_v25  ;;  %v3163_v25 = vld [vmem:[%s6909_s3 + $0xa78] sm:$0xff]  ;;  %v2235_v0 = vld [vmem:[%s6912_s6 + $0x40] sm:$0xff] }
 0x244   : > { %3900 = vmatprep.subr.bf16.mxu0 %v3899_v27  ;;  %v3931_v27 = vpack.c.bf16 %v3163_v25, %v3161_v24  ;;  %v3196_v24 = vld [vmem:[%s6909_s3 + $0xb80] sm:$0xff]  ;;  %v3198_v25 = vld [vmem:[%s6909_s3 + $0xb90] sm:$0xff] }
 0x247   : > { %3902 = vmatpush1.bf16.msra.mxu0 %v3901_v31  ;;  %v3933_v31 = vpack.c.bf16 %v3162_v28, %v3160_v49  ;;  %v3969_v49 = vpack.c.bf16 %v3198_v25, %v3196_v24  ;;  %v2230_v24 = vld [vmem:[%s6912_s6 + $0x18] sm:$0xff] }
 0x248   : > { %3904 = vmatprep.subr.bf16.mxu0 %v3903_v33  ;;  %v3935_v33 = vpack.c.bf16 %v3167_v30, %v3165_v29  ;;  %v3200_v29 = vld [vmem:[%s6909_s3 + $0xba0] sm:$0xff]  ;;  %v3202_v30 = vld [vmem:[%s6909_s3 + $0xbb0] sm:$0xff]  ;;  %v4047_v25 = vpack.c.bf16 %v2230_v24, %v2228_v7 }
 0x249   : > { %v2247_v7 = vld [vmem:[%s6912_s6 + $0xa0] sm:$0xff]  ;;  %v2249_v24 = vld [vmem:[%s6912_s6 + $0xb0] sm:$0xff] }
 0x24b   : > { %3906 = vmatpush1.bf16.msra.mxu0 %v3905_v38  ;;  %v3937_v38 = vpack.c.bf16 %v3166_v35, %v3164_v34  ;;  %v3973_v34 = vpack.c.bf16 %v3202_v30, %v3200_v29 }
 0x24c   : > { %3908 = vmatprep.subr.bf16.mxu0 %v3907_v39  ;;  %v3939_v39 = vpack.c.bf16 %v3171_v37, %v3169_v36  ;;  %v3204_v36 = vld [vmem:[%s6909_s3 + $0xbc0] sm:$0xff]  ;;  %v3206_v37 = vld [vmem:[%s6909_s3 + $0xbd0] sm:$0xff] }
 0x24f   : > { %3910 = vmatpush1.bf16.msra.mxu0 %v3909_v42  ;;  %v3941_v42 = vpack.c.bf16 %v3170_v19, %v3168_v5  ;;  %v3977_v5 = vpack.c.bf16 %v3206_v37, %v3204_v36 }
 0x250   : > { %3912 = vmatprep.subr.bf16.mxu0 %v3911_v1  ;;  %v3943_v1 = vpack.c.bf16 %v3175_v41, %v3173_v40  ;;  %v3208_v40 = vld [vmem:[%s6909_s3 + $0xbe0] sm:$0xff]  ;;  %v3210_v41 = vld [vmem:[%s6909_s3 + $0xbf0] sm:$0xff] }
 0x253   : > { %3914 = vmatpush1.bf16.msra.mxu0 %v3913_v47  ;;  %v3945_v47 = vpack.c.bf16 %v3174_v44, %v3172_v43  ;;  %v3981_v43 = vpack.c.bf16 %v3210_v41, %v3208_v40 }
 0x254   : > { %3916 = vmatprep.subr.bf16.mxu0 %v3915_v48  ;;  %v3947_v48 = vpack.c.bf16 %v3179_v46, %v3177_v45 }
 0x257   : > { %3918 = vmatpush1.bf16.msra.mxu0 %v3917_v57  ;;  %v3180_v57 = vld [vmem:[%s6909_s3 + $0xb00] sm:$0xff] }
 0x258   : > { %3920 = vmatprep.subr.bf16.mxu0 %v3919_v60  ;;  %v3187_v60 = vld [vmem:[%s6909_s3 + $0xb38] sm:$0xff]  ;;  %v3953_v61 = vpack.c.bf16 %v3182_v58, %v3180_v57  ;;  %v3261_v58 = vld [vmem:[%s6912_s6 + $0x388] sm:$0xff] }
 0x259   : > { %v3955_v62 = vpack.c.bf16 %v3187_v60, %v3185_v59  ;;  %v3263_v59 = vld [vmem:[%s6912_s6 + $0x398] sm:$0xff] }
 0x25a   : > { %2099 = vmatmul.mubr.f32.vlgmr.msra.gmra.mrb[2].mxu0 %v2020_v14  ;;  %v4031_v60 = vpack.c.bf16 %v3263_v59, %v3261_v58  ;;  %v2236_v59 = vld [vmem:[%s6912_s6 + $0x48] sm:$0xff] }
 0x25b   : > { %3922 = vmatpush1.bf16.msra.mxu0 %v3921_v8  ;;  %2169 = vmatprep.mubr.f32.mxu0 %v2029_v16  ;;  %v3188_v8 = vld [vmem:[%s6909_s3 + $0xb40] sm:$0xff]  ;;  %v3194_v16 = vld [vmem:[%s6909_s3 + $0xb70] sm:$0xff] }
 0x25c   : > { %3924 = vmatprep.subr.bf16.mxu0 %v3923_v9  ;;  %v3190_v9 = vld [vmem:[%s6909_s3 + $0xb50] sm:$0xff]  ;;  %v3965_v22 = vpack.c.bf16 %v3194_v16, %v3192_v15  ;;  %v3273_v15 = vld [vmem:[%s6912_s6 + $0x3e8] sm:$0xff]  ;;  %v3275_v16 = vld [vmem:[%s6912_s6 + $0x3f8] sm:$0xff] }
 0x25d   : > { %v3961_v14 = vpack.c.bf16 %v3190_v9, %v3188_v8  ;;  %v3269_v8 = vld [vmem:[%s6912_s6 + $0x3c8] sm:$0xff] }
 0x25f   : > { %3926 = vmatpush1.bf16.msra.mxu0 %v3925_v18  ;;  %v3197_v18 = vld [vmem:[%s6909_s3 + $0xb88] sm:$0xff] }
 0x260   : > { %3928 = vmatprep.subr.bf16.mxu0 %v3927_v20  ;;  %v3199_v20 = vld [vmem:[%s6909_s3 + $0xb98] sm:$0xff] }
 0x261   : > { %v3967_v23 = vpack.c.bf16 %v3199_v20, %v3197_v18  ;;  %v4043_v20 = vpack.c.bf16 %v3275_v16, %v3273_v15  ;;  %v2243_v16 = vld [vmem:[%s6912_s6 + $0x80] sm:$0xff] }
 0x263   : > { %3930 = vmatpush1.bf16.msra.mxu0 %v3929_v26  ;;  %v3201_v26 = vld [vmem:[%s6909_s3 + $0xba8] sm:$0xff] }
 0x264   : > { %3932 = vmatprep.subr.bf16.mxu0 %v3931_v27  ;;  %v3203_v27 = vld [vmem:[%s6909_s3 + $0xbb8] sm:$0xff] }
 0x265   : > { %v3971_v28 = vpack.c.bf16 %v3203_v27, %v3201_v26  ;;  %v2178_v26 = vld [vmem:[%s6910_s4] sm:$0x3] }
 0x266   : > { %v2192_v27 = vld [vmem:[%s6911_s5] sm:$0x3]  ;;  %v2187_v29 = vrot.slane %v2178_v26, %v5514_v13 }
 0x267   : > { %3934 = vmatpush1.bf16.msra.mxu0 %v3933_v31  ;;  %v3205_v31 = vld [vmem:[%s6909_s3 + $0xbc8] sm:$0xff] }
 0x268   : > { %3936 = vmatprep.subr.bf16.mxu0 %v3935_v33  ;;  %v3207_v33 = vld [vmem:[%s6909_s3 + $0xbd8] sm:$0xff] }
 0x269   : > { %v3975_v35 = vpack.c.bf16 %v3207_v33, %v3205_v31  ;;  %v2197_v31 = vrot.slane %v2192_v27, %v5508_v11 }
 0x26b   : > { %3938 = vmatpush1.bf16.msra.mxu0 %v3937_v38  ;;  %v3209_v38 = vld [vmem:[%s6909_s3 + $0xbe8] sm:$0xff] }
 0x26c   : > { %3940 = vmatprep.subr.bf16.mxu0 %v3939_v39  ;;  %v3211_v39 = vld [vmem:[%s6909_s3 + $0xbf8] sm:$0xff] }
 0x26d   : > { %v3979_v19 = vpack.c.bf16 %v3211_v39, %v3209_v38 }
 0x26f   : > { %3942 = vmatpush1.bf16.msra.mxu0 %v3941_v42  ;;  %v1874_v42 = vld [vmem:[#allocation3 + $0x10] sm:$0xfc] }
 0x270   : > { %3944 = vmatprep.subr.bf16.mxu0 %v3943_v1  ;;  %v1878_v1 = vld [vmem:[#allocation3 + $0x30] sm:$0x3]  ;;  %v2024_v44 = vrot.slane %v1874_v42, 2  ;;  %v2232_v42 = vld [vmem:[%s6912_s6 + $0x28] sm:$0xff] }
 0x271   : > { %v2025_v45 = vrot.slane %v1878_v1, 2 }
 0x273   : > { %3946 = vmatpush1.bf16.msra.mxu0 %v3945_v47  ;;  %v2026_v46 = vsel %vm2017_vm5, %v2024_v44, %v2025_v45  ;;  %v3252_v47 = vld [vmem:[%s6912_s6 + $0x340] sm:$0xff]  ;;  %v2234_v44 = vld [vmem:[%s6912_s6 + $0x38] sm:$0xff] }
 0x274   : > { %3948 = vmatprep.subr.bf16.mxu0 %v3947_v48  ;;  %v3254_v48 = vld [vmem:[%s6912_s6 + $0x350] sm:$0xff] }
 0x275   : > { %v4025_v51 = vpack.c.bf16 %v3254_v48, %v3252_v47 }
 0x277   : > { %3950 = vmatpush1.bf16.msra.mxu0 %v3949_v55  ;;  %4026 = vmatpush1.bf16.msra.mxu1 %v4025_v51  ;;  %v3256_v55 = vld [vmem:[%s6912_s6 + $0x360] sm:$0xff] }
 0x278   : > { %3952 = vmatprep.subr.bf16.mxu0 %v3951_v56  ;;  %v3258_v56 = vld [vmem:[%s6912_s6 + $0x370] sm:$0xff]  ;;  %4028 = vmatprep.subr.bf16.mxu1 %v4027_v54 }
 0x279   : > { %v4029_v57 = vpack.c.bf16 %v3258_v56, %v3256_v55  ;;  %v4051_v55 = vpack.c.bf16 %v2234_v44, %v2232_v42  ;;  %v2231_v56 = vld [vmem:[%s6912_s6 + $0x20] sm:$0xff]  ;;  %v2268_v44 = vld [vmem:[%s6912_s6 + $0x148] sm:$0xff] }
 0x27b   : > { %3954 = vmatpush1.bf16.msra.mxu0 %v3953_v61  ;;  %4030 = vmatpush1.bf16.msra.mxu1 %v4029_v57  ;;  %v3260_v61 = vld [vmem:[%s6912_s6 + $0x380] sm:$0xff]  ;;  %v2233_v57 = vld [vmem:[%s6912_s6 + $0x30] sm:$0xff] }
 0x27c   : > { %3956 = vmatprep.subr.bf16.mxu0 %v3955_v62  ;;  %v3262_v62 = vld [vmem:[%s6912_s6 + $0x390] sm:$0xff]  ;;  %4032 = vmatprep.subr.bf16.mxu1 %v4031_v60  ;;  %v2238_v60 = vld [vmem:[%s6912_s6 + $0x58] sm:$0xff] }
 0x27d   : > { %v4033_v63 = vpack.c.bf16 %v3262_v62, %v3260_v61  ;;  %v4053_v62 = vpack.c.bf16 %v2233_v57, %v2231_v56  ;;  %v2271_v56 = vld [vmem:[%s6912_s6 + $0x160] sm:$0xff]  ;;  %v2273_v57 = vld [vmem:[%s6912_s6 + $0x170] sm:$0xff] }
 0x27f   : > { %3958 = vmatpush1.bf16.msra.mxu0 %v3957_v4  ;;  %4034 = vmatpush1.bf16.msra.mxu1 %v4033_v63  ;;  %v3264_v4 = vld [vmem:[%s6912_s6 + $0x3a0] sm:$0xff]  ;;  %v4055_v63 = vpack.c.bf16 %v2238_v60, %v2236_v59  ;;  %v2278_v59 = vld [vmem:[%s6912_s6 + $0x198] sm:$0xff]  ;;  %v4093_v60 = vpack.c.bf16 %v2273_v57, %v2271_v56  ;;  %v3297_v56 = vld [vmem:[%s6912_s6 + $0x4a8] sm:$0xff] }
 0x280   : > { %3960 = vmatprep.subr.bf16.mxu0 %v3959_v6  ;;  %v3266_v6 = vld [vmem:[%s6912_s6 + $0x3b0] sm:$0xff]  ;;  %4036 = vmatprep.subr.bf16.mxu1 %v4035_v3  ;;  %v2240_v3 = vld [vmem:[%s6912_s6 + $0x68] sm:$0xff]  ;;  %v3299_v57 = vld [vmem:[%s6912_s6 + $0x4b8] sm:$0xff] }
 0x281   : > { %v4037_v9 = vpack.c.bf16 %v3266_v6, %v3264_v4  ;;  %v2242_v4 = vld [vmem:[%s6912_s6 + $0x78] sm:$0xff]  ;;  %v4057_v6 = vpack.c.bf16 %v2237_v2, %v2235_v0  ;;  %v2280_v0 = vld [vmem:[%s6912_s6 + $0x1a8] sm:$0xff] }
 0x282   : > { %v2282_v2 = vld [vmem:[%s6912_s6 + $0x1b8] sm:$0xff] }
 0x283   : > { %3962 = vmatpush1.bf16.msra.mxu0 %v3961_v14  ;;  %v3270_v14 = vld [vmem:[%s6912_s6 + $0x3d0] sm:$0xff]  ;;  %4038 = vmatpush1.bf16.msra.mxu1 %v4037_v9  ;;  %v2239_v9 = vld [vmem:[%s6912_s6 + $0x60] sm:$0xff] }
 0x284   : > { %3964 = vmatprep.subr.bf16.mxu0 %v3963_v21  ;;  %v4039_v21 = vpack.c.bf16 %v3271_v10, %v3269_v8  ;;  %v4041_v18 = vpack.c.bf16 %v3270_v14, %v3268_v12  ;;  %v4059_v8 = vpack.c.bf16 %v2242_v4, %v2240_v3  ;;  %v2241_v10 = vld [vmem:[%s6912_s6 + $0x70] sm:$0xff]  ;;  %v2244_v12 = vld [vmem:[%s6912_s6 + $0x88] sm:$0xff]  ;;  %v2246_v14 = vld [vmem:[%s6912_s6 + $0x98] sm:$0xff]  ;;  %v4099_v4 = vpack.c.bf16 %v2282_v2, %v2280_v0 }
 0x285   : > { %v4063_v15 = vpack.c.bf16 %v2246_v14, %v2244_v12 }
 0x286   : > { %4040 = vmatprep.subr.bf16.mxu1 %v4039_v21  ;;  %v4061_v21 = vpack.c.bf16 %v2241_v10, %v2239_v9  ;;  %v2284_v9 = vld [vmem:[%s6912_s6 + $0x1c8] sm:$0xff]  ;;  %v2286_v10 = vld [vmem:[%s6912_s6 + $0x1d8] sm:$0xff] }
 0x287   : > { %3966 = vmatpush1.bf16.msra.mxu0 %v3965_v22  ;;  %v3274_v22 = vld [vmem:[%s6912_s6 + $0x3f0] sm:$0xff]  ;;  %4042 = vmatpush1.bf16.msra.mxu1 %v4041_v18  ;;  %v4103_v14 = vpack.c.bf16 %v2286_v10, %v2284_v9 }
 0x288   : > { %3968 = vmatprep.subr.bf16.mxu0 %v3967_v23  ;;  %v4045_v23 = vpack.c.bf16 %v3274_v22, %v3272_v50  ;;  %4044 = vmatprep.subr.bf16.mxu1 %v4043_v20  ;;  %v2245_v18 = vld [vmem:[%s6912_s6 + $0x90] sm:$0xff]  ;;  %v2248_v20 = vld [vmem:[%s6912_s6 + $0xa8] sm:$0xff]  ;;  %v2250_v50 = vld [vmem:[%s6912_s6 + $0xb8] sm:$0xff] }
 0x289   : > { %v4065_v22 = vpack.c.bf16 %v2245_v18, %v2243_v16  ;;  %v2288_v16 = vld [vmem:[%s6912_s6 + $0x1e8] sm:$0xff]  ;;  %v2290_v18 = vld [vmem:[%s6912_s6 + $0x1f8] sm:$0xff] }
 0x28b   : > { %3970 = vmatpush1.bf16.msra.mxu0 %v3969_v49  ;;  %4046 = vmatpush1.bf16.msra.mxu1 %v4045_v23  ;;  %v2183_v49 = vrot.slane %v2178_v26, %v5508_v11  ;;  %v4067_v23 = vpack.c.bf16 %v2250_v50, %v2248_v20  ;;  %v2254_v26 = vld [vmem:[%s6912_s6 + $0xd8] sm:$0xff]  ;;  %v4107_v50 = vpack.c.bf16 %v2290_v18, %v2288_v16 }
 0x28c   : > { %3972 = vmatprep.subr.bf16.mxu0 %v3971_v28  ;;  %4048 = vmatprep.subr.bf16.mxu1 %v4047_v25  ;;  %v2252_v25 = vld [vmem:[%s6912_s6 + $0xc8] sm:$0xff] }
 0x28f   : > { %3974 = vmatpush1.bf16.msra.mxu0 %v3973_v34 }
 0x290   : > { %3976 = vmatprep.subr.bf16.mxu0 %v3975_v35  ;;  %v2201_v35 = vrot.slane %v2192_v27, %v5514_v13  ;;  %v4069_v27 = vpack.c.bf16 %v2249_v24, %v2247_v7  ;;  %v3277_v7 = vld [vmem:[%s6912_s6 + $0x408] sm:$0xff]  ;;  %v3279_v24 = vld [vmem:[%s6912_s6 + $0x418] sm:$0xff] }
 0x293   : > { %3978 = vmatpush1.bf16.msra.mxu0 %v3977_v5 }
 0x294   : > { %3980 = vmatprep.subr.bf16.mxu0 %v3979_v19 }
 0x297   : > { %3982 = vmatpush1.bf16.msra.mxu0 %v3981_v43 }
 0x29a   : > { %2170 = vmatmul.mubr.f32.vlgmr.msra.gmra.mrb[2].mxu0 %v2026_v46 }
 0x36d   : > { %v2171_v28 = vpop.f32.mrb[2].mxu0 }
 0x36e   : > { %v4177_v30 = vadd.f32 %v2171_v28, %v6041_v17  ;;  %v2173_v33 = vpop.f32.mrb[3].mxu0  ;;  %v2227_v17 = vld [vmem:[%s6912_s6] sm:$0xff] }
 0x36f   : > { %v4178_v34 = vadd.f32 %v2173_v33, %v6049_v32  ;;  %v2229_v32 = vld [vmem:[%s6912_s6 + $0x10] sm:$0xff]  ;;  %v2251_v28 = vld [vmem:[%s6912_s6 + $0xc0] sm:$0xff] }
 0x370   : > { %v2190_v36 = vmul.f32 %v4177_v30, %v2183_v49  ;;  %v4049_v53 = vpack.c.bf16 %v2229_v32, %v2227_v17  ;;  %v4071_v49 = vpack.c.bf16 %v2254_v26, %v2252_v25  ;;  %v2256_v30 = vld [vmem:[%s6912_s6 + $0xe8] sm:$0xff]  ;;  %v2266_v17 = vld [vmem:[%s6912_s6 + $0x138] sm:$0xff] }
 0x371   : > { %v2191_v37 = vmul.f32 %v4178_v34, %v2187_v29  ;;  %v2253_v29 = vld [vmem:[%s6912_s6 + $0xd0] sm:$0xff] }
 0x372   : > { %v2204_v38 = vadd.f32 %v2197_v31, %v2190_v36  ;;  %v2258_v31 = vld [vmem:[%s6912_s6 + $0xf8] sm:$0xff]  ;;  %v4073_v33 = vpack.c.bf16 %v2253_v29, %v2251_v28  ;;  %v2257_v36 = vld [vmem:[%s6912_s6 + $0xf0] sm:$0xff]  ;;  %v3276_v28 = vld [vmem:[%s6912_s6 + $0x400] sm:$0xff] }
 0x373   : > { %v2205_v39 = vadd.f32 %v2201_v35, %v2191_v37  ;;  %v4075_v34 = vpack.c.bf16 %v2258_v31, %v2256_v30  ;;  %v2255_v35 = vld [vmem:[%s6912_s6 + $0xe0] sm:$0xff]  ;;  %v2260_v37 = vld [vmem:[%s6912_s6 + $0x108] sm:$0xff]  ;;  %v3278_v29 = vld [vmem:[%s6912_s6 + $0x410] sm:$0xff] }
 0x374   : > { %v2206_v5 = vmax.f32 %v2204_v38, 0.0  ;;  %v2262_v38 = vld [vmem:[%s6912_s6 + $0x118] sm:$0xff]  ;;  %v3281_v30 = vld [vmem:[%s6912_s6 + $0x428] sm:$0xff] }
 0x375   : > { %v2207_v19 = vmax.f32 %v2205_v39, 0.0  ;;  %v4077_v39 = vpack.c.bf16 %v2257_v36, %v2255_v35  ;;  %v3283_v31 = vld [vmem:[%s6912_s6 + $0x438] sm:$0xff]  ;;  %v4113_v35 = vpack.c.bf16 %v3278_v29, %v3276_v28 }
 0x376   : > { %v2217_v40 = vrot.slane %v2206_v5, 7  ;;  %v4079_v5 = vpack.c.bf16 %v2262_v38, %v2260_v37  ;;  %v4115_v36 = vpack.c.bf16 %v3283_v31, %v3281_v30  ;;  %v3280_v37 = vld [vmem:[%s6912_s6 + $0x420] sm:$0xff]  ;;  %v3282_v38 = vld [vmem:[%s6912_s6 + $0x430] sm:$0xff] }
 0x377   : > { %v2218_v41 = vrot.slane %v2207_v19, 7  ;;  %v2259_v19 = vld [vmem:[%s6912_s6 + $0x100] sm:$0xff]  ;;  %v3318_v31 = vld [vmem:[%s6912_s6 + $0x550] sm:$0xff] }
 0x378   : > { %2221 = vst [vmem:[#allocation4] sm:$0xfe] %v2217_v40  ;;  %2223 = vst [vmem:[#allocation4 + $0x10] sm:$0x1] %v2217_v40  ;;  %v2261_v40 = vld [vmem:[%s6912_s6 + $0x110] sm:$0xff]  ;;  %v3316_v30 = vld [vmem:[%s6912_s6 + $0x540] sm:$0xff] }
 0x379   : > { %2222 = vst [vmem:[#allocation4 + $0x8] sm:$0xfe] %v2218_v41  ;;  %2224 = vst [vmem:[#allocation4 + $0x18] sm:$0x1] %v2218_v41  ;;  %v2264_v41 = vld [vmem:[%s6912_s6 + $0x128] sm:$0xff]  ;;  %v4081_v32 = vpack.c.bf16 %v2261_v40, %v2259_v19  ;;  %v3287_v19 = vld [vmem:[%s6912_s6 + $0x458] sm:$0xff] }
 0x37a   : > { %v4083_v42 = vpack.c.bf16 %v2266_v17, %v2264_v41  ;;  %v4117_v41 = vpack.c.bf16 %v3282_v38, %v3280_v37  ;;  %v3320_v37 = vld [vmem:[%s6912_s6 + $0x560] sm:$0xff]  ;;  %v3322_v38 = vld [vmem:[%s6912_s6 + $0x570] sm:$0xff] }
 0x37f   : > { %v2291_v1 = vld [vmem:[#allocation4] sm:$0xfe]  ;;  %v2293_v43 = vld [vmem:[#allocation4 + $0x10] sm:$0x1] }
 0x380   : > { %v2292_v45 = vld [vmem:[#allocation4 + $0x8] sm:$0xfe]  ;;  %v2294_v46 = vld [vmem:[#allocation4 + $0x18] sm:$0x1]  ;;  %v2364_v47 = vrot.slane %v2291_v1, 1  ;;  %v2365_v48 = vrot.slane %v2293_v43, 1 }
 0x381   : > { %v2367_v51 = vrot.slane %v2292_v45, 1  ;;  %v2368_v52 = vrot.slane %v2294_v46, 1  ;;  %v2226_v61 = vld [vmem:[#allocation4 + $0x8] sm:$0xff]  ;;  %v2263_v1 = vld [vmem:[%s6912_s6 + $0x120] sm:$0xff]  ;;  %v2265_v43 = vld [vmem:[%s6912_s6 + $0x130] sm:$0xff] }
 0x382   : > { %v2366_v58 = vsel %vm1571_vm4, %v2364_v47, %v2365_v48  ;;  %v2270_v45 = vld [vmem:[%s6912_s6 + $0x158] sm:$0xff]  ;;  %v4085_v46 = vpack.c.bf16 %v2265_v43, %v2263_v1  ;;  %v2267_v48 = vld [vmem:[%s6912_s6 + $0x140] sm:$0xff]  ;;  %v2515_v26 = vld [vmem:[#allocation4 + $0x8] sm:$0xfc] }
 0x383   : > { %v2369_v54 = vsel %vm1571_vm4, %v2367_v51, %v2368_v52  ;;  %v4087_v47 = vpack.c.bf16 %v2270_v45, %v2268_v44  ;;  %v2269_v51 = vld [vmem:[%s6912_s6 + $0x150] sm:$0xff]  ;;  %v2272_v52 = vld [vmem:[%s6912_s6 + $0x168] sm:$0xff]  ;;  %v3291_v43 = vld [vmem:[%s6912_s6 + $0x478] sm:$0xff] }
 0x384   : > { %2436 = vmatprep.mubr.f32.mxu1 %v2369_v54  ;;  %v4089_v54 = vpack.c.bf16 %v2269_v51, %v2267_v48  ;;  %v3289_v1 = vld [vmem:[%s6912_s6 + $0x468] sm:$0xff]  ;;  %v3295_v51 = vld [vmem:[%s6912_s6 + $0x498] sm:$0xff] }
 0x385   : > { %2437 = vmatmul.mubr.f32.vlgmr.msra.gmra.mrb[6].mxu1 %v2366_v58  ;;  %v2276_v58 = vld [vmem:[%s6912_s6 + $0x188] sm:$0xff]  ;;  %v4123_v45 = vpack.c.bf16 %v3291_v43, %v3289_v1 }
 0x386   : > { %4050 = vmatpush1.bf16.msra.mxu1 %v4049_v53  ;;  %2507 = vmatprep.mubr.f32.mxu1 %v2226_v61  ;;  %v2274_v53 = vld [vmem:[%s6912_s6 + $0x178] sm:$0xff]  ;;  %v4095_v61 = vpack.c.bf16 %v2278_v59, %v2276_v58  ;;  %v3293_v48 = vld [vmem:[%s6912_s6 + $0x488] sm:$0xff]  ;;  %v4131_v59 = vpack.c.bf16 %v3299_v57, %v3297_v56 }
 0x387   : > { %4052 = vmatprep.subr.bf16.mxu1 %v4051_v55  ;;  %v4091_v55 = vpack.c.bf16 %v2274_v53, %v2272_v52  ;;  %v4127_v53 = vpack.c.bf16 %v3295_v51, %v3293_v48 }
 0x38a   : > { %4054 = vmatpush1.bf16.msra.mxu1 %v4053_v62  ;;  %v2275_v62 = vld [vmem:[%s6912_s6 + $0x180] sm:$0xff] }
 0x38b   : > { %4056 = vmatprep.subr.bf16.mxu1 %v4055_v63  ;;  %v2277_v63 = vld [vmem:[%s6912_s6 + $0x190] sm:$0xff] }
 0x38c   : > { %v4097_v3 = vpack.c.bf16 %v2277_v63, %v2275_v62  ;;  %v3301_v62 = vld [vmem:[%s6912_s6 + $0x4c8] sm:$0xff]  ;;  %v3303_v63 = vld [vmem:[%s6912_s6 + $0x4d8] sm:$0xff] }
 0x38d   : > { %v4135_v2 = vpack.c.bf16 %v3303_v63, %v3301_v62 }
 0x38e   : > { %4058 = vmatpush1.bf16.msra.mxu1 %v4057_v6  ;;  %v2279_v6 = vld [vmem:[%s6912_s6 + $0x1a0] sm:$0xff] }
 0x38f   : > { %4060 = vmatprep.subr.bf16.mxu1 %v4059_v8  ;;  %v2281_v8 = vld [vmem:[%s6912_s6 + $0x1b0] sm:$0xff] }
 0x390   : > { %v4101_v12 = vpack.c.bf16 %v2281_v8, %v2279_v6  ;;  %v3305_v6 = vld [vmem:[%s6912_s6 + $0x4e8] sm:$0xff]  ;;  %v3307_v8 = vld [vmem:[%s6912_s6 + $0x4f8] sm:$0xff] }
 0x391   : > { %v4139_v10 = vpack.c.bf16 %v3307_v8, %v3305_v6 }
 0x392   : > { %4062 = vmatpush1.bf16.msra.mxu1 %v4061_v21  ;;  %v2283_v21 = vld [vmem:[%s6912_s6 + $0x1c0] sm:$0xff] }
 0x393   : > { %4064 = vmatprep.subr.bf16.mxu1 %v4063_v15  ;;  %v2285_v15 = vld [vmem:[%s6912_s6 + $0x1d0] sm:$0xff] }
 0x394   : > { %v4105_v20 = vpack.c.bf16 %v2285_v15, %v2283_v21  ;;  %v3309_v21 = vld [vmem:[%s6912_s6 + $0x508] sm:$0xff]  ;;  %v3311_v15 = vld [vmem:[%s6912_s6 + $0x518] sm:$0xff] }
 0x395   : > { %v4143_v18 = vpack.c.bf16 %v3311_v15, %v3309_v21 }
 0x396   : > { %4066 = vmatpush1.bf16.msra.mxu1 %v4065_v22  ;;  %v2287_v22 = vld [vmem:[%s6912_s6 + $0x1e0] sm:$0xff] }
 0x397   : > { %4068 = vmatprep.subr.bf16.mxu1 %v4067_v23  ;;  %v2289_v23 = vld [vmem:[%s6912_s6 + $0x1f0] sm:$0xff] }
 0x398   : > { %v4109_v25 = vpack.c.bf16 %v2289_v23, %v2287_v22  ;;  %v3313_v22 = vld [vmem:[%s6912_s6 + $0x528] sm:$0xff]  ;;  %v3315_v23 = vld [vmem:[%s6912_s6 + $0x538] sm:$0xff] }
 0x39a   : > { %4070 = vmatpush1.bf16.msra.mxu1 %v4069_v27  ;;  %v2517_v27 = vld [vmem:[#allocation4 + $0x18] sm:$0x3] }
 0x39b   : > { %4072 = vmatprep.subr.bf16.mxu1 %v4071_v49  ;;  %v4111_v49 = vpack.c.bf16 %v3279_v24, %v3277_v7  ;;  %v4147_v24 = vpack.c.bf16 %v3315_v23, %v3313_v22 }
 0x39e   : > { %4074 = vmatpush1.bf16.msra.mxu1 %v4073_v33  ;;  %v2590_v33 = vrot.slane %v2515_v26, 2  ;;  %v3314_v26 = vld [vmem:[%s6912_s6 + $0x530] sm:$0xff] }
 0x39f   : > { %4076 = vmatprep.subr.bf16.mxu1 %v4075_v34  ;;  %v2591_v34 = vrot.slane %v2517_v27, 2  ;;  %v3317_v27 = vld [vmem:[%s6912_s6 + $0x548] sm:$0xff] }
 0x3a1   : > { %v2592_v40 = vsel %vm2017_vm5, %v2590_v33, %v2591_v34  ;;  %v3321_v33 = vld [vmem:[%s6912_s6 + $0x568] sm:$0xff]  ;;  %v3323_v34 = vld [vmem:[%s6912_s6 + $0x578] sm:$0xff] }
 0x3a2   : > { %4078 = vmatpush1.bf16.msra.mxu1 %v4077_v39  ;;  %v2225_v39 = vld [vmem:[#allocation4] sm:$0xff] }
 0x3a3   : > { %4080 = vmatprep.subr.bf16.mxu1 %v4079_v5  ;;  %v3285_v5 = vld [vmem:[%s6912_s6 + $0x448] sm:$0xff] }
 0x3a4   : > { %v4119_v17 = vpack.c.bf16 %v3287_v19, %v3285_v5  ;;  %v3327_v5 = vld [vmem:[%s6912_s6 + $0x598] sm:$0xff]  ;;  %v4157_v19 = vpack.c.bf16 %v3322_v38, %v3320_v37 }
 0x3a6   : > { %4082 = vmatpush1.bf16.msra.mxu1 %v4081_v32  ;;  %v3284_v32 = vld [vmem:[%s6912_s6 + $0x440] sm:$0xff] }
 0x3a7   : > { %4084 = vmatprep.subr.bf16.mxu1 %v4083_v42  ;;  %v3286_v42 = vld [vmem:[%s6912_s6 + $0x450] sm:$0xff] }
 0x3a8   : > { %v4121_v44 = vpack.c.bf16 %v3286_v42, %v3284_v32  ;;  %v3329_v32 = vld [vmem:[%s6912_s6 + $0x5a8] sm:$0xff]  ;;  %v3331_v42 = vld [vmem:[%s6912_s6 + $0x5b8] sm:$0xff] }
 0x3a9   : > { %v4163_v43 = vpack.c.bf16 %v3331_v42, %v3329_v32 }
 0x3aa   : > { %4086 = vmatpush1.bf16.msra.mxu1 %v4085_v46  ;;  %v3288_v46 = vld [vmem:[%s6912_s6 + $0x460] sm:$0xff] }
 0x3ab   : > { %4088 = vmatprep.subr.bf16.mxu1 %v4087_v47  ;;  %v3290_v47 = vld [vmem:[%s6912_s6 + $0x470] sm:$0xff] }
 0x3ac   : > { %v4125_v52 = vpack.c.bf16 %v3290_v47, %v3288_v46  ;;  %v3333_v46 = vld [vmem:[%s6912_s6 + $0x5c8] sm:$0xff]  ;;  %v3335_v47 = vld [vmem:[%s6912_s6 + $0x5d8] sm:$0xff] }
 0x3ad   : > { %v4167_v51 = vpack.c.bf16 %v3335_v47, %v3333_v46 }
 0x3ae   : > { %4090 = vmatpush1.bf16.msra.mxu1 %v4089_v54  ;;  %v3292_v54 = vld [vmem:[%s6912_s6 + $0x480] sm:$0xff] }
 0x3af   : > { %4092 = vmatprep.subr.bf16.mxu1 %v4091_v55  ;;  %v3294_v55 = vld [vmem:[%s6912_s6 + $0x490] sm:$0xff] }
 0x3b0   : > { %v4129_v58 = vpack.c.bf16 %v3294_v55, %v3292_v54  ;;  %v3337_v54 = vld [vmem:[%s6912_s6 + $0x5e8] sm:$0xff]  ;;  %v3339_v55 = vld [vmem:[%s6912_s6 + $0x5f8] sm:$0xff] }
 0x3b1   : > { %v4171_v57 = vpack.c.bf16 %v3339_v55, %v3337_v54 }
 0x3b2   : > { %4094 = vmatpush1.bf16.msra.mxu1 %v4093_v60  ;;  %v3296_v60 = vld [vmem:[%s6912_s6 + $0x4a0] sm:$0xff] }
 0x3b3   : > { %4096 = vmatprep.subr.bf16.mxu1 %v4095_v61  ;;  %v3298_v61 = vld [vmem:[%s6912_s6 + $0x4b0] sm:$0xff] }
 0x3b4   : > { %v4133_v0 = vpack.c.bf16 %v3298_v61, %v3296_v60  ;;  %v2514_v60 = vld [vmem:[#allocation4] sm:$0xfc]  ;;  %v2516_v61 = vld [vmem:[#allocation4 + $0x10] sm:$0x3] }
 0x3b5   : > { %v2587_v63 = vrot.slane %v2514_v60, 2 }
 0x3b6   : > { %4098 = vmatpush1.bf16.msra.mxu1 %v4097_v3  ;;  %v3300_v3 = vld [vmem:[%s6912_s6 + $0x4c0] sm:$0xff] }
 0x3b7   : > { %4100 = vmatprep.subr.bf16.mxu1 %v4099_v4  ;;  %v3302_v4 = vld [vmem:[%s6912_s6 + $0x4d0] sm:$0xff] }
 0x3b8   : > { %v4137_v9 = vpack.c.bf16 %v3302_v4, %v3300_v3  ;;  %v2668_v3 = vld [vmem:[%s6913_s7] sm:$0x3] }
 0x3b9   : > { %v2682_v4 = vld [vmem:[%s6914_s8] sm:$0x3]  ;;  %v2673_v6 = vrot.slane %v2668_v3, %v5508_v11  ;;  %v2677_v8 = vrot.slane %v2668_v3, %v5514_v13 }
 0x3ba   : > { %4102 = vmatpush1.bf16.msra.mxu1 %v4101_v12  ;;  %v3304_v12 = vld [vmem:[%s6912_s6 + $0x4e0] sm:$0xff] }
 0x3bb   : > { %4104 = vmatprep.subr.bf16.mxu1 %v4103_v14  ;;  %v3306_v14 = vld [vmem:[%s6912_s6 + $0x4f0] sm:$0xff] }
 0x3bc   : > { %v4141_v16 = vpack.c.bf16 %v3306_v14, %v3304_v12  ;;  %v2691_v12 = vrot.slane %v2682_v4, %v5514_v13 }
 0x3be   : > { %4106 = vmatpush1.bf16.msra.mxu1 %v4105_v20  ;;  %v3308_v20 = vld [vmem:[%s6912_s6 + $0x500] sm:$0xff] }
 0x3bf   : > { %4108 = vmatprep.subr.bf16.mxu1 %v4107_v50  ;;  %v3310_v50 = vld [vmem:[%s6912_s6 + $0x510] sm:$0xff] }
 0x3c0   : > { %v4145_v7 = vpack.c.bf16 %v3310_v50, %v3308_v20 }
 0x3c2   : > { %4110 = vmatpush1.bf16.msra.mxu1 %v4109_v25  ;;  %v3312_v25 = vld [vmem:[%s6912_s6 + $0x520] sm:$0xff] }
 0x3c3   : > { %4112 = vmatprep.subr.bf16.mxu1 %v4111_v49  ;;  %v3319_v49 = vld [vmem:[%s6912_s6 + $0x558] sm:$0xff]  ;;  %v4149_v28 = vpack.c.bf16 %v3314_v26, %v3312_v25 }
 0x3c4   : > { %v4151_v29 = vpack.c.bf16 %v3319_v49, %v3317_v27 }
 0x3c5   : > { %2508 = vmatmul.mubr.f32.vlgmr.msra.gmra.mrb[6].mxu1 %v2225_v39  ;;  %v3325_v39 = vld [vmem:[%s6912_s6 + $0x588] sm:$0xff] }
 0x3c6   : > { %4114 = vmatpush1.bf16.msra.mxu1 %v4113_v35  ;;  %2659 = vmatprep.mubr.f32.mxu1 %v2592_v40  ;;  %v4153_v35 = vpack.c.bf16 %v3318_v31, %v3316_v30  ;;  %v4159_v40 = vpack.c.bf16 %v3327_v5, %v3325_v39 }
 0x3c7   : > { %4116 = vmatprep.subr.bf16.mxu1 %v4115_v36  ;;  %v4155_v36 = vpack.c.bf16 %v3323_v34, %v3321_v33 }
 0x3ca   : > { %4118 = vmatpush1.bf16.msra.mxu1 %v4117_v41  ;;  %v3324_v41 = vld [vmem:[%s6912_s6 + $0x580] sm:$0xff] }
 0x3cb   : > { %4120 = vmatprep.subr.bf16.mxu1 %v4119_v17  ;;  %v3326_v17 = vld [vmem:[%s6912_s6 + $0x590] sm:$0xff] }
 0x3cc   : > { %v4161_v1 = vpack.c.bf16 %v3326_v17, %v3324_v41 }
 0x3ce   : > { %4122 = vmatpush1.bf16.msra.mxu1 %v4121_v44  ;;  %v3328_v44 = vld [vmem:[%s6912_s6 + $0x5a0] sm:$0xff] }
 0x3cf   : > { %4124 = vmatprep.subr.bf16.mxu1 %v4123_v45  ;;  %v3330_v45 = vld [vmem:[%s6912_s6 + $0x5b0] sm:$0xff] }
 0x3d0   : > { %v4165_v48 = vpack.c.bf16 %v3330_v45, %v3328_v44 }
 0x3d2   : > { %4126 = vmatpush1.bf16.msra.mxu1 %v4125_v52  ;;  %v3332_v52 = vld [vmem:[%s6912_s6 + $0x5c0] sm:$0xff] }
 0x3d3   : > { %4128 = vmatprep.subr.bf16.mxu1 %v4127_v53  ;;  %v3334_v53 = vld [vmem:[%s6912_s6 + $0x5d0] sm:$0xff] }
 0x3d4   : > { %v4169_v56 = vpack.c.bf16 %v3334_v53, %v3332_v52 }
 0x3d6   : > { %4130 = vmatpush1.bf16.msra.mxu1 %v4129_v58  ;;  %v3336_v58 = vld [vmem:[%s6912_s6 + $0x5e0] sm:$0xff] }
 0x3d7   : > { %4132 = vmatprep.subr.bf16.mxu1 %v4131_v59  ;;  %v3338_v59 = vld [vmem:[%s6912_s6 + $0x5f0] sm:$0xff] }
 0x3d8   : > { %v4173_v62 = vpack.c.bf16 %v3338_v59, %v3336_v58 }
 0x3da   : > { %4134 = vmatpush1.bf16.msra.mxu1 %v4133_v0  ;;  %v2588_v0 = vrot.slane %v2516_v61, 2 }
 0x3db   : > { %4136 = vmatprep.subr.bf16.mxu1 %v4135_v2 }
 0x3dc   : > { %v2589_v2 = vsel %vm2017_vm5, %v2587_v63, %v2588_v0 }
 0x3de   : > { %4138 = vmatpush1.bf16.msra.mxu1 %v4137_v9  ;;  %v2687_v9 = vrot.slane %v2682_v4, %v5508_v11 }
 0x3df   : > { %4140 = vmatprep.subr.bf16.mxu1 %v4139_v10 }
 0x3e2   : > { %4142 = vmatpush1.bf16.msra.mxu1 %v4141_v16 }
 0x3e3   : > { %4144 = vmatprep.subr.bf16.mxu1 %v4143_v18 }
 0x3e6   : > { %4146 = vmatpush1.bf16.msra.mxu1 %v4145_v7 }
 0x3e7   : > { %4148 = vmatprep.subr.bf16.mxu1 %v4147_v24 }
 0x3ea   : > { %4150 = vmatpush1.bf16.msra.mxu1 %v4149_v28 }
 0x3eb   : > { %4152 = vmatprep.subr.bf16.mxu1 %v4151_v29 }
 0x3ee   : > { %4154 = vmatpush1.bf16.msra.mxu1 %v4153_v35 }
 0x3ef   : > { %4156 = vmatprep.subr.bf16.mxu1 %v4155_v36 }
 0x3f2   : > { %4158 = vmatpush1.bf16.msra.mxu1 %v4157_v19 }
 0x3f3   : > { %4160 = vmatprep.subr.bf16.mxu1 %v4159_v40 }
 0x3f6   : > { %4162 = vmatpush1.bf16.msra.mxu1 %v4161_v1 }
 0x3f7   : > { %4164 = vmatprep.subr.bf16.mxu1 %v4163_v43 }
 0x3fa   : > { %4166 = vmatpush1.bf16.msra.mxu1 %v4165_v48 }
 0x3fb   : > { %4168 = vmatprep.subr.bf16.mxu1 %v4167_v51 }
 0x3fe   : > { %4170 = vmatpush1.bf16.msra.mxu1 %v4169_v56 }
 0x3ff   : > { %4172 = vmatprep.subr.bf16.mxu1 %v4171_v57 }
 0x402   : > { %4174 = vmatpush1.bf16.msra.mxu1 %v4173_v62 }
 0x405   : > { %2660 = vmatmul.mubr.f32.vlgmr.msra.gmra.mrb[6].mxu1 %v2589_v2 }
 0x4d8   : > { %v2661_v10 = vpop.f32.mrb[6].mxu1 }
 0x4d9   : > { %v2680_v14 = vmul.f32 %v2673_v6, %v2661_v10  ;;  %v2663_v21 = vpop.f32.mrb[7].mxu1 }
 0x4da   : > { %v2681_v15 = vmul.f32 %v2677_v8, %v2663_v21 }
 0x4db   : > { %v2694_v16 = vadd.f32 %v2687_v9, %v2680_v14 }
 0x4dc   : > { %v2695_v18 = vadd.f32 %v2691_v12, %v2681_v15 }
 0x4dd   : > { %v2696_v20 = vmax.f32 %v2694_v16, 0.0 }
 0x4de   : > { %v2697_v50 = vmax.f32 %v2695_v18, 0.0 }
 0x4df   : > { %2698 = vst [vmem:[%s329_s22] sm:$0xff] %v2696_v20 }
 0x4e0   : > { %2699 = vst [vmem:[%s329_s22 + $0x8] sm:$0xff] %v2697_v50 }
 0x4e1 PF: > { %s19_s30 = sadd.s32 1, %s4222_s30  }
 0x4e2   : > { %p16_p4 = scmp.ge.s32.totalorder %s19_s30, 4  }
 0x4e4   :  { %18 = sbr.rel (!%p16_p4) target bundleno = 1 (0x1), region = 95 }

</bundles_post_ra>
